<compile_context>
chip_gen: v5e
topology: v5e:2x2
jax: 0.10.0
libtpu: 0.0.40
codegen_flags: <defaults>
</compile_context>

<pallas_src>
import jax
import jax.numpy as jnp
import numpy as np
from jax.experimental import pallas as pl
from jax.experimental.pallas import tpu as pltpu

IN_DIM = 1568            # = 2 * 28 * 28 (x.view(-1, 1568))
HID = 200
LATENT = 2

HID_PAD = 256            # hidden width padded to a lane multiple (VMEM-only)
TB_TARGET = 512          # batch tile: VMEM-safe on all gens, near roofline


def _round_up(x, m):
    return ((x + m - 1) // m) * m


def _cdiv(a, b):
    return -(-a // b)


def vae_kernel(x_ref, eps_ref, w1_ref, b1_ref, wh_ref, bh_ref,
               w3_ref, b3_ref, w4_ref, b4_ref,
               recon_ref, muvar_ref):
    """One batch tile of the VAE forward: encode -> reparameterize -> decode."""
    # Cast f32 -> bf16 in-kernel (avoids an extra wrapper-side HBM pass).
    x = x_ref[...].astype(jnp.bfloat16)                        # (TB, 1568)

    # encode: h1 = relu(x @ W1 + b1)   (bf16 inputs, f32 accumulate on MXU)
    h1 = jnp.maximum(
        jnp.dot(x, w1_ref[...], preferred_element_type=jnp.float32) + b1_ref[...],
        0.0)                                                   # (TB, HID_PAD) f32

    # fused encoder heads: [mu | logvar] in one (HID_PAD, 4) matmul
    heads = jnp.dot(h1, wh_ref[...],
                    preferred_element_type=jnp.float32) + bh_ref[...]   # (TB, 4)
    mu = heads[:, :LATENT]
    logvar = heads[:, LATENT:]

    # reparameterize: z = mu + eps * exp(0.5 * logvar)
    std = jnp.exp(0.5 * logvar)
    z = mu + eps_ref[...] * std                                # (TB, 2) f32

    # decode projection (K=2): two VPU broadcast-FMAs instead of a padded MXU pass
    h3 = z[:, 0:1] * w3_ref[0:1, :] + z[:, 1:2] * w3_ref[1:2, :] + b3_ref[...]
    h3 = jnp.maximum(h3, 0.0)                                  # (TB, HID_PAD) f32

    # logits = h3 @ W4 + b4   (bf16 inputs, f32 accumulate) -> (TB, 1568)
    logits = jnp.dot(h3.astype(w4_ref.dtype), w4_ref[...],
                     preferred_element_type=jnp.float32) + b4_ref[...]

    # sigmoid(x) = 1 / (1 + exp(-x)) with EUP exp + approx reciprocal,
    # stored as bf16 to halve the dominant HBM write stream.
    recon_ref[...] = pl.reciprocal(1.0 + jnp.exp(-logits),
                                   approx=True).astype(jnp.bfloat16)
    muvar_ref[...] = heads


def _pack_params(p):
    """Pad/pack/cast parameters into the kernel layout (in, out)."""
    w1 = jnp.zeros((IN_DIM, HID_PAD), jnp.bfloat16)
    w1 = w1.at[:, :HID].set(p["w1"].astype(jnp.bfloat16))       # (1568, 256)
    b1 = jnp.zeros((1, HID_PAD), jnp.float32).at[:, :HID].set(p["b1"])

    wh = jnp.zeros((HID_PAD, 2 * LATENT), jnp.float32)
    wh = wh.at[:HID, :LATENT].set(p["w21"]).at[:HID, LATENT:].set(p["w22"])
    bh = jnp.concatenate([p["b21"], p["b22"]], axis=1)          # (1, 4)

    w3 = jnp.zeros((LATENT, HID_PAD), jnp.float32).at[:, :HID].set(p["w3"])
    b3 = jnp.zeros((1, HID_PAD), jnp.float32).at[:, :HID].set(p["b3"])

    w4 = jnp.zeros((HID_PAD, IN_DIM), jnp.bfloat16)
    w4 = w4.at[:HID, :].set(p["w4"].astype(jnp.bfloat16))       # (256, 1568)
    b4 = p["b4"].astype(jnp.float32)                            # (1, 1568)
    return w1, b1, wh, bh, w3, b3, w4, b4


def vae_forward(x_img, eps, params, *, tb_target=TB_TARGET):
    B = x_img.shape[0]
    # x.view(-1, 1568): a reshape of a contiguous array is a free view in XLA.
    x = x_img.reshape(B, IN_DIM).astype(jnp.float32)

    # Batch padding only (no lane padding).  Force >= 2 even grid steps when the
    # batch is big enough so v7x can split the "parallel" axis over both TCs.
    B_req = _round_up(max(B, 1), 16)
    if B_req >= 256:
        steps = _round_up(max(2, _cdiv(B_req, tb_target)), 2)
        TB = _round_up(_cdiv(B_req, steps), 16)
        B_pad = steps * TB
    else:
        TB = B_pad = B_req
    grid = (B_pad // TB,)

    if B_pad != B:
        x_p = jnp.pad(x, ((0, B_pad - B), (0, 0)))
        eps_p = jnp.pad(eps.astype(jnp.float32), ((0, B_pad - B), (0, 0)))
    else:
        x_p = x
        eps_p = eps.astype(jnp.float32)

    w1, b1, wh, bh, w3, b3, w4, b4 = _pack_params(params)

    row_map = lambda i: (i, 0)      # batch-tiled arrays
    const_map = lambda i: (0, 0)    # weights/biases: VMEM-resident across steps

    in_specs = [
        pl.BlockSpec((TB, IN_DIM), row_map),                # x (full-extent lanes)
        pl.BlockSpec((TB, LATENT), row_map),                # eps (kept narrow)
        pl.BlockSpec((IN_DIM, HID_PAD), const_map),         # w1
        pl.BlockSpec((1, HID_PAD), const_map),              # b1
        pl.BlockSpec((HID_PAD, 2 * LATENT), const_map),     # w_heads
        pl.BlockSpec((1, 2 * LATENT), const_map),           # b_heads
        pl.BlockSpec((LATENT, HID_PAD), const_map),         # w3
        pl.BlockSpec((1, HID_PAD), const_map),              # b3
        pl.BlockSpec((HID_PAD, IN_DIM), const_map),         # w4
        pl.BlockSpec((1, IN_DIM), const_map),               # b4
    ]
    out_specs = (
        pl.BlockSpec((TB, IN_DIM), row_map),                # recon (bf16, unpadded lanes)
        pl.BlockSpec((TB, 2 * LATENT), row_map),            # [mu | logvar] (kept narrow)
    )

    recon_pad, muvar = pl.pallas_call(
        vae_kernel,
        grid=grid,
        in_specs=in_specs,
        out_specs=out_specs,
        out_shape=(jax.ShapeDtypeStruct((B_pad, IN_DIM), jnp.bfloat16),
                   jax.ShapeDtypeStruct((B_pad, 2 * LATENT), jnp.float32)),
        compiler_params=pltpu.CompilerParams(
            dimension_semantics=("parallel",),
            vmem_limit_bytes=48 * 1024 * 1024),
    )(x_p, eps_p, w1, b1, wh, bh, w3, b3, w4, b4)

    if B_pad != B:
        recon_pad = recon_pad[:B]
        muvar = muvar[:B]
    # recon is returned in bf16 (intentional: halves HBM writeback of the
    # largest output; cast back to f32 downstream only if required).
    recon = recon_pad
    mu = muvar[:, :LATENT]
    logvar = muvar[:, LATENT:]
    return recon, mu, logvar


def init_params(key):
    """Deterministic init mimicking nn.Linear default U(-1/sqrt(fan_in), ...)."""
    def linear(k, fan_in, fan_out):
        kw, kb = jax.random.split(k)
        bound = 1.0 / np.sqrt(fan_in)
        w = jax.random.uniform(kw, (fan_in, fan_out), jnp.float32, -bound, bound)
        b = jax.random.uniform(kb, (1, fan_out), jnp.float32, -bound, bound)
        return w, b

    k1, k21, k22, k3, k4 = jax.random.split(key, 5)
    p = {}
    p["w1"], p["b1"] = linear(k1, IN_DIM, HID)
    p["w21"], p["b21"] = linear(k21, HID, LATENT)
    p["w22"], p["b22"] = linear(k22, HID, LATENT)
    p["w3"], p["b3"] = linear(k3, LATENT, HID)
    p["w4"], p["b4"] = linear(k4, HID, IN_DIM)
    return p


def vae_forward_ref(x_img, eps, p):
    """Pure-JAX f32 reference matching the PyTorch semantics exactly."""
    x = x_img.reshape(x_img.shape[0], IN_DIM).astype(jnp.float32)
    h1 = jax.nn.relu(x @ p["w1"] + p["b1"])
    mu = h1 @ p["w21"] + p["b21"]
    logvar = h1 @ p["w22"] + p["b22"]
    z = mu + eps * jnp.exp(0.5 * logvar)
    h3 = jax.nn.relu(z @ p["w3"] + p["b3"])
    recon = jax.nn.sigmoid(h3 @ p["w4"] + p["b4"])
    return recon, mu, logvar


if __name__ == "__main__":
    key = jax.random.PRNGKey(0)
    kp, kx, ke = jax.random.split(key, 3)

    params = init_params(kp)

    B = 2
    x = jax.random.uniform(kx, (B, 2, 28, 28), jnp.float32)   # NCHW -> 1568 features
    # TODO(synk): torch.randn_like(std) in-module RNG is supplied as an explicit eps input.
    eps = jax.random.normal(ke, (B, LATENT), jnp.float32)

    recon, mu, logvar = vae_forward(x, eps, params)
    jax.block_until_ready((recon, mu, logvar))

    r_recon, r_mu, r_logvar = vae_forward_ref(x, eps, params)
    # bf16 matmuls + bf16 recon store + approx reciprocal -> relaxed tolerances.
    np.testing.assert_allclose(np.asarray(recon, dtype=np.float32),
                               np.asarray(r_recon), rtol=2e-2, atol=2e-2)
    np.testing.assert_allclose(np.asarray(mu), np.asarray(r_mu), rtol=2e-2, atol=2e-2)
    np.testing.assert_allclose(np.asarray(logvar), np.asarray(r_logvar), rtol=2e-2, atol=2e-2)

    print("KERNEL_OK")
</pallas_src>

<mosaic_0001>
module attributes {stable_mosaic.version = 11 : i64} {
  func.func @vae_kernel(%arg0: i32, %arg1: memref<16x1568xf32, #tpu.memory_space<vmem>>, %arg2: memref<16x2xf32, #tpu.memory_space<vmem>>, %arg3: memref<1568x256xbf16, #tpu.memory_space<vmem>>, %arg4: memref<1x256xf32, #tpu.memory_space<vmem>>, %arg5: memref<256x4xf32, #tpu.memory_space<vmem>>, %arg6: memref<1x4xf32, #tpu.memory_space<vmem>>, %arg7: memref<2x256xf32, #tpu.memory_space<vmem>>, %arg8: memref<1x256xf32, #tpu.memory_space<vmem>>, %arg9: memref<256x1568xbf16, #tpu.memory_space<vmem>>, %arg10: memref<1x1568xf32, #tpu.memory_space<vmem>>, %arg11: memref<16x1568xbf16, #tpu.memory_space<vmem>>, %arg12: memref<16x4xf32, #tpu.memory_space<vmem>>) attributes {dimension_semantics = [#tpu.dimension_semantics<parallel>], iteration_bounds = array<i64: 1>, scalar_prefetch = 0 : i64, scratch_operands = 0 : i64, tpu.core_type = #tpu.core_type<tc>, window_params = [{transform_indices = @transform_0, window_bounds = array<i64: 16, 1568>}, {transform_indices = @transform_1, window_bounds = array<i64: 16, 2>}, {pipeline_mode = #tpu.pipeline_mode<synchronous>, transform_indices = @transform_2, window_bounds = array<i64: 1568, 256>}, {pipeline_mode = #tpu.pipeline_mode<synchronous>, transform_indices = @transform_3, window_bounds = array<i64: 1, 256>}, {pipeline_mode = #tpu.pipeline_mode<synchronous>, transform_indices = @transform_4, window_bounds = array<i64: 256, 4>}, {pipeline_mode = #tpu.pipeline_mode<synchronous>, transform_indices = @transform_5, window_bounds = array<i64: 1, 4>}, {pipeline_mode = #tpu.pipeline_mode<synchronous>, transform_indices = @transform_6, window_bounds = array<i64: 2, 256>}, {pipeline_mode = #tpu.pipeline_mode<synchronous>, transform_indices = @transform_7, window_bounds = array<i64: 1, 256>}, {pipeline_mode = #tpu.pipeline_mode<synchronous>, transform_indices = @transform_8, window_bounds = array<i64: 256, 1568>}, {pipeline_mode = #tpu.pipeline_mode<synchronous>, transform_indices = @transform_9, window_bounds = array<i64: 1, 1568>}, {transform_indices = @transform_10, window_bounds = array<i64: 16, 1568>}, {transform_indices = @transform_11, window_bounds = array<i64: 16, 4>}]} {
    %c0 = arith.constant 0 : index
    %c0_0 = arith.constant 0 : index
    %0 = vector.load %arg1[%c0, %c0_0] : memref<16x1568xf32, #tpu.memory_space<vmem>>, vector<16x1568xf32>
    %1 = arith.truncf %0 : vector<16x1568xf32> to vector<16x1568xbf16>
    %c0_1 = arith.constant 0 : index
    %c0_2 = arith.constant 0 : index
    %2 = vector.load %arg3[%c0_1, %c0_2] : memref<1568x256xbf16, #tpu.memory_space<vmem>>, vector<1568x256xbf16>
    %cst = arith.constant dense<0.000000e+00> : vector<16x256xf32>
    %3 = tpu.matmul %1, %2, %cst {dimension_numbers = #tpu.dot_dimension_numbers<[1], [0], [0], [1], [0, 0, 1, 1], [], []>} : vector<16x1568xbf16>, vector<1568x256xbf16>, vector<16x256xf32> -> vector<16x256xf32>
    %c0_3 = arith.constant 0 : index
    %c0_4 = arith.constant 0 : index
    %4 = vector.load %arg4[%c0_3, %c0_4] : memref<1x256xf32, #tpu.memory_space<vmem>>, vector<1x256xf32>
    %5 = vector.broadcast %4 : vector<1x256xf32> to vector<16x256xf32>
    %6 = arith.addf %3, %5 : vector<16x256xf32>
    %cst_5 = arith.constant 0.000000e+00 : f32
    %7 = vector.broadcast %cst_5 : f32 to vector<16x256xf32>
    %8 = arith.maximumf %6, %7 : vector<16x256xf32>
    %c0_6 = arith.constant 0 : index
    %c0_7 = arith.constant 0 : index
    %9 = vector.load %arg5[%c0_6, %c0_7] : memref<256x4xf32, #tpu.memory_space<vmem>>, vector<256x4xf32>
    %cst_8 = arith.constant dense<0.000000e+00> : vector<16x4xf32>
    %10 = tpu.matmul %8, %9, %cst_8 {dimension_numbers = #tpu.dot_dimension_numbers<[1], [0], [0], [1], [0, 0, 1, 1], [], []>} : vector<16x256xf32>, vector<256x4xf32>, vector<16x4xf32> -> vector<16x4xf32>
    %c0_9 = arith.constant 0 : index
    %c0_10 = arith.constant 0 : index
    %11 = vector.load %arg6[%c0_9, %c0_10] : memref<1x4xf32, #tpu.memory_space<vmem>>, vector<1x4xf32>
    %12 = vector.broadcast %11 : vector<1x4xf32> to vector<16x4xf32>
    %13 = arith.addf %10, %12 : vector<16x4xf32>
    %14 = vector.extract_strided_slice %13 {offsets = [0, 0], sizes = [16, 2], strides = [1, 1]} : vector<16x4xf32> to vector<16x2xf32>
    %15 = vector.extract_strided_slice %13 {offsets = [0, 2], sizes = [16, 2], strides = [1, 1]} : vector<16x4xf32> to vector<16x2xf32>
    %cst_11 = arith.constant 5.000000e-01 : f32
    %16 = vector.broadcast %cst_11 : f32 to vector<16x2xf32>
    %17 = arith.mulf %16, %15 : vector<16x2xf32>
    %18 = math.exp %17 : vector<16x2xf32>
    %c0_12 = arith.constant 0 : index
    %c0_13 = arith.constant 0 : index
    %19 = vector.load %arg2[%c0_12, %c0_13] : memref<16x2xf32, #tpu.memory_space<vmem>>, vector<16x2xf32>
    %20 = arith.mulf %19, %18 : vector<16x2xf32>
    %21 = arith.addf %14, %20 : vector<16x2xf32>
    %22 = vector.extract_strided_slice %21 {offsets = [0, 0], sizes = [16, 1], strides = [1, 1]} : vector<16x2xf32> to vector<16x1xf32>
    %c0_14 = arith.constant 0 : index
    %c0_15 = arith.constant 0 : index
    %23 = vector.load %arg7[%c0_14, %c0_15] : memref<2x256xf32, #tpu.memory_space<vmem>>, vector<1x256xf32>
    %24 = vector.broadcast %22 : vector<16x1xf32> to vector<16x256xf32>
    %25 = vector.broadcast %23 : vector<1x256xf32> to vector<16x256xf32>
    %26 = arith.mulf %24, %25 : vector<16x256xf32>
    %27 = vector.extract_strided_slice %21 {offsets = [0, 1], sizes = [16, 1], strides = [1, 1]} : vector<16x2xf32> to vector<16x1xf32>
    %c1 = arith.constant 1 : index
    %c0_16 = arith.constant 0 : index
    %28 = vector.load %arg7[%c1, %c0_16] : memref<2x256xf32, #tpu.memory_space<vmem>>, vector<1x256xf32>
    %29 = vector.broadcast %27 : vector<16x1xf32> to vector<16x256xf32>
    %30 = vector.broadcast %28 : vector<1x256xf32> to vector<16x256xf32>
    %31 = arith.mulf %29, %30 : vector<16x256xf32>
    %32 = arith.addf %26, %31 : vector<16x256xf32>
    %c0_17 = arith.constant 0 : index
    %c0_18 = arith.constant 0 : index
    %33 = vector.load %arg8[%c0_17, %c0_18] : memref<1x256xf32, #tpu.memory_space<vmem>>, vector<1x256xf32>
    %34 = vector.broadcast %33 : vector<1x256xf32> to vector<16x256xf32>
    %35 = arith.addf %32, %34 : vector<16x256xf32>
    %cst_19 = arith.constant 0.000000e+00 : f32
    %36 = vector.broadcast %cst_19 : f32 to vector<16x256xf32>
    %37 = arith.maximumf %35, %36 : vector<16x256xf32>
    %38 = arith.truncf %37 : vector<16x256xf32> to vector<16x256xbf16>
    %c0_20 = arith.constant 0 : index
    %c0_21 = arith.constant 0 : index
    %39 = vector.load %arg9[%c0_20, %c0_21] : memref<256x1568xbf16, #tpu.memory_space<vmem>>, vector<256x1568xbf16>
    %cst_22 = arith.constant dense<0.000000e+00> : vector<16x1568xf32>
    %40 = tpu.matmul %38, %39, %cst_22 {dimension_numbers = #tpu.dot_dimension_numbers<[1], [0], [0], [1], [0, 0, 1, 1], [], []>} : vector<16x256xbf16>, vector<256x1568xbf16>, vector<16x1568xf32> -> vector<16x1568xf32>
    %c0_23 = arith.constant 0 : index
    %c0_24 = arith.constant 0 : index
    %41 = vector.load %arg10[%c0_23, %c0_24] : memref<1x1568xf32, #tpu.memory_space<vmem>>, vector<1x1568xf32>
    %42 = vector.broadcast %41 : vector<1x1568xf32> to vector<16x1568xf32>
    %43 = arith.addf %40, %42 : vector<16x1568xf32>
    %cst_25 = arith.constant 0.000000e+00 : f32
    %44 = vector.broadcast %cst_25 : f32 to vector<16x1568xf32>
    %45 = arith.subf %44, %43 : vector<16x1568xf32>
    %46 = math.exp %45 : vector<16x1568xf32>
    %cst_26 = arith.constant 1.000000e+00 : f32
    %47 = vector.broadcast %cst_26 : f32 to vector<16x1568xf32>
    %48 = arith.addf %47, %46 : vector<16x1568xf32>
    %49 = tpu.reciprocal %48 {approx = true} : vector<16x1568xf32> -> vector<16x1568xf32>
    %50 = arith.truncf %49 : vector<16x1568xf32> to vector<16x1568xbf16>
    %c0_27 = arith.constant 0 : index
    %c0_28 = arith.constant 0 : index
    %51 = vector.load %arg11[%c0_27, %c0_28] : memref<16x1568xbf16, #tpu.memory_space<vmem>>, vector<16x1568xbf16>
    tpu.vector_store %arg11[%c0_27, %c0_28], %50 {strides = array<i32>} : memref<16x1568xbf16, #tpu.memory_space<vmem>>, vector<16x1568xbf16>,
    %c0_29 = arith.constant 0 : index
    %c0_30 = arith.constant 0 : index
    %52 = vector.load %arg12[%c0_29, %c0_30] : memref<16x4xf32, #tpu.memory_space<vmem>>, vector<16x4xf32>
    tpu.vector_store %arg12[%c0_29, %c0_30], %13 {strides = array<i32>} : memref<16x4xf32, #tpu.memory_space<vmem>>, vector<16x4xf32>,
    return
  }
  func.func @transform_0(%arg0: i32) -> (i32, i32) {
    %c0_i32 = arith.constant 0 : i32
    %c0_i32_0 = arith.constant 0 : i32
    return %arg0, %c0_i32 : i32, i32
  }
  func.func @transform_1(%arg0: i32) -> (i32, i32) {
    %c0_i32 = arith.constant 0 : i32
    %c0_i32_0 = arith.constant 0 : i32
    return %arg0, %c0_i32 : i32, i32
  }
  func.func @transform_2(%arg0: i32) -> (i32, i32) {
    %c0_i32 = arith.constant 0 : i32
    %c0_i32_0 = arith.constant 0 : i32
    %c0_i32_1 = arith.constant 0 : i32
    return %c0_i32, %c0_i32_0 : i32, i32
  }
  func.func @transform_3(%arg0: i32) -> (i32, i32) {
    %c0_i32 = arith.constant 0 : i32
    %c0_i32_0 = arith.constant 0 : i32
    %c0_i32_1 = arith.constant 0 : i32
    return %c0_i32, %c0_i32_0 : i32, i32
  }
  func.func @transform_4(%arg0: i32) -> (i32, i32) {
    %c0_i32 = arith.constant 0 : i32
    %c0_i32_0 = arith.constant 0 : i32
    %c0_i32_1 = arith.constant 0 : i32
    return %c0_i32, %c0_i32_0 : i32, i32
  }
  func.func @transform_5(%arg0: i32) -> (i32, i32) {
    %c0_i32 = arith.constant 0 : i32
    %c0_i32_0 = arith.constant 0 : i32
    %c0_i32_1 = arith.constant 0 : i32
    return %c0_i32, %c0_i32_0 : i32, i32
  }
  func.func @transform_6(%arg0: i32) -> (i32, i32) {
    %c0_i32 = arith.constant 0 : i32
    %c0_i32_0 = arith.constant 0 : i32
    %c0_i32_1 = arith.constant 0 : i32
    return %c0_i32, %c0_i32_0 : i32, i32
  }
  func.func @transform_7(%arg0: i32) -> (i32, i32) {
    %c0_i32 = arith.constant 0 : i32
    %c0_i32_0 = arith.constant 0 : i32
    %c0_i32_1 = arith.constant 0 : i32
    return %c0_i32, %c0_i32_0 : i32, i32
  }
  func.func @transform_8(%arg0: i32) -> (i32, i32) {
    %c0_i32 = arith.constant 0 : i32
    %c0_i32_0 = arith.constant 0 : i32
    %c0_i32_1 = arith.constant 0 : i32
    return %c0_i32, %c0_i32_0 : i32, i32
  }
  func.func @transform_9(%arg0: i32) -> (i32, i32) {
    %c0_i32 = arith.constant 0 : i32
    %c0_i32_0 = arith.constant 0 : i32
    %c0_i32_1 = arith.constant 0 : i32
    return %c0_i32, %c0_i32_0 : i32, i32
  }
  func.func @transform_10(%arg0: i32) -> (i32, i32) {
    %c0_i32 = arith.constant 0 : i32
    %c0_i32_0 = arith.constant 0 : i32
    return %arg0, %c0_i32 : i32, i32
  }
  func.func @transform_11(%arg0: i32) -> (i32, i32) {
    %c0_i32 = arith.constant 0 : i32
    %c0_i32_0 = arith.constant 0 : i32
    return %arg0, %c0_i32 : i32, i32
  }
}

</mosaic_0001>

<bundles_post_ra>
// kernel: tpu_custom_call.1
= control target key start
LH: loop header
LB: loop body
LE: loop exit
PB: predicated region body
PF: predicated region fallthrough
CT: control target
= control target key end

     0   :  { %s8633_s0 = inlined_call_operand.vmem [shape: f32[16,1568], index: 0, kind: input, shape index: {}]   ;;  %s8634_s1 = inlined_call_operand.vmem [shape: f32[16,2], index: 1, kind: input, shape index: {}]   ;;  %s8635_s2 = inlined_call_operand.vmem [shape: bf16[1568,256], index: 2, kind: input, shape index: {}]   ;;  %s8636_s3 = inlined_call_operand.vmem [shape: f32[1,256], index: 3, kind: input, shape index: {}]   ;;  %s8637_s4 = inlined_call_operand.vmem [shape: f32[256,4], index: 4, kind: input, shape index: {}]   ;;  %s8638_s5 = inlined_call_operand.vmem [shape: f32[1,4], index: 5, kind: input, shape index: {}]   ;;  %s8639_s6 = inlined_call_operand.vmem [shape: f32[2,256], index: 6, kind: input, shape index: {}]   ;;  %s8640_s7 = inlined_call_operand.vmem [shape: f32[1,256], index: 7, kind: input, shape index: {}]   ;;  %s8641_s8 = inlined_call_operand.vmem [shape: bf16[256,1568], index: 8, kind: input, shape index: {}]   ;;  %s8642_s9 = inlined_call_operand.vmem [shape: f32[1,1568], index: 9, kind: input, shape index: {}]   ;;  %s8643_s10 = inlined_call_operand.hbm [shape: bf16[16,1568], index: 10, kind: output, shape index: {0}]   ;;  %s8644_s11 = inlined_call_operand.vmem [shape: f32[16,4], index: 11, kind: output, shape index: {1}]  }
   0x1   :  { %v3709_v0 = vld [vmem:[%s8635_s2 + $0x70] sm:$0xf]  ;;  %v5285_v1 = vld [vmem:[%s8635_s2 + $0x74] sm:$0xf0]  ;;  %v3701_v11 = vld [vmem:[%s8635_s2 + $0x60] sm:$0xf] }
   0x2   :  { %v3773_v2 = vld [vmem:[%s8635_s2 + $0xf0] sm:$0xf]  ;;  %v3710_v3 = vor.u32 %v5285_v1, %v3709_v0  ;;  %v5301_v4 = vld [vmem:[%s8635_s2 + $0xf4] sm:$0xf0]  ;;  %v5283_v13 = vld [vmem:[%s8635_s2 + $0x64] sm:$0xf0] }
   0x3   :  { %v3837_v5 = vld [vmem:[%s8635_s2 + $0x170] sm:$0xf]  ;;  %v5317_v6 = vld [vmem:[%s8635_s2 + $0x174] sm:$0xf0]  ;;  %v3774_v7 = vor.u32 %v5301_v4, %v3773_v2  ;;  %v3765_v14 = vld [vmem:[%s8635_s2 + $0xe0] sm:$0xf]  ;;  %v3702_v16 = vor.u32 %v5283_v13, %v3701_v11 }
   0x4   :  { %v3838_v8 = vor.u32 %v5317_v6, %v3837_v5  ;;  %v3901_v9 = vld [vmem:[%s8635_s2 + $0x1f0] sm:$0xf]  ;;  %v5333_v10 = vld [vmem:[%s8635_s2 + $0x1f4] sm:$0xf0]  ;;  %1264 = vmatpush.bf16.msra.mxu0 %v3710_v3  ;;  %v5299_v15 = vld [vmem:[%s8635_s2 + $0xe4] sm:$0xf0] }
   0x5   :  { %v3902_v12 = vor.u32 %v5333_v10, %v3901_v9  ;;  %1278 = vmatpush.bf16.msra.mxu1 %v3774_v7  ;;  %v3766_v17 = vor.u32 %v5299_v15, %v3765_v14  ;;  %v3829_v18 = vld [vmem:[%s8635_s2 + $0x160] sm:$0xf]  ;;  %v5315_v19 = vld [vmem:[%s8635_s2 + $0x164] sm:$0xf0]  ;;  %v3693_v23 = vld [vmem:[%s8635_s2 + $0x50] sm:$0xf] }
   0x6   :  { %1292 = vmatpush.bf16.msra.mxu2 %v3838_v8  ;;  %v3893_v20 = vld [vmem:[%s8635_s2 + $0x1e0] sm:$0xf]  ;;  %v3830_v21 = vor.u32 %v5315_v19, %v3829_v18  ;;  %v5331_v22 = vld [vmem:[%s8635_s2 + $0x1e4] sm:$0xf0]  ;;  %v5281_v24 = vld [vmem:[%s8635_s2 + $0x54] sm:$0xf0] }
   0x7   :  { %1306 = vmatpush.bf16.msra.mxu3 %v3902_v12  ;;  %v3894_v25 = vor.u32 %v5331_v22, %v3893_v20  ;;  %v3757_v26 = vld [vmem:[%s8635_s2 + $0xd0] sm:$0xf]  ;;  %v5297_v27 = vld [vmem:[%s8635_s2 + $0xd4] sm:$0xf0]  ;;  %v3694_v29 = vor.u32 %v5281_v24, %v3693_v23  ;;  %v3685_v35 = vld [vmem:[%s8635_s2 + $0x40] sm:$0xf] }
   0x8   :  { %v3821_v28 = vld [vmem:[%s8635_s2 + $0x150] sm:$0xf]  ;;  %1265 = vmatpush.bf16.msra.mxu0 %v3702_v16  ;;  %v5313_v30 = vld [vmem:[%s8635_s2 + $0x154] sm:$0xf0]  ;;  %v3758_v33 = vor.u32 %v5297_v27, %v3757_v26  ;;  %v5279_v36 = vld [vmem:[%s8635_s2 + $0x44] sm:$0xf0] }
   0x9   :  { %v3885_v31 = vld [vmem:[%s8635_s2 + $0x1d0] sm:$0xf]  ;;  %v5329_v32 = vld [vmem:[%s8635_s2 + $0x1d4] sm:$0xf0]  ;;  %1279 = vmatpush.bf16.msra.mxu1 %v3766_v17  ;;  %v3822_v34 = vor.u32 %v5313_v30, %v3821_v28  ;;  %v3749_v37 = vld [vmem:[%s8635_s2 + $0xc0] sm:$0xf]  ;;  %v3686_v44 = vor.u32 %v5279_v36, %v3685_v35 }
   0xa   :  { %1293 = vmatpush.bf16.msra.mxu2 %v3830_v21  ;;  %v3886_v38 = vor.u32 %v5329_v32, %v3885_v31  ;;  %v5295_v39 = vld [vmem:[%s8635_s2 + $0xc4] sm:$0xf0]  ;;  %v3813_v40 = vld [vmem:[%s8635_s2 + $0x140] sm:$0xf]  ;;  %v3677_v47 = vld [vmem:[%s8635_s2 + $0x30] sm:$0xf] }
   0xb   :  { %1307 = vmatpush.bf16.msra.mxu3 %v3894_v25  ;;  %v5311_v41 = vld [vmem:[%s8635_s2 + $0x144] sm:$0xf0]  ;;  %v3877_v42 = vld [vmem:[%s8635_s2 + $0x1c0] sm:$0xf]  ;;  %v3750_v45 = vor.u32 %v5295_v39, %v3749_v37  ;;  %v5277_v48 = vld [vmem:[%s8635_s2 + $0x34] sm:$0xf0] }
   0xc   :  { %v5327_v43 = vld [vmem:[%s8635_s2 + $0x1c4] sm:$0xf0]  ;;  %1266 = vmatpush.bf16.msra.mxu0 %v3694_v29  ;;  %v3814_v46 = vor.u32 %v5311_v41, %v3813_v40  ;;  %v3741_v49 = vld [vmem:[%s8635_s2 + $0xb0] sm:$0xf]  ;;  %v5293_v51 = vld [vmem:[%s8635_s2 + $0xb4] sm:$0xf0]  ;;  %v3678_v56 = vor.u32 %v5277_v48, %v3677_v47 }
   0xd   :  { %1280 = vmatpush.bf16.msra.mxu1 %v3758_v33  ;;  %v3878_v50 = vor.u32 %v5327_v43, %v3877_v42  ;;  %v3805_v52 = vld [vmem:[%s8635_s2 + $0x130] sm:$0xf]  ;;  %v5309_v53 = vld [vmem:[%s8635_s2 + $0x134] sm:$0xf0]  ;;  %v3742_v57 = vor.u32 %v5293_v51, %v3741_v49  ;;  %v3669_v59 = vld [vmem:[%s8635_s2 + $0x20] sm:$0xf] }
   0xe   :  { %1294 = vmatpush.bf16.msra.mxu2 %v3822_v34  ;;  %v3869_v54 = vld [vmem:[%s8635_s2 + $0x1b0] sm:$0xf]  ;;  %v5325_v55 = vld [vmem:[%s8635_s2 + $0x1b4] sm:$0xf0]  ;;  %v3806_v58 = vor.u32 %v5309_v53, %v3805_v52  ;;  %v5275_v60 = vld [vmem:[%s8635_s2 + $0x24] sm:$0xf0] }
   0xf   :  { %1308 = vmatpush.bf16.msra.mxu3 %v3886_v38  ;;  %v3733_v61 = vld [vmem:[%s8635_s2 + $0xa0] sm:$0xf]  ;;  %v3870_v62 = vor.u32 %v5325_v55, %v3869_v54  ;;  %v5291_v63 = vld [vmem:[%s8635_s2 + $0xa4] sm:$0xf0]  ;;  %v3670_v4 = vor.u32 %v5275_v60, %v3669_v59  ;;  %v3661_v7 = vld [vmem:[%s8635_s2 + $0x10] sm:$0xf] }
  0x10   :  { %1267 = vmatpush.bf16.msra.mxu0 %v3686_v44  ;;  %v3797_v0 = vld [vmem:[%s8635_s2 + $0x120] sm:$0xf]  ;;  %v5307_v1 = vld [vmem:[%s8635_s2 + $0x124] sm:$0xf0]  ;;  %v3734_v5 = vor.u32 %v5291_v63, %v3733_v61  ;;  %v5273_v8 = vld [vmem:[%s8635_s2 + $0x14] sm:$0xf0] }
  0x11   :  { %1281 = vmatpush.bf16.msra.mxu1 %v3750_v45  ;;  %v3861_v2 = vld [vmem:[%s8635_s2 + $0x1a0] sm:$0xf]  ;;  %v5323_v3 = vld [vmem:[%s8635_s2 + $0x1a4] sm:$0xf0]  ;;  %v3798_v6 = vor.u32 %v5307_v1, %v3797_v0  ;;  %v3725_v9 = vld [vmem:[%s8635_s2 + $0x90] sm:$0xf]  ;;  %v3662_v16 = vor.u32 %v5273_v8, %v3661_v7 }
  0x12   :  { %1295 = vmatpush.bf16.msra.mxu2 %v3814_v46  ;;  %v3862_v10 = vor.u32 %v5323_v3, %v3861_v2  ;;  %v5289_v11 = vld [vmem:[%s8635_s2 + $0x94] sm:$0xf0]  ;;  %v3789_v12 = vld [vmem:[%s8635_s2 + $0x110] sm:$0xf]  ;;  %v3653_v17 = vld [vmem:[%s8635_s2] sm:$0xf] }
  0x13   :  { %1309 = vmatpush.bf16.msra.mxu3 %v3878_v50  ;;  %v5305_v13 = vld [vmem:[%s8635_s2 + $0x114] sm:$0xf0]  ;;  %v3853_v14 = vld [vmem:[%s8635_s2 + $0x190] sm:$0xf]  ;;  %v5271_v18 = vld [vmem:[%s8635_s2 + $0x4] sm:$0xf0]  ;;  %v3726_v19 = vor.u32 %v5289_v11, %v3725_v9 }
  0x14   :  { %1268 = vmatpush.bf16.msra.mxu0 %v3678_v56  ;;  %v5321_v15 = vld [vmem:[%s8635_s2 + $0x194] sm:$0xf0]  ;;  %v3790_v20 = vor.u32 %v5305_v13, %v3789_v12  ;;  %v3717_v21 = vld [vmem:[%s8635_s2 + $0x80] sm:$0xf]  ;;  %v5287_v22 = vld [vmem:[%s8635_s2 + $0x84] sm:$0xf0]  ;;  %v3654_v31 = vor.u32 %v5271_v18, %v3653_v17 }
  0x15   :  { %1282 = vmatpush.bf16.msra.mxu1 %v3742_v57  ;;  %v3781_v23 = vld [vmem:[%s8635_s2 + $0x100] sm:$0xf]  ;;  %v3854_v24 = vor.u32 %v5321_v15, %v3853_v14  ;;  %v5303_v25 = vld [vmem:[%s8635_s2 + $0x104] sm:$0xf0]  ;;  %v3965_v28 = vld [vmem:[%s8635_s2 + $0x270] sm:$0xf]  ;;  %v3718_v35 = vor.u32 %v5287_v22, %v3717_v21 }
  0x16   :  { %1296 = vmatpush.bf16.msra.mxu2 %v3806_v58  ;;  %v3845_v26 = vld [vmem:[%s8635_s2 + $0x180] sm:$0xf]  ;;  %v5319_v27 = vld [vmem:[%s8635_s2 + $0x184] sm:$0xf0]  ;;  %v5349_v29 = vld [vmem:[%s8635_s2 + $0x274] sm:$0xf0]  ;;  %v3782_v36 = vor.u32 %v5303_v25, %v3781_v23 }
  0x17   :  { %1310 = vmatpush.bf16.msra.mxu3 %v3870_v62  ;;  %v4029_v30 = vld [vmem:[%s8635_s2 + $0x2f0] sm:$0xf]  ;;  %v5365_v32 = vld [vmem:[%s8635_s2 + $0x2f4] sm:$0xf0]  ;;  %v3846_v39 = vor.u32 %v5319_v27, %v3845_v26  ;;  %v3966_v40 = vor.u32 %v5349_v29, %v3965_v28  ;;  %v3957_v41 = vld [vmem:[%s8635_s2 + $0x260] sm:$0xf] }
  0x18   :  { %1269 = vmatpush.bf16.msra.mxu0 %v3670_v4  ;;  %v4093_v33 = vld [vmem:[%s8635_s2 + $0x370] sm:$0xf]  ;;  %v5381_v34 = vld [vmem:[%s8635_s2 + $0x374] sm:$0xf0]  ;;  %v5347_v42 = vld [vmem:[%s8635_s2 + $0x264] sm:$0xf0]  ;;  %v4030_v43 = vor.u32 %v5365_v32, %v4029_v30 }
  0x19   :  { %1283 = vmatpush.bf16.msra.mxu1 %v3734_v5  ;;  %v4157_v37 = vld [vmem:[%s8635_s2 + $0x3f0] sm:$0xf]  ;;  %v5397_v38 = vld [vmem:[%s8635_s2 + $0x3f4] sm:$0xf0]  ;;  %v4094_v44 = vor.u32 %v5381_v34, %v4093_v33  ;;  %v4021_v45 = vld [vmem:[%s8635_s2 + $0x2e0] sm:$0xf]  ;;  %v3958_v55 = vor.u32 %v5347_v42, %v3957_v41 }
  0x1a   :  { %1297 = vmatpush.bf16.msra.mxu2 %v3798_v6  ;;  %v5363_v46 = vld [vmem:[%s8635_s2 + $0x2e4] sm:$0xf0]  ;;  %v4085_v47 = vld [vmem:[%s8635_s2 + $0x360] sm:$0xf]  ;;  %v4158_v48 = vor.u32 %v5397_v38, %v4157_v37  ;;  %v41_v54 = vld [vmem:[%s8633_s0 + $0x10] sm:$0xff] }
  0x1b   :  { %1311 = vmatpush.bf16.msra.mxu3 %v3862_v10  ;;  %v5379_v49 = vld [vmem:[%s8635_s2 + $0x364] sm:$0xf0]  ;;  %v4149_v50 = vld [vmem:[%s8635_s2 + $0x3e0] sm:$0xf]  ;;  %v3949_v56 = vld [vmem:[%s8635_s2 + $0x250] sm:$0xf]  ;;  %v4022_v60 = vor.u32 %v5363_v46, %v4021_v45 }
  0x1c   :  { %1270 = vmatpush.bf16.msra.mxu0 %v3662_v16  ;;  %v5395_v51 = vld [vmem:[%s8635_s2 + $0x3e4] sm:$0xf0]  ;;  %v39_v52 = vld [vmem:[%s8633_s0] sm:$0xff]  ;;  %v5345_v57 = vld [vmem:[%s8635_s2 + $0x254] sm:$0xf0]  ;;  %v4086_v61 = vor.u32 %v5379_v49, %v4085_v47 }
  0x1d   :  { %1284 = vmatpush.bf16.msra.mxu1 %v3726_v19  ;;  %v52_v53 = vld [vmem:[%s8633_s0 + $0x68] sm:$0xff]  ;;  %v54_v59 = vld [vmem:[%s8633_s0 + $0x78] sm:$0xff]  ;;  %v4013_v62 = vld [vmem:[%s8635_s2 + $0x2d0] sm:$0xf]  ;;  %v4150_v2 = vor.u32 %v5395_v51, %v4149_v50  ;;  %v3950_v9 = vor.u32 %v5345_v57, %v3949_v56 }
  0x1e   :  { %1298 = vmatpush.bf16.msra.mxu2 %v3790_v20  ;;  %v6139_v58 = vpack.c.bf16 %v52_v53, %v39_v52  ;;  %v5361_v63 = vld [vmem:[%s8635_s2 + $0x2d4] sm:$0xf0]  ;;  %v4077_v0 = vld [vmem:[%s8635_s2 + $0x350] sm:$0xf]  ;;  %v6153_v1 = vpack.c.bf16 %v54_v59, %v41_v54  ;;  %v40_v6 = vld [vmem:[%s8633_s0 + $0x8] sm:$0xff] }
  0x1f   :  { %1312 = vmatpush.bf16.msra.mxu3 %v3854_v24  ;;  %v5377_v3 = vld [vmem:[%s8635_s2 + $0x354] sm:$0xf0]  ;;  %v4141_v4 = vld [vmem:[%s8635_s2 + $0x3d0] sm:$0xf]  ;;  %v55_v11 = vld [vmem:[%s8633_s0 + $0x80] sm:$0xff]  ;;  %v4014_v12 = vor.u32 %v5361_v63, %v4013_v62 }
  0x20   :  { %1271 = vmatpush.bf16.msra.mxu0 %v3654_v31  ;;  %v5393_v5 = vld [vmem:[%s8635_s2 + $0x3d4] sm:$0xf0]  ;;  %v53_v7 = vld [vmem:[%s8633_s0 + $0x70] sm:$0xff]  ;;  %v4078_v13 = vor.u32 %v5377_v3, %v4077_v0  ;;  %v3941_v14 = vld [vmem:[%s8635_s2 + $0x240] sm:$0xf] }
  0x21   :  { %1285 = vmatpush.bf16.msra.mxu1 %v3718_v35  ;;  %v42_v8 = vld [vmem:[%s8633_s0 + $0x18] sm:$0xff]  ;;  %v6175_v10 = vpack.c.bf16 %v53_v7, %v40_v6  ;;  %v5343_v15 = vld [vmem:[%s8635_s2 + $0x244] sm:$0xf0]  ;;  %v4005_v16 = vld [vmem:[%s8635_s2 + $0x2c0] sm:$0xf]  ;;  %v4142_v18 = vor.u32 %v5393_v5, %v4141_v4 }
  0x22   :  { %1299 = vmatpush.bf16.msra.mxu2 %v3782_v36  ;;  %v6189_v17 = vpack.c.bf16 %v55_v11, %v42_v8  ;;  %v5359_v19 = vld [vmem:[%s8635_s2 + $0x2c4] sm:$0xf0]  ;;  %v4069_v20 = vld [vmem:[%s8635_s2 + $0x340] sm:$0xf]  ;;  %v3942_v24 = vor.u32 %v5343_v15, %v3941_v14  ;;  %v3933_v27 = vld [vmem:[%s8635_s2 + $0x230] sm:$0xf] }
  0x23   :  { %1313 = vmatpush.bf16.msra.mxu3 %v3846_v39  ;;  %1272 = vmatmul.bf16.vlgmr.msra.gmra.mxu0 %v6139_v58  ;;  %v5375_v21 = vld [vmem:[%s8635_s2 + $0x344] sm:$0xf0]  ;;  %v4133_v22 = vld [vmem:[%s8635_s2 + $0x3c0] sm:$0xf]  ;;  %v4006_v25 = vor.u32 %v5359_v19, %v4005_v16  ;;  %v5341_v28 = vld [vmem:[%s8635_s2 + $0x234] sm:$0xf0] }
  0x24   :  { %1320 = vmatpush.bf16.msrb.mxu0 %v3966_v40  ;;  %1286 = vmatmul.bf16.vlgmr.msra.gmra.mxu1 %v6175_v10  ;;  %v5391_v23 = vld [vmem:[%s8635_s2 + $0x3c4] sm:$0xf0]  ;;  %v4070_v26 = vor.u32 %v5375_v21, %v4069_v20  ;;  %v3997_v29 = vld [vmem:[%s8635_s2 + $0x2b0] sm:$0xf]  ;;  %v5357_v31 = vld [vmem:[%s8635_s2 + $0x2b4] sm:$0xf0]  ;;  %v3934_v36 = vor.u32 %v5341_v28, %v3933_v27 }
  0x25   :  { %1334 = vmatpush.bf16.msrb.mxu1 %v4030_v43  ;;  %1300 = vmatmul.bf16.vlgmr.msra.gmra.mxu2 %v6153_v1  ;;  %v4134_v30 = vor.u32 %v5391_v23, %v4133_v22  ;;  %v4061_v32 = vld [vmem:[%s8635_s2 + $0x330] sm:$0xf]  ;;  %v5373_v33 = vld [vmem:[%s8635_s2 + $0x334] sm:$0xf0]  ;;  %v3998_v37 = vor.u32 %v5357_v31, %v3997_v29  ;;  %v3925_v39 = vld [vmem:[%s8635_s2 + $0x220] sm:$0xf] }
  0x26   :  { %1348 = vmatpush.bf16.msrb.mxu2 %v4094_v44  ;;  %1314 = vmatmul.bf16.vlgmr.msra.gmra.mxu3 %v6189_v17  ;;  %v4125_v34 = vld [vmem:[%s8635_s2 + $0x3b0] sm:$0xf]  ;;  %v5389_v35 = vld [vmem:[%s8635_s2 + $0x3b4] sm:$0xf0]  ;;  %v4062_v38 = vor.u32 %v5373_v33, %v4061_v32  ;;  %v5339_v40 = vld [vmem:[%s8635_s2 + $0x224] sm:$0xf0] }
  0x27   :  { %1362 = vmatpush.bf16.msrb.mxu3 %v4158_v48  ;;  %v3989_v41 = vld [vmem:[%s8635_s2 + $0x2a0] sm:$0xf]  ;;  %v4126_v42 = vor.u32 %v5389_v35, %v4125_v34  ;;  %v5355_v43 = vld [vmem:[%s8635_s2 + $0x2a4] sm:$0xf0]  ;;  %v3926_v48 = vor.u32 %v5339_v40, %v3925_v39  ;;  %v3917_v49 = vld [vmem:[%s8635_s2 + $0x210] sm:$0xf] }
  0x28   :  { %1321 = vmatpush.bf16.msrb.mxu0 %v3958_v55  ;;  %v4053_v44 = vld [vmem:[%s8635_s2 + $0x320] sm:$0xf]  ;;  %v5371_v45 = vld [vmem:[%s8635_s2 + $0x324] sm:$0xf0]  ;;  %v3990_v50 = vor.u32 %v5355_v43, %v3989_v41  ;;  %v5337_v52 = vld [vmem:[%s8635_s2 + $0x214] sm:$0xf0] }
  0x29   :  { %1335 = vmatpush.bf16.msrb.mxu1 %v4022_v60  ;;  %v4117_v46 = vld [vmem:[%s8635_s2 + $0x3a0] sm:$0xf]  ;;  %v5387_v47 = vld [vmem:[%s8635_s2 + $0x3a4] sm:$0xf0]  ;;  %v4054_v51 = vor.u32 %v5371_v45, %v4053_v44  ;;  %v3981_v53 = vld [vmem:[%s8635_s2 + $0x290] sm:$0xf]  ;;  %v3918_v63 = vor.u32 %v5337_v52, %v3917_v49 }
  0x2a   :  { %1349 = vmatpush.bf16.msrb.mxu2 %v4086_v61  ;;  %v5353_v54 = vld [vmem:[%s8635_s2 + $0x294] sm:$0xf0]  ;;  %v4118_v55 = vor.u32 %v5387_v47, %v4117_v46  ;;  %v4045_v56 = vld [vmem:[%s8635_s2 + $0x310] sm:$0xf]  ;;  %v3909_v61 = vld [vmem:[%s8635_s2 + $0x200] sm:$0xf] }
  0x2b   :  { %1363 = vmatpush.bf16.msrb.mxu3 %v4150_v2  ;;  %v5369_v57 = vld [vmem:[%s8635_s2 + $0x314] sm:$0xf0]  ;;  %v4109_v59 = vld [vmem:[%s8635_s2 + $0x390] sm:$0xf]  ;;  %v5335_v62 = vld [vmem:[%s8635_s2 + $0x204] sm:$0xf0]  ;;  %v3982_v5 = vor.u32 %v5353_v54, %v3981_v53 }
  0x2c   :  { %1322 = vmatpush.bf16.msrb.mxu0 %v3950_v9  ;;  %v5385_v60 = vld [vmem:[%s8635_s2 + $0x394] sm:$0xf0]  ;;  %v3973_v0 = vld [vmem:[%s8635_s2 + $0x280] sm:$0xf]  ;;  %v5351_v2 = vld [vmem:[%s8635_s2 + $0x284] sm:$0xf0]  ;;  %v4046_v6 = vor.u32 %v5369_v57, %v4045_v56  ;;  %v3910_v19 = vor.u32 %v5335_v62, %v3909_v61 }
  0x2d   :  { %1336 = vmatpush.bf16.msrb.mxu1 %v4014_v12  ;;  %v4037_v3 = vld [vmem:[%s8635_s2 + $0x300] sm:$0xf]  ;;  %v5367_v4 = vld [vmem:[%s8635_s2 + $0x304] sm:$0xf0]  ;;  %v4221_v9 = vld [vmem:[%s8635_s2 + $0x470] sm:$0xf]  ;;  %v4110_v11 = vor.u32 %v5385_v60, %v4109_v59  ;;  %v3974_v23 = vor.u32 %v5351_v2, %v3973_v0 }
  0x2e   :  { %1350 = vmatpush.bf16.msrb.mxu2 %v4078_v13  ;;  %v4101_v7 = vld [vmem:[%s8635_s2 + $0x380] sm:$0xf]  ;;  %v5383_v8 = vld [vmem:[%s8635_s2 + $0x384] sm:$0xf0]  ;;  %v5413_v12 = vld [vmem:[%s8635_s2 + $0x474] sm:$0xf0] }
  0x2f   :  { %1364 = vmatpush.bf16.msrb.mxu3 %v4142_v18  ;;  %v4285_v13 = vld [vmem:[%s8635_s2 + $0x4f0] sm:$0xf]  ;;  %v5429_v14 = vld [vmem:[%s8635_s2 + $0x4f4] sm:$0xf0]  ;;  %v43_v21 = vld [vmem:[%s8633_s0 + $0x20] sm:$0xff]  ;;  %v4102_v28 = vor.u32 %v5383_v8, %v4101_v7  ;;  %v4222_v29 = vor.u32 %v5413_v12, %v4221_v9 }
  0x30   :  { %1323 = vmatpush.bf16.msrb.mxu0 %v3942_v24  ;;  %v4349_v15 = vld [vmem:[%s8635_s2 + $0x570] sm:$0xf]  ;;  %v5445_v16 = vld [vmem:[%s8635_s2 + $0x574] sm:$0xf0]  ;;  %v56_v22 = vld [vmem:[%s8633_s0 + $0x88] sm:$0xff]  ;;  %v4038_v24 = vor.u32 %v5367_v4, %v4037_v3  ;;  %v4286_v33 = vor.u32 %v5429_v14, %v4285_v13 }
  0x31   :  { %1337 = vmatpush.bf16.msrb.mxu1 %v4006_v25  ;;  %v4413_v18 = vld [vmem:[%s8635_s2 + $0x5f0] sm:$0xf]  ;;  %v5461_v20 = vld [vmem:[%s8635_s2 + $0x5f4] sm:$0xf0]  ;;  %v44_v27 = vld [vmem:[%s8633_s0 + $0x28] sm:$0xff]  ;;  %v4350_v34 = vor.u32 %v5445_v16, %v4349_v15  ;;  %v6361_v39 = vpack.c.bf16 %v56_v22, %v43_v21 }
  0x32   :  { %1351 = vmatpush.bf16.msrb.mxu2 %v4070_v26  ;;  %v45_v25 = vld [vmem:[%s8633_s0 + $0x30] sm:$0xff]  ;;  %v58_v26 = vld [vmem:[%s8633_s0 + $0x98] sm:$0xff]  ;;  %v59_v32 = vld [vmem:[%s8633_s0 + $0xa0] sm:$0xff] }
  0x33   :  { %1365 = vmatpush.bf16.msrb.mxu3 %v4134_v30  ;;  %v57_v30 = vld [vmem:[%s8633_s0 + $0x90] sm:$0xff]  ;;  %v46_v31 = vld [vmem:[%s8633_s0 + $0x38] sm:$0xff]  ;;  %v4213_v35 = vld [vmem:[%s8635_s2 + $0x460] sm:$0xf]  ;;  %v6372_v43 = vpack.c.bf16 %v58_v26, %v45_v25 }
  0x34   :  { %1324 = vmatpush.bf16.msrb.mxu0 %v3934_v36  ;;  %v5411_v36 = vld [vmem:[%s8635_s2 + $0x464] sm:$0xf0]  ;;  %v4341_v41 = vld [vmem:[%s8635_s2 + $0x560] sm:$0xf]  ;;  %v6374_v44 = vpack.c.bf16 %v57_v30, %v44_v27  ;;  %v6382_v47 = vpack.c.bf16 %v59_v32, %v46_v31  ;;  %v5409_v52 = vld [vmem:[%s8635_s2 + $0x454] sm:$0xf0] }
  0x35   :  { %1338 = vmatpush.bf16.msrb.mxu1 %v3998_v37  ;;  %v4277_v37 = vld [vmem:[%s8635_s2 + $0x4e0] sm:$0xf]  ;;  %v5427_v40 = vld [vmem:[%s8635_s2 + $0x4e4] sm:$0xf0]  ;;  %v4269_v53 = vld [vmem:[%s8635_s2 + $0x4d0] sm:$0xf] }
  0x36   :  { %1352 = vmatpush.bf16.msrb.mxu2 %v4062_v38  ;;  %v4414_v38 = vor.u32 %v5461_v20, %v4413_v18  ;;  %v4405_v45 = vld [vmem:[%s8635_s2 + $0x5e0] sm:$0xf]  ;;  %v5459_v46 = vld [vmem:[%s8635_s2 + $0x5e4] sm:$0xf0]  ;;  %v4278_v49 = vor.u32 %v5427_v40, %v4277_v37  ;;  %v4333_v56 = vld [vmem:[%s8635_s2 + $0x550] sm:$0xf] }
  0x37   :  { %1366 = vmatpush.bf16.msrb.mxu3 %v4126_v42  ;;  %v5443_v42 = vld [vmem:[%s8635_s2 + $0x564] sm:$0xf0]  ;;  %v4406_v54 = vor.u32 %v5459_v46, %v4405_v45  ;;  %v5441_v57 = vld [vmem:[%s8635_s2 + $0x554] sm:$0xf0]  ;;  %v4397_v59 = vld [vmem:[%s8635_s2 + $0x5d0] sm:$0xf] }
  0x38   :  { %1325 = vmatpush.bf16.msrb.mxu0 %v3926_v48  ;;  %v4214_v48 = vor.u32 %v5411_v36, %v4213_v35  ;;  %v5457_v60 = vld [vmem:[%s8635_s2 + $0x5d4] sm:$0xf0]  ;;  %v4197_v0 = vld [vmem:[%s8635_s2 + $0x440] sm:$0xf]  ;;  %v5407_v2 = vld [vmem:[%s8635_s2 + $0x444] sm:$0xf0] }
  0x39   :  { %1339 = vmatpush.bf16.msrb.mxu1 %v3990_v50  ;;  %v4342_v50 = vor.u32 %v5443_v42, %v4341_v41  ;;  %v4261_v3 = vld [vmem:[%s8635_s2 + $0x4c0] sm:$0xf]  ;;  %v4398_v4 = vor.u32 %v5457_v60, %v4397_v59  ;;  %v5439_v7 = vld [vmem:[%s8635_s2 + $0x544] sm:$0xf0]  ;;  %v4189_v14 = vld [vmem:[%s8635_s2 + $0x430] sm:$0xf] }
  0x3a   :  { %1353 = vmatpush.bf16.msrb.mxu2 %v4054_v51  ;;  %v4205_v51 = vld [vmem:[%s8635_s2 + $0x450] sm:$0xf]  ;;  %v4389_v8 = vld [vmem:[%s8635_s2 + $0x5c0] sm:$0xf]  ;;  %v5455_v9 = vld [vmem:[%s8635_s2 + $0x5c4] sm:$0xf0] }
  0x3b   :  { %1367 = vmatpush.bf16.msrb.mxu3 %v4118_v55  ;;  %v5425_v55 = vld [vmem:[%s8635_s2 + $0x4d4] sm:$0xf0]  ;;  %v4206_v61 = vor.u32 %v5409_v52, %v4205_v51  ;;  %v4253_v16 = vld [vmem:[%s8635_s2 + $0x4b0] sm:$0xf]  ;;  %v4390_v18 = vor.u32 %v5455_v9, %v4389_v8  ;;  %v4181_v27 = vld [vmem:[%s8635_s2 + $0x420] sm:$0xf] }
  0x3c   :  { %1326 = vmatpush.bf16.msrb.mxu0 %v3918_v63  ;;  %v4270_v62 = vor.u32 %v5425_v55, %v4269_v53  ;;  %v4334_v63 = vor.u32 %v5441_v57, %v4333_v56  ;;  %v5405_v15 = vld [vmem:[%s8635_s2 + $0x434] sm:$0xf0]  ;;  %v4317_v20 = vld [vmem:[%s8635_s2 + $0x530] sm:$0xf]  ;;  %v5419_v31 = vld [vmem:[%s8635_s2 + $0x4a4] sm:$0xf0] }
  0x3d   :  { %1340 = vmatpush.bf16.msrb.mxu1 %v3982_v5  ;;  %v5423_v5 = vld [vmem:[%s8635_s2 + $0x4c4] sm:$0xf0]  ;;  %v5437_v21 = vld [vmem:[%s8635_s2 + $0x534] sm:$0xf0]  ;;  %v4381_v22 = vld [vmem:[%s8635_s2 + $0x5b0] sm:$0xf] }
  0x3e   :  { %1354 = vmatpush.bf16.msrb.mxu2 %v4046_v6  ;;  %v4325_v6 = vld [vmem:[%s8635_s2 + $0x540] sm:$0xf]  ;;  %v4262_v12 = vor.u32 %v5423_v5, %v4261_v3  ;;  %v4318_v26 = vor.u32 %v5437_v21, %v4317_v20  ;;  %v5451_v35 = vld [vmem:[%s8635_s2 + $0x5a4] sm:$0xf0]  ;;  %v4173_v37 = vld [vmem:[%s8635_s2 + $0x410] sm:$0xf] }
  0x3f   :  { %1368 = vmatpush.bf16.msrb.mxu3 %v4110_v11  ;;  %v4198_v11 = vor.u32 %v5407_v2, %v4197_v0  ;;  %v4326_v13 = vor.u32 %v5439_v7, %v4325_v6  ;;  %v4309_v32 = vld [vmem:[%s8635_s2 + $0x520] sm:$0xf]  ;;  %v5401_v41 = vld [vmem:[%s8635_s2 + $0x414] sm:$0xf0]  ;;  %v4237_v42 = vld [vmem:[%s8635_s2 + $0x490] sm:$0xf] }
  0x40   :  { %1327 = vmatpush.bf16.msrb.mxu0 %v3910_v19  ;;  %v5421_v19 = vld [vmem:[%s8635_s2 + $0x4b4] sm:$0xf0]  ;;  %v4165_v52 = vld [vmem:[%s8635_s2 + $0x400] sm:$0xf]  ;;  %v5399_v53 = vld [vmem:[%s8635_s2 + $0x404] sm:$0xf0] }
  0x41   :  { %1341 = vmatpush.bf16.msrb.mxu1 %v3974_v23  ;;  %v5453_v23 = vld [vmem:[%s8635_s2 + $0x5b4] sm:$0xf0]  ;;  %v4254_v25 = vor.u32 %v5421_v19, %v4253_v16  ;;  %v4229_v55 = vld [vmem:[%s8635_s2 + $0x480] sm:$0xf]  ;;  %v5415_v56 = vld [vmem:[%s8635_s2 + $0x484] sm:$0xf0]  ;;  %v4166_v9 = vor.u32 %v5399_v53, %v4165_v52 }
  0x42   :  { %1355 = vmatpush.bf16.msrb.mxu2 %v4038_v24  ;;  %v4190_v24 = vor.u32 %v5405_v15, %v4189_v14  ;;  %v4382_v30 = vor.u32 %v5453_v23, %v4381_v22  ;;  %v5417_v45 = vld [vmem:[%s8635_s2 + $0x494] sm:$0xf0]  ;;  %v4293_v57 = vld [vmem:[%s8635_s2 + $0x500] sm:$0xf]  ;;  %v5431_v59 = vld [vmem:[%s8635_s2 + $0x504] sm:$0xf0]  ;;  %v4230_v14 = vor.u32 %v5415_v56, %v4229_v55 }
  0x43   :  { %1369 = vmatpush.bf16.msrb.mxu3 %v4102_v28  ;;  %1328 = vmatmul.bf16.vlgmr.msrb.gmra.mxu0 %v6361_v39  ;;  %v5403_v28 = vld [vmem:[%s8635_s2 + $0x424] sm:$0xf0]  ;;  %v5449_v51 = vld [vmem:[%s8635_s2 + $0x594] sm:$0xf0]  ;;  %v4238_v60 = vor.u32 %v5417_v45, %v4237_v42  ;;  %v5284_v0 = vld [vmem:[%s8635_s2 + $0x74] sm:$0xf]  ;;  %v4294_v15 = vor.u32 %v5431_v59, %v4293_v57 }
  0x44   :  { %1376 = vmatpush.bf16.msra.mxu0 %v4222_v29  ;;  %1342 = vmatmul.bf16.vlgmr.msrb.gmra.mxu1 %v6374_v44  ;;  %v4245_v29 = vld [vmem:[%s8635_s2 + $0x4a0] sm:$0xf]  ;;  %v4182_v36 = vor.u32 %v5403_v28, %v4181_v27  ;;  %v3711_v3 = vld [vmem:[%s8635_s2 + $0x78] sm:$0xf0]  ;;  %v5316_v6 = vld [vmem:[%s8635_s2 + $0x174] sm:$0xf] }
  0x45   :  { %1390 = vmatpush.bf16.msra.mxu1 %v4286_v33  ;;  %1356 = vmatmul.bf16.vlgmr.msrb.gmra.mxu2 %v6372_v43  ;;  %v5435_v33 = vld [vmem:[%s8635_s2 + $0x524] sm:$0xf0]  ;;  %v3775_v5 = vld [vmem:[%s8635_s2 + $0xf8] sm:$0xf0]  ;;  %v4429_v8 = vld [vmem:[%s8635_s2 + $0x610] sm:$0xf]  ;;  %v3714_v21 = vor.u32 %v5284_v0, %v3711_v3 }
  0x46   :  { %1404 = vmatpush.bf16.msra.mxu2 %v4350_v34  ;;  %1370 = vmatmul.bf16.vlgmr.msrb.gmra.mxu3 %v6382_v47  ;;  %v4373_v34 = vld [vmem:[%s8635_s2 + $0x5a0] sm:$0xf]  ;;  %v4310_v40 = vor.u32 %v5435_v33, %v4309_v32  ;;  %v3839_v7 = vld [vmem:[%s8635_s2 + $0x178] sm:$0xf0]  ;;  %v49_v16 = vld [vmem:[%s8633_s0 + $0x50] sm:$0xff] }
  0x47   :  { %1418 = vmatpush.bf16.msra.mxu3 %v4414_v38  ;;  %v4246_v38 = vor.u32 %v5419_v31, %v4245_v29  ;;  %v4374_v46 = vor.u32 %v5451_v35, %v4373_v34  ;;  %v48_v19 = vld [vmem:[%s8633_s0 + $0x48] sm:$0xff]  ;;  %v61_v22 = vld [vmem:[%s8633_s0 + $0xb0] sm:$0xff]  ;;  %v50_v23 = vld [vmem:[%s8633_s0 + $0x58] sm:$0xff] }
  0x48   :  { %1377 = vmatpush.bf16.msra.mxu0 %v4214_v48  ;;  %v4301_v48 = vld [vmem:[%s8635_s2 + $0x510] sm:$0xf]  ;;  %v5282_v27 = vld [vmem:[%s8635_s2 + $0x64] sm:$0xf]  ;;  %v3703_v28 = vld [vmem:[%s8635_s2 + $0x68] sm:$0xf0] }
  0x49   :  { %1391 = vmatpush.bf16.msra.mxu1 %v4278_v49  ;;  %v5433_v49 = vld [vmem:[%s8635_s2 + $0x514] sm:$0xf0]  ;;  %v5298_v29 = vld [vmem:[%s8635_s2 + $0xe4] sm:$0xf]  ;;  %v3767_v32 = vld [vmem:[%s8635_s2 + $0xe8] sm:$0xf0] }
  0x4a   :  { %1405 = vmatpush.bf16.msra.mxu2 %v4342_v50  ;;  %v4365_v50 = vld [vmem:[%s8635_s2 + $0x590] sm:$0xf]  ;;  %v5314_v33 = vld [vmem:[%s8635_s2 + $0x164] sm:$0xf]  ;;  %v3831_v34 = vld [vmem:[%s8635_s2 + $0x168] sm:$0xf0] }
  0x4b   :  { %1419 = vmatpush.bf16.msra.mxu3 %v4406_v54  ;;  %v4174_v54 = vor.u32 %v5401_v41, %v4173_v37  ;;  %v4366_v2 = vor.u32 %v5449_v51, %v4365_v50  ;;  %v4421_v37 = vld [vmem:[%s8635_s2 + $0x600] sm:$0xf]  ;;  %v3706_v41 = vor.u32 %v5282_v27, %v3703_v28  ;;  %v5332_v42 = vld [vmem:[%s8635_s2 + $0x1f4] sm:$0xf]  ;;  %v3903_v45 = vld [vmem:[%s8635_s2 + $0x1f8] sm:$0xf0] }
  0x4c   :  { %1378 = vmatpush.bf16.msra.mxu0 %v4206_v61  ;;  %v4302_v61 = vor.u32 %v5433_v49, %v4301_v48  ;;  %v3834_v48 = vor.u32 %v5314_v33, %v3831_v34  ;;  %v5280_v49 = vld [vmem:[%s8635_s2 + $0x54] sm:$0xf]  ;;  %v3695_v50 = vld [vmem:[%s8635_s2 + $0x58] sm:$0xf0]  ;;  %v3906_v56 = vor.u32 %v5332_v42, %v3903_v45  ;;  %v5330_v59 = vld [vmem:[%s8635_s2 + $0x1e4] sm:$0xf] }
  0x4d   :  { %1392 = vmatpush.bf16.msra.mxu1 %v4270_v62  ;;  %v4357_v62 = vld [vmem:[%s8635_s2 + $0x580] sm:$0xf]  ;;  %v5296_v51 = vld [vmem:[%s8635_s2 + $0xd4] sm:$0xf]  ;;  %v3759_v53 = vld [vmem:[%s8635_s2 + $0xd8] sm:$0xf0]  ;;  %v3698_v57 = vor.u32 %v5280_v49, %v3695_v50 }
  0x4e   :  { %1406 = vmatpush.bf16.msra.mxu2 %v4334_v63  ;;  %v5447_v63 = vld [vmem:[%s8635_s2 + $0x584] sm:$0xf0]  ;;  %v3823_v55 = vld [vmem:[%s8635_s2 + $0x158] sm:$0xf0]  ;;  %v3687_v0 = vld [vmem:[%s8635_s2 + $0x48] sm:$0xf0] }
  0x4f   :  { %1420 = vmatpush.bf16.msra.mxu3 %v4398_v4  ;;  %v5300_v4 = vld [vmem:[%s8635_s2 + $0xf4] sm:$0xf]  ;;  %v4358_v20 = vor.u32 %v5447_v63, %v4357_v62  ;;  %v5278_v63 = vld [vmem:[%s8635_s2 + $0x44] sm:$0xf]  ;;  %v3751_v3 = vld [vmem:[%s8635_s2 + $0xc8] sm:$0xf0] }
  0x50   :  { %1379 = vmatpush.bf16.msra.mxu0 %v4198_v11  ;;  %v5465_v11 = vld [vmem:[%s8635_s2 + $0x614] sm:$0xf0]  ;;  %v5274_v28 = vld [vmem:[%s8635_s2 + $0x24] sm:$0xf]  ;;  %v3799_v34 = vld [vmem:[%s8635_s2 + $0x128] sm:$0xf0] }
  0x51   :  { %1393 = vmatpush.bf16.msra.mxu1 %v4262_v12  ;;  %v47_v12 = vld [vmem:[%s8633_s0 + $0x40] sm:$0xff] }
  0x52   :  { %1407 = vmatpush.bf16.msra.mxu2 %v4326_v13  ;;  %v60_v13 = vld [vmem:[%s8633_s0 + $0xa8] sm:$0xff]  ;;  %v5306_v33 = vld [vmem:[%s8635_s2 + $0x124] sm:$0xf] }
  0x53   :  { %1421 = vmatpush.bf16.msra.mxu3 %v4390_v18  ;;  %v62_v18 = vld [vmem:[%s8633_s0 + $0xb8] sm:$0xff]  ;;  %v6600_v35 = vpack.c.bf16 %v60_v13, %v47_v12  ;;  %v5276_v13 = vld [vmem:[%s8635_s2 + $0x34] sm:$0xf] }
  0x54   :  { %1380 = vmatpush.bf16.msra.mxu0 %v4190_v24  ;;  %v63_v24 = vld [vmem:[%s8633_s0 + $0xc0] sm:$0xff]  ;;  %v6589_v31 = vpack.c.bf16 %v62_v18, %v49_v16  ;;  %v3743_v16 = vld [vmem:[%s8635_s2 + $0xb8] sm:$0xf0]  ;;  %v5308_v18 = vld [vmem:[%s8635_s2 + $0x134] sm:$0xf] }
  0x55   :  { %1394 = vmatpush.bf16.msra.mxu1 %v4254_v25  ;;  %v3778_v25 = vor.u32 %v5300_v4, %v3775_v5  ;;  %v5310_v4 = vld [vmem:[%s8635_s2 + $0x144] sm:$0xf]  ;;  %v3815_v5 = vld [vmem:[%s8635_s2 + $0x148] sm:$0xf0] }
  0x56   :  { %1408 = vmatpush.bf16.msra.mxu2 %v4318_v26  ;;  %v3842_v26 = vor.u32 %v5316_v6, %v3839_v7  ;;  %v3690_v7 = vor.u32 %v5278_v63, %v3687_v0  ;;  %v3818_v12 = vor.u32 %v5310_v4, %v3815_v5 }
  0x57   :  { %1422 = vmatpush.bf16.msra.mxu3 %v4382_v30  ;;  %v4430_v30 = vor.u32 %v5465_v11, %v4429_v8  ;;  %v5328_v8 = vld [vmem:[%s8635_s2 + $0x1d4] sm:$0xf] }
  0x58   :  { %1381 = vmatpush.bf16.msra.mxu0 %v4182_v36  ;;  %v6602_v36 = vpack.c.bf16 %v61_v22, %v48_v19  ;;  %v3807_v19 = vld [vmem:[%s8635_s2 + $0x138] sm:$0xf0] }
  0x59   :  { %1395 = vmatpush.bf16.msra.mxu1 %v4246_v38  ;;  %v5463_v38 = vld [vmem:[%s8635_s2 + $0x604] sm:$0xf0]  ;;  %v3810_v27 = vor.u32 %v5308_v18, %v3807_v19 }
  0x5a   :  { %1409 = vmatpush.bf16.msra.mxu2 %v4310_v40  ;;  %v6610_v40 = vpack.c.bf16 %v63_v24, %v50_v23  ;;  %v4422_v52 = vor.u32 %v5463_v38, %v4421_v37  ;;  %v64_v23 = vld [vmem:[%s8633_s0 + $0xc8] sm:$0xff]  ;;  %v5326_v24 = vld [vmem:[%s8635_s2 + $0x1c4] sm:$0xf] }
  0x5b   :  { %1423 = vmatpush.bf16.msra.mxu3 %v4374_v46  ;;  %v3770_v46 = vor.u32 %v5298_v29, %v3767_v32  ;;  %v3671_v29 = vld [vmem:[%s8635_s2 + $0x28] sm:$0xf0] }
  0x5c   :  { %1382 = vmatpush.bf16.msra.mxu0 %v4174_v54  ;;  %v5312_v54 = vld [vmem:[%s8635_s2 + $0x154] sm:$0xf]  ;;  %v3735_v32 = vld [vmem:[%s8635_s2 + $0xa8] sm:$0xf0] }
  0x5d   :  { %1396 = vmatpush.bf16.msra.mxu1 %v4238_v60  ;;  %v3895_v60 = vld [vmem:[%s8635_s2 + $0x1e8] sm:$0xf0]  ;;  %v3826_v62 = vor.u32 %v5312_v54, %v3823_v55 }
  0x5e   :  { %1410 = vmatpush.bf16.msra.mxu2 %v4302_v61  ;;  %v3762_v61 = vor.u32 %v5296_v51, %v3759_v53  ;;  %v3898_v6 = vor.u32 %v5330_v59, %v3895_v60 }
  0x5f   :  { %1424 = vmatpush.bf16.msra.mxu3 %v4366_v2  ;;  %v5294_v2 = vld [vmem:[%s8635_s2 + $0xc4] sm:$0xf] }
  0x60   :  { %1383 = vmatpush.bf16.msra.mxu0 %v4166_v9  ;;  %v3887_v9 = vld [vmem:[%s8635_s2 + $0x1d8] sm:$0xf0]  ;;  %v3754_v11 = vor.u32 %v5294_v2, %v3751_v3 }
  0x61   :  { %1397 = vmatpush.bf16.msra.mxu1 %v4230_v14  ;;  %v3679_v14 = vld [vmem:[%s8635_s2 + $0x38] sm:$0xf0] }
  0x62   :  { %1411 = vmatpush.bf16.msra.mxu2 %v4294_v15  ;;  %v5292_v15 = vld [vmem:[%s8635_s2 + $0xb4] sm:$0xf]  ;;  %v3682_v22 = vor.u32 %v5276_v13, %v3679_v14 }
  0x63   :  { %1425 = vmatpush.bf16.msra.mxu3 %v4358_v20  ;;  %1384 = vmatmul.bf16.vlgmr.msra.gmra.mxu0 %v6600_v35  ;;  %v3890_v20 = vor.u32 %v5328_v8, %v3887_v9 }
  0x64   :  { %1438 = vmatpush.bf16.msrb.mxu0 %v4430_v30  ;;  %1398 = vmatmul.bf16.vlgmr.msra.gmra.mxu1 %v6602_v36  ;;  %v5290_v30 = vld [vmem:[%s8635_s2 + $0xa4] sm:$0xf] }
  0x65   :  { %1446 = vmatpush.bf16.msrb.mxu1 %v3714_v21  ;;  %1412 = vmatmul.bf16.vlgmr.msra.gmra.mxu2 %v6589_v31  ;;  %v51_v21 = vld [vmem:[%s8633_s0 + $0x60] sm:$0xff] }
  0x66   :  { %1460 = vmatpush.bf16.msrb.mxu2 %v3778_v25  ;;  %1426 = vmatmul.bf16.vlgmr.msra.gmra.mxu3 %v6610_v40  ;;  %v3879_v25 = vld [vmem:[%s8635_s2 + $0x1c8] sm:$0xf0]  ;;  %v6718_v37 = vpack.c.bf16 %v64_v23, %v51_v21 }
  0x67   :  { %1474 = vmatpush.bf16.msrb.mxu3 %v3842_v26  ;;  %v3746_v26 = vor.u32 %v5292_v15, %v3743_v16 }
  0x68   :  { %1439 = vmatpush.bf16.msrb.mxu0 %v4422_v52 }
  0x69   :  { %1447 = vmatpush.bf16.msrb.mxu1 %v3706_v41 }
  0x6a   :  { %1461 = vmatpush.bf16.msrb.mxu2 %v3770_v46 }
  0x6b   :  { %1475 = vmatpush.bf16.msrb.mxu3 %v3834_v48 }
  0x6c   :  { %1488 = vmatpush.bf16.msra.mxu0 %v3906_v56 }
  0x6d   :  { %1448 = vmatpush.bf16.msrb.mxu1 %v3698_v57 }
  0x6e   :  { %1462 = vmatpush.bf16.msrb.mxu2 %v3762_v61 }
  0x6f   :  { %1476 = vmatpush.bf16.msrb.mxu3 %v3826_v62 }
  0x70   :  { %1489 = vmatpush.bf16.msra.mxu0 %v3898_v6 }
  0x71   :  { %1449 = vmatpush.bf16.msrb.mxu1 %v3690_v7 }
  0x72   :  { %1463 = vmatpush.bf16.msrb.mxu2 %v3754_v11 }
  0x73   :  { %1477 = vmatpush.bf16.msrb.mxu3 %v3818_v12 }
  0x74   :  { %1490 = vmatpush.bf16.msra.mxu0 %v3890_v20 }
  0x75   :  { %17 = vsyncpa [#allocation3], 0  ;;  %1450 = vmatpush.bf16.msrb.mxu1 %v3682_v22  ;;  %vm1260_vm0 = vcmask 261120   ;;  %v3882_v38 = vor.u32 %v5326_v24, %v3879_v25  ;;  %v3674_v41 = vor.u32 %v5274_v28, %v3671_v29  ;;  %v5324_v42 = vld [vmem:[%s8635_s2 + $0x1b4] sm:$0xf]  ;;  %v3738_v46 = vor.u32 %v5290_v30, %v3735_v32  ;;  %s5818_s24 = smov 126  }
  0x76   :  { %v3871_v45 = vld [vmem:[%s8635_s2 + $0x1b8] sm:$0xf0]  ;;  %1464 = vmatpush.bf16.msrb.mxu2 %v3746_v26  ;;  %v3802_v48 = vor.u32 %v5306_v33, %v3799_v34  ;;  %v5272_v49 = vld [vmem:[%s8635_s2 + $0x14] sm:$0xf]  ;;  %4435 = vmatmul.msk.bf16.vlgmr.msrb.gmra.mxu0 %vm1260_vm0, %v6718_v37  ;;  %v5322_v57 = vld [vmem:[%s8635_s2 + $0x1a4] sm:$0xf] }
  0x77   :  { %1478 = vmatpush.bf16.msrb.mxu3 %v3810_v27  ;;  %v3663_v50 = vld [vmem:[%s8635_s2 + $0x18] sm:$0xf0]  ;;  %v5288_v51 = vld [vmem:[%s8635_s2 + $0x94] sm:$0xf]  ;;  %v3874_v55 = vor.u32 %v5324_v42, %v3871_v45  ;;  %v3863_v59 = vld [vmem:[%s8635_s2 + $0x1a8] sm:$0xf0] }
  0x78   :  { %v3727_v52 = vld [vmem:[%s8635_s2 + $0x98] sm:$0xf0]  ;;  %v5304_v53 = vld [vmem:[%s8635_s2 + $0x114] sm:$0xf]  ;;  %1491 = vmatpush.bf16.msra.mxu0 %v3882_v38  ;;  %v3666_v56 = vor.u32 %v5272_v49, %v3663_v50  ;;  %v5270_v60 = vld [vmem:[%s8635_s2 + $0x4] sm:$0xf]  ;;  %v3866_v9 = vor.u32 %v5322_v57, %v3863_v59 }
  0x79   :  { %v3791_v54 = vld [vmem:[%s8635_s2 + $0x118] sm:$0xf0]  ;;  %1451 = vmatpush.bf16.msrb.mxu1 %v3674_v41  ;;  %v3730_v61 = vor.u32 %v5288_v51, %v3727_v52  ;;  %v3655_v63 = vld [vmem:[%s8635_s2 + $0x8] sm:$0xf0]  ;;  %v5286_v0 = vld [vmem:[%s8635_s2 + $0x84] sm:$0xf] }
  0x7a   :  { %1465 = vmatpush.bf16.msrb.mxu2 %v3738_v46  ;;  %v3794_v62 = vor.u32 %v5304_v53, %v3791_v54  ;;  %v3719_v2 = vld [vmem:[%s8635_s2 + $0x88] sm:$0xf0]  ;;  %v5302_v3 = vld [vmem:[%s8635_s2 + $0x104] sm:$0xf]  ;;  %v5348_v5 = vld [vmem:[%s8635_s2 + $0x274] sm:$0xf]  ;;  %v3658_v11 = vor.u32 %v5270_v60, %v3655_v63 }
  0x7b   :  { %1479 = vmatpush.bf16.msrb.mxu3 %v3802_v48  ;;  %v3783_v4 = vld [vmem:[%s8635_s2 + $0x108] sm:$0xf0]  ;;  %v3967_v6 = vld [vmem:[%s8635_s2 + $0x278] sm:$0xf0]  ;;  %v5364_v7 = vld [vmem:[%s8635_s2 + $0x2f4] sm:$0xf]  ;;  %v3722_v14 = vor.u32 %v5286_v0, %v3719_v2 }
  0x7c   :  { %v4031_v8 = vld [vmem:[%s8635_s2 + $0x2f8] sm:$0xf0]  ;;  %1492 = vmatpush.bf16.msra.mxu0 %v3874_v55  ;;  %v5380_v12 = vld [vmem:[%s8635_s2 + $0x374] sm:$0xf]  ;;  %v3786_v15 = vor.u32 %v5302_v3, %v3783_v4  ;;  %v3970_v19 = vor.u32 %v5348_v5, %v3967_v6  ;;  %v5346_v21 = vld [vmem:[%s8635_s2 + $0x264] sm:$0xf] }
  0x7d   :  { %1452 = vmatpush.bf16.msrb.mxu1 %v3666_v56  ;;  %v4095_v13 = vld [vmem:[%s8635_s2 + $0x378] sm:$0xf0]  ;;  %v5320_v16 = vld [vmem:[%s8635_s2 + $0x194] sm:$0xf]  ;;  %v4034_v20 = vor.u32 %v5364_v7, %v4031_v8  ;;  %v3959_v23 = vld [vmem:[%s8635_s2 + $0x268] sm:$0xf0] }
  0x7e   :  { %1466 = vmatpush.bf16.msrb.mxu2 %v3730_v61  ;;  %v3855_v18 = vld [vmem:[%s8635_s2 + $0x198] sm:$0xf0]  ;;  %v4098_v22 = vor.u32 %v5380_v12, %v4095_v13  ;;  %v5362_v24 = vld [vmem:[%s8635_s2 + $0x2e4] sm:$0xf]  ;;  %v4023_v25 = vld [vmem:[%s8635_s2 + $0x2e8] sm:$0xf0]  ;;  %v3962_v32 = vor.u32 %v5346_v21, %v3959_v23 }
  0x7f   :  { %1480 = vmatpush.bf16.msrb.mxu3 %v3794_v62  ;;  %v3858_v26 = vor.u32 %v5320_v16, %v3855_v18  ;;  %v5378_v27 = vld [vmem:[%s8635_s2 + $0x364] sm:$0xf]  ;;  %v4087_v28 = vld [vmem:[%s8635_s2 + $0x368] sm:$0xf0]  ;;  %v4026_v33 = vor.u32 %v5362_v24, %v4023_v25  ;;  %v5396_v34 = vld [vmem:[%s8635_s2 + $0x3f4] sm:$0xf] }
  0x80   :  { %1493 = vmatpush.bf16.msra.mxu0 %v3866_v9  ;;  %v5318_v29 = vld [vmem:[%s8635_s2 + $0x184] sm:$0xf]  ;;  %v3847_v30 = vld [vmem:[%s8635_s2 + $0x188] sm:$0xf0]  ;;  %v4159_v38 = vld [vmem:[%s8635_s2 + $0x3f8] sm:$0xf0]  ;;  %v4090_v42 = vor.u32 %v5378_v27, %v4087_v28 }
  0x81   :  { %1453 = vmatpush.bf16.msrb.mxu1 %v3658_v11  ;;  %v5344_v41 = vld [vmem:[%s8635_s2 + $0x254] sm:$0xf]  ;;  %v3951_v45 = vld [vmem:[%s8635_s2 + $0x258] sm:$0xf0]  ;;  %v3850_v49 = vor.u32 %v5318_v29, %v3847_v30  ;;  %v4162_v52 = vor.u32 %v5396_v34, %v4159_v38  ;;  %v4151_v55 = vld [vmem:[%s8635_s2 + $0x3e8] sm:$0xf0] }
  0x82   :  { %1467 = vmatpush.bf16.msrb.mxu2 %v3722_v14  ;;  %v5360_v46 = vld [vmem:[%s8635_s2 + $0x2d4] sm:$0xf]  ;;  %v4015_v48 = vld [vmem:[%s8635_s2 + $0x2d8] sm:$0xf0]  ;;  %v3954_v53 = vor.u32 %v5344_v41, %v3951_v45  ;;  %v5342_v56 = vld [vmem:[%s8635_s2 + $0x244] sm:$0xf] }
  0x83   :  { %1481 = vmatpush.bf16.msrb.mxu3 %v3786_v15  ;;  %v5376_v50 = vld [vmem:[%s8635_s2 + $0x354] sm:$0xf]  ;;  %v4079_v51 = vld [vmem:[%s8635_s2 + $0x358] sm:$0xf0]  ;;  %v4018_v54 = vor.u32 %v5360_v46, %v4015_v48  ;;  %v5358_v57 = vld [vmem:[%s8635_s2 + $0x2c4] sm:$0xf] }
  0x84   :  { %1454 = vmatmul.bf16.vlgmr.msrb.gmra.mxu1 %v6139_v58  ;;  %1494 = vmatpush.bf16.msra.mxu0 %v3858_v26  ;;  %v5394_v58 = vld [vmem:[%s8635_s2 + $0x3e4] sm:$0xf]  ;;  %v4007_v59 = vld [vmem:[%s8635_s2 + $0x2c8] sm:$0xf0]  ;;  %v5392_v2 = vld [vmem:[%s8635_s2 + $0x3d4] sm:$0xf] }
  0x85   :  { %1502 = vmatpush.bf16.msra.mxu1 %v3970_v19  ;;  %1468 = vmatmul.bf16.vlgmr.msrb.gmra.mxu2 %v6175_v10  ;;  %v4082_v10 = vor.u32 %v5376_v50, %v4079_v51  ;;  %v5374_v60 = vld [vmem:[%s8635_s2 + $0x344] sm:$0xf]  ;;  %v4071_v61 = vld [vmem:[%s8635_s2 + $0x348] sm:$0xf0]  ;;  %v4154_v62 = vor.u32 %v5394_v58, %v4151_v55  ;;  %v4010_v0 = vor.u32 %v5358_v57, %v4007_v59  ;;  %v4143_v3 = vld [vmem:[%s8635_s2 + $0x3d8] sm:$0xf0] }
  0x86   :  { %1516 = vmatpush.bf16.msra.mxu2 %v4034_v20  ;;  %1482 = vmatmul.bf16.vlgmr.msrb.gmra.mxu3 %v6153_v1  ;;  %v3943_v1 = vld [vmem:[%s8635_s2 + $0x248] sm:$0xf0]  ;;  %v5340_v4 = vld [vmem:[%s8635_s2 + $0x234] sm:$0xf]  ;;  %v4074_v5 = vor.u32 %v5374_v60, %v4071_v61  ;;  %v3935_v6 = vld [vmem:[%s8635_s2 + $0x238] sm:$0xf0]  ;;  %v4146_v12 = vor.u32 %v5392_v2, %v4143_v3 }
  0x87   :  { %1530 = vmatpush.bf16.msra.mxu3 %v4098_v22  ;;  %v3946_v63 = vor.u32 %v5342_v56, %v3943_v1  ;;  %v5356_v7 = vld [vmem:[%s8635_s2 + $0x2b4] sm:$0xf]  ;;  %v3999_v8 = vld [vmem:[%s8635_s2 + $0x2b8] sm:$0xf0]  ;;  %v3938_v13 = vor.u32 %v5340_v4, %v3935_v6  ;;  %v5390_v15 = vld [vmem:[%s8635_s2 + $0x3c4] sm:$0xf] }
  0x88   :  { %1495 = vmatpush.bf16.msra.mxu0 %v3850_v49  ;;  %v5372_v9 = vld [vmem:[%s8635_s2 + $0x334] sm:$0xf]  ;;  %v4063_v11 = vld [vmem:[%s8635_s2 + $0x338] sm:$0xf0]  ;;  %v4002_v14 = vor.u32 %v5356_v7, %v3999_v8  ;;  %v5338_v16 = vld [vmem:[%s8635_s2 + $0x224] sm:$0xf] }
  0x89   :  { %1503 = vmatpush.bf16.msra.mxu1 %v3962_v32  ;;  %v4066_v18 = vor.u32 %v5372_v9, %v4063_v11  ;;  %v3927_v19 = vld [vmem:[%s8635_s2 + $0x228] sm:$0xf0]  ;;  %v5354_v20 = vld [vmem:[%s8635_s2 + $0x2a4] sm:$0xf]  ;;  %v5388_v27 = vld [vmem:[%s8635_s2 + $0x3b4] sm:$0xf] }
  0x8a   :  { %1517 = vmatpush.bf16.msra.mxu2 %v4026_v33  ;;  %v3991_v21 = vld [vmem:[%s8635_s2 + $0x2a8] sm:$0xf0]  ;;  %v5370_v22 = vld [vmem:[%s8635_s2 + $0x324] sm:$0xf]  ;;  %v3930_v25 = vor.u32 %v5338_v16, %v3927_v19  ;;  %v4127_v28 = vld [vmem:[%s8635_s2 + $0x3b8] sm:$0xf0] }
  0x8b   :  { %1531 = vmatpush.bf16.msra.mxu3 %v4090_v42  ;;  %1496 = vmatmul.bf16.vlgmr.msra.gmra.mxu0 %v6189_v17  ;;  %v4135_v17 = vld [vmem:[%s8635_s2 + $0x3c8] sm:$0xf0]  ;;  %v3994_v26 = vor.u32 %v5354_v20, %v3991_v21  ;;  %v5336_v29 = vld [vmem:[%s8635_s2 + $0x214] sm:$0xf]  ;;  %v3919_v32 = vld [vmem:[%s8635_s2 + $0x218] sm:$0xf0]  ;;  %v4130_v42 = vor.u32 %v5388_v27, %v4127_v28 }
  0x8c   :  { %1544 = vmatpush.bf16.msrb.mxu0 %v4162_v52  ;;  %v4055_v23 = vld [vmem:[%s8635_s2 + $0x328] sm:$0xf0]  ;;  %v4138_v24 = vor.u32 %v5390_v15, %v4135_v17  ;;  %v5352_v33 = vld [vmem:[%s8635_s2 + $0x294] sm:$0xf]  ;;  %v3983_v34 = vld [vmem:[%s8635_s2 + $0x298] sm:$0xf0]  ;;  %v3922_v48 = vor.u32 %v5336_v29, %v3919_v32 }
  0x8d   :  { %1504 = vmatpush.bf16.msra.mxu1 %v3954_v53  ;;  %v4058_v30 = vor.u32 %v5370_v22, %v4055_v23  ;;  %v5368_v38 = vld [vmem:[%s8635_s2 + $0x314] sm:$0xf]  ;;  %v4047_v41 = vld [vmem:[%s8635_s2 + $0x318] sm:$0xf0]  ;;  %v5386_v45 = vld [vmem:[%s8635_s2 + $0x3a4] sm:$0xf]  ;;  %v3986_v49 = vor.u32 %v5352_v33, %v3983_v34 }
  0x8e   :  { %1518 = vmatpush.bf16.msra.mxu2 %v4018_v54  ;;  %v4119_v46 = vld [vmem:[%s8635_s2 + $0x3a8] sm:$0xf0]  ;;  %v5334_v50 = vld [vmem:[%s8635_s2 + $0x204] sm:$0xf]  ;;  %v4050_v53 = vor.u32 %v5368_v38, %v4047_v41  ;;  %v5412_v56 = vld [vmem:[%s8635_s2 + $0x474] sm:$0xf] }
  0x8f   :  { %1532 = vmatpush.bf16.msra.mxu3 %v4082_v10  ;;  %v3911_v51 = vld [vmem:[%s8635_s2 + $0x208] sm:$0xf0]  ;;  %v5350_v52 = vld [vmem:[%s8635_s2 + $0x284] sm:$0xf]  ;;  %v4223_v10 = vld [vmem:[%s8635_s2 + $0x478] sm:$0xf0]  ;;  %v4122_v57 = vor.u32 %v5386_v45, %v4119_v46 }
  0x90   :  { %1545 = vmatpush.bf16.msrb.mxu0 %v4154_v62  ;;  %v3975_v54 = vld [vmem:[%s8635_s2 + $0x288] sm:$0xf0]  ;;  %v5366_v58 = vld [vmem:[%s8635_s2 + $0x304] sm:$0xf]  ;;  %v5428_v1 = vld [vmem:[%s8635_s2 + $0x4f4] sm:$0xf]  ;;  %v3914_v62 = vor.u32 %v5334_v50, %v3911_v51  ;;  %v4226_v4 = vor.u32 %v5412_v56, %v4223_v10 }
  0x91   :  { %1505 = vmatpush.bf16.msra.mxu1 %v3946_v63  ;;  %v4039_v55 = vld [vmem:[%s8635_s2 + $0x308] sm:$0xf0]  ;;  %v4287_v59 = vld [vmem:[%s8635_s2 + $0x4f8] sm:$0xf0]  ;;  %v5444_v60 = vld [vmem:[%s8635_s2 + $0x574] sm:$0xf]  ;;  %v3978_v63 = vor.u32 %v5350_v52, %v3975_v54 }
  0x92   :  { %1519 = vmatpush.bf16.msra.mxu2 %v4010_v0  ;;  %v4351_v61 = vld [vmem:[%s8635_s2 + $0x578] sm:$0xf0]  ;;  %v5384_v0 = vld [vmem:[%s8635_s2 + $0x394] sm:$0xf]  ;;  %v4042_v3 = vor.u32 %v5366_v58, %v4039_v55  ;;  %v5410_v7 = vld [vmem:[%s8635_s2 + $0x464] sm:$0xf] }
  0x93   :  { %1533 = vmatpush.bf16.msra.mxu3 %v4074_v5  ;;  %v4111_v2 = vld [vmem:[%s8635_s2 + $0x398] sm:$0xf0]  ;;  %v4290_v5 = vor.u32 %v5428_v1, %v4287_v59  ;;  %v4354_v6 = vor.u32 %v5444_v60, %v4351_v61  ;;  %v4215_v8 = vld [vmem:[%s8635_s2 + $0x468] sm:$0xf0]  ;;  %v5426_v9 = vld [vmem:[%s8635_s2 + $0x4e4] sm:$0xf] }
  0x94   :  { %1546 = vmatpush.bf16.msrb.mxu0 %v4146_v12  ;;  %v4114_v11 = vor.u32 %v5384_v0, %v4111_v2  ;;  %v4279_v12 = vld [vmem:[%s8635_s2 + $0x4e8] sm:$0xf0]  ;;  %v5382_v15 = vld [vmem:[%s8635_s2 + $0x384] sm:$0xf]  ;;  %v4218_v16 = vor.u32 %v5410_v7, %v4215_v8  ;;  %v4415_v19 = vld [vmem:[%s8635_s2 + $0x5f8] sm:$0xf0] }
  0x95   :  { %1506 = vmatpush.bf16.msra.mxu1 %v3938_v13  ;;  %v5442_v13 = vld [vmem:[%s8635_s2 + $0x564] sm:$0xf]  ;;  %v4103_v17 = vld [vmem:[%s8635_s2 + $0x388] sm:$0xf0]  ;;  %v4282_v20 = vor.u32 %v5426_v9, %v4279_v12  ;;  %v5408_v22 = vld [vmem:[%s8635_s2 + $0x454] sm:$0xf] }
  0x96   :  { %1520 = vmatpush.bf16.msra.mxu2 %v4002_v14  ;;  %v4343_v14 = vld [vmem:[%s8635_s2 + $0x568] sm:$0xf0]  ;;  %v4207_v23 = vld [vmem:[%s8635_s2 + $0x458] sm:$0xf0]  ;;  %v5440_v27 = vld [vmem:[%s8635_s2 + $0x554] sm:$0xf] }
  0x97   :  { %1534 = vmatpush.bf16.msra.mxu3 %v4066_v18  ;;  %v5460_v18 = vld [vmem:[%s8635_s2 + $0x5f4] sm:$0xf]  ;;  %v4346_v21 = vor.u32 %v5442_v13, %v4343_v14  ;;  %v4335_v28 = vld [vmem:[%s8635_s2 + $0x558] sm:$0xf0]  ;;  %v4407_v32 = vld [vmem:[%s8635_s2 + $0x5e8] sm:$0xf0] }
  0x98   :  { %1547 = vmatpush.bf16.msrb.mxu0 %v4138_v24  ;;  %v5424_v24 = vld [vmem:[%s8635_s2 + $0x4d4] sm:$0xf]  ;;  %v4418_v29 = vor.u32 %v5460_v18, %v4415_v19  ;;  %v4338_v34 = vor.u32 %v5440_v27, %v4335_v28  ;;  %v5422_v38 = vld [vmem:[%s8635_s2 + $0x4c4] sm:$0xf]  ;;  %v4263_v41 = vld [vmem:[%s8635_s2 + $0x4c8] sm:$0xf0] }
  0x99   :  { %1507 = vmatpush.bf16.msra.mxu1 %v3930_v25  ;;  %v4106_v25 = vor.u32 %v5382_v15, %v4103_v17  ;;  %v4327_v45 = vld [vmem:[%s8635_s2 + $0x548] sm:$0xf0]  ;;  %v4399_v50 = vld [vmem:[%s8635_s2 + $0x5d8] sm:$0xf0]  ;;  %v4266_v51 = vor.u32 %v5422_v38, %v4263_v41  ;;  %v5420_v58 = vld [vmem:[%s8635_s2 + $0x4b4] sm:$0xf] }
  0x9a   :  { %1521 = vmatpush.bf16.msra.mxu2 %v3994_v26  ;;  %v4271_v26 = vld [vmem:[%s8635_s2 + $0x4d8] sm:$0xf0]  ;;  %v5436_v56 = vld [vmem:[%s8635_s2 + $0x534] sm:$0xf]  ;;  %v4391_v59 = vld [vmem:[%s8635_s2 + $0x5c8] sm:$0xf0] }
  0x9b   :  { %1535 = vmatpush.bf16.msra.mxu3 %v4058_v30  ;;  %v5458_v30 = vld [vmem:[%s8635_s2 + $0x5e4] sm:$0xf]  ;;  %v4274_v33 = vor.u32 %v5424_v24, %v4271_v26  ;;  %v4191_v54 = vld [vmem:[%s8635_s2 + $0x438] sm:$0xf0]  ;;  %v4247_v2 = vld [vmem:[%s8635_s2 + $0x4a8] sm:$0xf0] }
  0x9c   :  { %1548 = vmatpush.bf16.msrb.mxu0 %v4130_v42  ;;  %v5438_v42 = vld [vmem:[%s8635_s2 + $0x544] sm:$0xf]  ;;  %v4410_v46 = vor.u32 %v5458_v30, %v4407_v32  ;;  %v4255_v55 = vld [vmem:[%s8635_s2 + $0x4b8] sm:$0xf0]  ;;  %v5452_v7 = vld [vmem:[%s8635_s2 + $0x5b4] sm:$0xf] }
  0x9d   :  { %1508 = vmatpush.bf16.msra.mxu1 %v3922_v48  ;;  %v4330_v52 = vor.u32 %v5438_v42, %v4327_v45  ;;  %v4319_v10 = vld [vmem:[%s8635_s2 + $0x538] sm:$0xf0]  ;;  %v4258_v60 = vor.u32 %v5420_v58, %v4255_v55  ;;  %v5418_v0 = vld [vmem:[%s8635_s2 + $0x4a4] sm:$0xf]  ;;  %v5400_v12 = vld [vmem:[%s8635_s2 + $0x414] sm:$0xf] }
  0x9e   :  { %1522 = vmatpush.bf16.msra.mxu2 %v3986_v49  ;;  %v5456_v49 = vld [vmem:[%s8635_s2 + $0x5d4] sm:$0xf]  ;;  %v4322_v61 = vor.u32 %v5436_v56, %v4319_v10  ;;  %v4383_v8 = vld [vmem:[%s8635_s2 + $0x5b8] sm:$0xf0]  ;;  %v4250_v9 = vor.u32 %v5418_v0, %v4247_v2  ;;  %v5398_v24 = vld [vmem:[%s8635_s2 + $0x404] sm:$0xf] }
  0x9f   :  { %1536 = vmatpush.bf16.msra.mxu3 %v4050_v53  ;;  %v5404_v53 = vld [vmem:[%s8635_s2 + $0x434] sm:$0xf]  ;;  %v4402_v1 = vor.u32 %v5456_v49, %v4399_v50  ;;  %v4175_v13 = vld [vmem:[%s8635_s2 + $0x418] sm:$0xf0]  ;;  %v4386_v18 = vor.u32 %v5452_v7, %v4383_v8  ;;  %v5414_v26 = vld [vmem:[%s8635_s2 + $0x484] sm:$0xf] }
  0xa0   :  { %1549 = vmatpush.bf16.msrb.mxu0 %v4122_v57  ;;  %v4194_v57 = vor.u32 %v5404_v53, %v4191_v54  ;;  %v5416_v14 = vld [vmem:[%s8635_s2 + $0x494] sm:$0xf]  ;;  %v4239_v15 = vld [vmem:[%s8635_s2 + $0x498] sm:$0xf0]  ;;  %v4178_v19 = vor.u32 %v5400_v12, %v4175_v13  ;;  %v4231_v27 = vld [vmem:[%s8635_s2 + $0x488] sm:$0xf0]  ;;  %v1273_v53 = vpop.f32.mrf.mxu0 }
  0xa1   :  { %1509 = vmatpush.bf16.msra.mxu1 %v3914_v62  ;;  %v5402_v62 = vld [vmem:[%s8635_s2 + $0x424] sm:$0xf]  ;;  %v5432_v17 = vld [vmem:[%s8635_s2 + $0x514] sm:$0xf]  ;;  %v4431_v32 = vld [vmem:[%s8635_s2 + $0x618] sm:$0xf0]  ;;  %v1287_v56 = vpop.f32.mrf.mxu1 }
  0xa2   :  { %1523 = vmatpush.bf16.msra.mxu2 %v3978_v63  ;;  %v4183_v63 = vld [vmem:[%s8635_s2 + $0x428] sm:$0xf0]  ;;  %v5430_v28 = vld [vmem:[%s8635_s2 + $0x504] sm:$0xf]  ;;  %v5464_v30 = vld [vmem:[%s8635_s2 + $0x614] sm:$0xf] }
  0xa3   :  { %1537 = vmatpush.bf16.msra.mxu3 %v4042_v3  ;;  %v5434_v3 = vld [vmem:[%s8635_s2 + $0x524] sm:$0xf]  ;;  %v4434_v41 = vor.u32 %v5464_v30, %v4431_v32  ;;  %v4359_v50 = vld [vmem:[%s8635_s2 + $0x588] sm:$0xf0]  ;;  %v1642_v10 = vld [vmem:[%s8637_s4 + $0x50] sm:$0xff]  ;;  %vm3626_vm1 = vcmask 31744  }
  0xa4   :  { %1550 = vmatpush.bf16.msrb.mxu0 %v4114_v11  ;;  %1510 = vmatmul.bf16.vlgmr.msra.gmra.mxu1 %v6361_v39  ;;  %v4210_v39 = vor.u32 %v5408_v22, %v4207_v23  ;;  %v4242_v22 = vor.u32 %v5416_v14, %v4239_v15  ;;  %v5462_v45 = vld [vmem:[%s8635_s2 + $0x604] sm:$0xf]  ;;  %v1645_v58 = vld [vmem:[%s8637_s4 + $0x68] sm:$0xff]  ;;  %v1635_v8 = vld [vmem:[%s8637_s4 + $0x18] sm:$0xff]  ;;  %vm3617_vm2 = vcmask 257024   ;;  %s3635_s26 = sshll.u32 %s8643_s10, 4  ;;  %s3636_s26 = int_to_ptr.hbm [resolvable:$true] %s3635_s26 }
  0xa5   :  { %1558 = vmatpush.bf16.msrb.mxu1 %v4226_v4  ;;  %1524 = vmatmul.bf16.vlgmr.msra.gmra.mxu2 %v6374_v44  ;;  %v5406_v44 = vld [vmem:[%s8635_s2 + $0x444] sm:$0xf]  ;;  %v4311_v4 = vld [vmem:[%s8635_s2 + $0x528] sm:$0xf0]  ;;  %s5822_s27 = smov 832  }
  0xa6   :  { %1572 = vmatpush.bf16.msrb.mxu2 %v4290_v5  ;;  %1538 = vmatmul.bf16.vlgmr.msra.gmra.mxu3 %v6372_v43  ;;  %v4199_v43 = vld [vmem:[%s8635_s2 + $0x448] sm:$0xf0]  ;;  %v4314_v11 = vor.u32 %v5434_v3, %v4311_v4  ;;  %v5446_v49 = vld [vmem:[%s8635_s2 + $0x584] sm:$0xf] }
  0xa7   :  { %1586 = vmatpush.bf16.msrb.mxu3 %v4354_v6  ;;  %v4202_v48 = vor.u32 %v5406_v44, %v4199_v43  ;;  %v4186_v6 = vor.u32 %v5402_v62, %v4183_v63  ;;  %v4367_v44 = vld [vmem:[%s8635_s2 + $0x598] sm:$0xf0]  ;;  %v4234_v43 = vor.u32 %v5414_v26, %v4231_v27  ;;  %v4362_v54 = vor.u32 %v5446_v49, %v4359_v50  ;;  %v1644_v55 = vld [vmem:[%s8637_s4 + $0x60] sm:$0xff]  ;;  %v1638_v63 = vld [vmem:[%s8637_s4 + $0x30] sm:$0xff] }
  0xa8   :  { %1551 = vmatpush.bf16.msrb.mxu0 %v4106_v25  ;;  %v4167_v25 = vld [vmem:[%s8635_s2 + $0x408] sm:$0xf0]  ;;  %v1636_v4 = vld [vmem:[%s8637_s4 + $0x20] sm:$0xff] }
  0xa9   :  { %1559 = vmatpush.bf16.msrb.mxu1 %v4218_v16  ;;  %v4303_v16 = vld [vmem:[%s8635_s2 + $0x518] sm:$0xf0]  ;;  %v1289_v62 = vpop.f32.mrf.mxu1  ;;  %v1637_v3 = vld [vmem:[%s8637_s4 + $0x28] sm:$0xff]  ;;  %v1632_v15 = vld [vmem:[%s8637_s4] sm:$0xff] }
  0xaa   :  { %1573 = vmatpush.bf16.msrb.mxu2 %v4282_v20  ;;  %v5450_v20 = vld [vmem:[%s8635_s2 + $0x5a4] sm:$0xf]  ;;  %v4306_v23 = vor.u32 %v5432_v17, %v4303_v16  ;;  %v1633_v13 = vld [vmem:[%s8637_s4 + $0x8] sm:$0xff] }
  0xab   :  { %1587 = vmatpush.bf16.msrb.mxu3 %v4346_v21  ;;  %1552 = vmatmul.bf16.vlgmr.msrb.gmra.mxu0 %v6382_v47  ;;  %v5454_v47 = vld [vmem:[%s8635_s2 + $0x5c4] sm:$0xf]  ;;  %v4375_v21 = vld [vmem:[%s8635_s2 + $0x5a8] sm:$0xf0] }
  0xac   :  { %1600 = vmatpush.bf16.msra.mxu0 %v4418_v29  ;;  %v4394_v5 = vor.u32 %v5454_v47, %v4391_v59  ;;  %v4295_v29 = vld [vmem:[%s8635_s2 + $0x508] sm:$0xf0]  ;;  %v1275_v47 = vpop.f32.mrf.mxu0  ;;  %v1315_v59 = vpop.f32.mrf.mxu3 }
  0xad   :  { %1560 = vmatpush.bf16.msrb.mxu1 %v4210_v39  ;;  %v4378_v39 = vor.u32 %v5450_v20, %v4375_v21  ;;  %v4298_v38 = vor.u32 %v5430_v28, %v4295_v29 }
  0xae   :  { %1574 = vmatpush.bf16.msrb.mxu2 %v4274_v33  ;;  %v4170_v33 = vor.u32 %v5398_v24, %v4167_v25 }
  0xaf   :  { %1588 = vmatpush.bf16.msrb.mxu3 %v4338_v34  ;;  %v5448_v34 = vld [vmem:[%s8635_s2 + $0x594] sm:$0xf] }
  0xb0   :  { %1601 = vmatpush.bf16.msra.mxu0 %v4410_v46  ;;  %v4370_v42 = vor.u32 %v5448_v34, %v4367_v44  ;;  %v4423_v46 = vld [vmem:[%s8635_s2 + $0x608] sm:$0xf0] }
  0xb1   :  { %1561 = vmatpush.bf16.msrb.mxu1 %v4202_v48  ;;  %v1647_v48 = vld [vmem:[%s8637_s4 + $0x78] sm:$0xff] }
  0xb2   :  { %1575 = vmatpush.bf16.msrb.mxu2 %v4266_v51  ;;  %v4426_v51 = vor.u32 %v5462_v45, %v4423_v46 }
  0xb3   :  { %1589 = vmatpush.bf16.msrb.mxu3 %v4330_v52  ;;  %v1646_v52 = vld [vmem:[%s8637_s4 + $0x70] sm:$0xff] }
  0xb4   :  { %1602 = vmatpush.bf16.msra.mxu0 %v4402_v1 }
  0xb5   :  { %1562 = vmatpush.bf16.msrb.mxu1 %v4194_v57  ;;  %v1641_v57 = vld [vmem:[%s8637_s4 + $0x48] sm:$0xff] }
  0xb6   :  { %1576 = vmatpush.bf16.msrb.mxu2 %v4258_v60  ;;  %v1640_v60 = vld [vmem:[%s8637_s4 + $0x40] sm:$0xff] }
  0xb7   :  { %1590 = vmatpush.bf16.msrb.mxu3 %v4322_v61  ;;  %v1639_v61 = vld [vmem:[%s8637_s4 + $0x38] sm:$0xff] }
  0xb8   :  { %1603 = vmatpush.bf16.msra.mxu0 %v4394_v5  ;;  %v1317_v5 = vpop.f32.mrf.mxu3 }
  0xb9   :  { %1563 = vmatpush.bf16.msrb.mxu1 %v4186_v6 }
  0xba   :  { %1577 = vmatpush.bf16.msrb.mxu2 %v4250_v9 }
  0xbb   :  { %1591 = vmatpush.bf16.msrb.mxu3 %v4314_v11 }
  0xbc   :  { %1604 = vmatpush.bf16.msra.mxu0 %v4386_v18 }
  0xbd   :  { %1564 = vmatpush.bf16.msrb.mxu1 %v4178_v19 }
  0xbe   :  { %1578 = vmatpush.bf16.msrb.mxu2 %v4242_v22 }
  0xbf   :  { %1592 = vmatpush.bf16.msrb.mxu3 %v4306_v23 }
  0xc0   :  { %1605 = vmatpush.bf16.msra.mxu0 %v4378_v39  ;;  %v1329_v6 = vpop.f32.mrf.mxu0 }
  0xc1   :  { %1565 = vmatpush.bf16.msrb.mxu1 %v4170_v33  ;;  %v1343_v9 = vpop.f32.mrf.mxu1 }
  0xc2   :  { %1579 = vmatpush.bf16.msrb.mxu2 %v4234_v43 }
  0xc3   :  { %1593 = vmatpush.bf16.msrb.mxu3 %v4298_v38 }
  0xc4   :  { %1606 = vmatpush.bf16.msra.mxu0 %v4370_v42  ;;  %1566 = vmatmul.bf16.vlgmr.msrb.gmra.mxu1 %v6600_v35  ;;  %v1643_v35 = vld [vmem:[%s8637_s4 + $0x58] sm:$0xff] }
  0xc5   :  { %1620 = vmatpush.bf16.msra.mxu1 %v4434_v41  ;;  %1580 = vmatmul.bf16.vlgmr.msrb.gmra.mxu2 %v6602_v36  ;;  %v1301_v36 = vpop.f32.mrf.mxu2 }
  0xc6   :  { %1668 = vmatpush.msra.mxu2 %v1647_v48  ;;  %1594 = vmatmul.bf16.vlgmr.msrb.gmra.mxu3 %v6589_v31  ;;  %v7207_v31 = vld [vmem:[%s8636_s3] sm:$0x3] }
  0xc7   :  { %v276_v1 = vperm.slane %v7207_v31, 0 }
  0xc8   :  { %1669 = vmatpush.msra.mxu2 %v1646_v52  ;;  %1607 = vmatpush.bf16.msra.mxu0 %v4362_v54  ;;  %v1331_v18 = vpop.f32.mrf.mxu0 }
  0xc9   :  { %1621 = vmatpush.bf16.msra.mxu1 %v4426_v51  ;;  %v1276_v11 = vadd.f32 %v1275_v47, %v276_v1  ;;  %v1371_v19 = vpop.f32.mrf.mxu3  ;;  %v1345_v22 = vpop.f32.mrf.mxu1 }
  0xca   :  { %1670 = vmatpush.msra.mxu2 %v1645_v58 }
  0xcb   :  { %1608 = vmatmul.bf16.vlgmr.msra.gmra.mxu0 %v6610_v40  ;;  %v1274_v40 = vadd.f32 %v1273_v53, %v276_v1  ;;  %v1290_v17 = vadd.f32 %v1289_v62, %v1276_v11  ;;  %v1662_v1 = vld [vmem:[%s8637_s4 + $0xf0] sm:$0xff]  ;;  %v1657_v62 = vld [vmem:[%s8637_s4 + $0xc8] sm:$0xff]  ;;  %v1652_v11 = vld [vmem:[%s8637_s4 + $0xa0] sm:$0xff] }
  0xcc   :  { %1671 = vmatpush.msra.mxu2 %v1644_v55 }
  0xcd   :  { %v1303_v0 = vpop.f32.mrf.mxu2  ;;  %v1288_v2 = vadd.f32 %v1287_v56, %v1274_v40  ;;  %v1658_v40 = vld [vmem:[%s8637_s4 + $0xd0] sm:$0xff] }
  0xce   :  { %1672 = vmatpush.msra.mxu2 %v1643_v35  ;;  %v1304_v20 = vadd.f32 %v1303_v0, %v1290_v17  ;;  %v1656_v0 = vld [vmem:[%s8637_s4 + $0xc0] sm:$0xff]  ;;  %v1650_v17 = vld [vmem:[%s8637_s4 + $0x90] sm:$0xff] }
  0xcf   :  { %v1302_v7 = vadd.f32 %v1301_v36, %v1288_v2  ;;  %v277_v2 = vperm.slane %v7207_v31, 1 }
  0xd0   :  { %1673 = vmatpush.msra.mxu2 %v1642_v10  ;;  %v1318_v24 = vadd.f32 %v1317_v5, %v1304_v20  ;;  %v1663_v10 = vld [vmem:[%s8637_s4 + $0xf8] sm:$0xff]  ;;  %v1648_v20 = vld [vmem:[%s8637_s4 + $0x80] sm:$0xff] }
  0xd1   :  { %v1316_v12 = vadd.f32 %v1315_v59, %v1302_v7  ;;  %v1373_v28 = vpop.f32.mrf.mxu3  ;;  %1691 = vmatpush.msra.mxu3 %v1663_v10  ;;  %v1660_v59 = vld [vmem:[%s8637_s4 + $0xe0] sm:$0xff]  ;;  %v1655_v5 = vld [vmem:[%s8637_s4 + $0xb8] sm:$0xff]  ;;  %v1654_v7 = vld [vmem:[%s8637_s4 + $0xb0] sm:$0xff] }
  0xd2   :  { %1674 = vmatpush.msra.mxu2 %v1641_v57  ;;  %v1332_v27 = vadd.f32 %v1331_v18, %v1318_v24  ;;  %v1661_v57 = vld [vmem:[%s8637_s4 + $0xe8] sm:$0xff] }
  0xd3   :  { %v1330_v16 = vadd.f32 %v1329_v6, %v1316_v12  ;;  %1692 = vmatpush.msra.mxu3 %v1662_v1 }
  0xd4   :  { %1675 = vmatpush.msra.mxu2 %v1640_v60  ;;  %4436 = vmatmul.msk.bf16.vlgmr.msra.gmra.mxu1 %vm1260_vm0, %v6718_v37  ;;  %v1634_v37 = vld [vmem:[%s8637_s4 + $0x10] sm:$0xff]  ;;  %v1346_v30 = vadd.f32 %v1345_v22, %v1332_v27  ;;  %v1659_v60 = vld [vmem:[%s8637_s4 + $0xd8] sm:$0xff] }
  0xd5   :  { %v1357_v14 = vpop.f32.mrf.mxu2  ;;  %v1344_v21 = vadd.f32 %v1343_v9, %v1330_v16  ;;  %1693 = vmatpush.msra.mxu3 %v1661_v57  ;;  %v1649_v16 = vld [vmem:[%s8637_s4 + $0x88] sm:$0xff] }
  0xd6   :  { %1676 = vmatpush.msra.mxu2 %v1639_v61 }
  0xd7   :  { %v1358_v25 = vadd.f32 %v1357_v14, %v1344_v21  ;;  %1694 = vmatpush.msra.mxu3 %v1660_v59 }
  0xd8   :  { %1677 = vmatpush.msra.mxu2 %v1638_v63 }
  0xd9   :  { %v1372_v29 = vadd.f32 %v1371_v19, %v1358_v25  ;;  %1695 = vmatpush.msra.mxu3 %v1659_v60 }
  0xda   :  { %1678 = vmatpush.msra.mxu2 %v1637_v3 }
  0xdb   :  { %1696 = vmatpush.msra.mxu3 %v1658_v40 }
  0xdc   :  { %1679 = vmatpush.msra.mxu2 %v1636_v4 }
  0xdd   :  { %v1359_v23 = vpop.f32.mrf.mxu2  ;;  %1697 = vmatpush.msra.mxu3 %v1657_v62  ;;  %v5683_v62 = vld [vmem:[%s8638_s5] ss:$0 sm:$0xff] }
  0xde   :  { %1680 = vmatpush.msra.mxu2 %v1635_v8  ;;  %v1360_v34 = vadd.f32 %v1359_v23, %v1346_v30 }
  0xdf   :  { %1698 = vmatpush.msra.mxu3 %v1656_v0 }
  0xe0   :  { %1681 = vmatpush.msra.mxu2 %v1634_v37  ;;  %v1385_v26 = vpop.f32.mrf.mxu0  ;;  %v1374_v41 = vadd.f32 %v1373_v28, %v1360_v34  ;;  %v1653_v37 = vld [vmem:[%s8637_s4 + $0xa8] sm:$0xff] }
  0xe1   :  { %v1399_v39 = vpop.f32.mrf.mxu1  ;;  %v1386_v32 = vadd.f32 %v1385_v26, %v1372_v29  ;;  %1699 = vmatpush.msra.mxu3 %v1655_v5 }
  0xe2   :  { %1682 = vmatpush.msra.mxu2 %v1633_v13  ;;  %v1651_v13 = vld [vmem:[%s8637_s4 + $0x98] sm:$0xff] }
  0xe3   :  { %v1400_v43 = vadd.f32 %v1399_v39, %v1386_v32  ;;  %1700 = vmatpush.msra.mxu3 %v1654_v7 }
  0xe4   :  { %1683 = vmatpush.msra.mxu2 %v1632_v15 }
  0xe5   :  { %1701 = vmatpush.msra.mxu3 %v1653_v37 }
  0xe7   :  { %1702 = vmatpush.msra.mxu3 %v1652_v11 }
  0xe8   :  { %v1413_v33 = vpop.f32.mrf.mxu2  ;;  %v1387_v44 = vpop.f32.mrf.mxu0 }
  0xe9   :  { %v1427_v38 = vpop.f32.mrf.mxu3  ;;  %v1414_v42 = vadd.f32 %v1413_v33, %v1400_v43  ;;  %v1388_v45 = vadd.f32 %v1387_v44, %v1374_v41  ;;  %v1401_v46 = vpop.f32.mrf.mxu1  ;;  %1703 = vmatpush.msra.mxu3 %v1651_v13  ;;  %v5820_v13 = vmov 0  }
  0xea   :  { %5680 = vset.pattern.permute.xlu1 %v5820_v13 }
  0xeb   :  { %v1428_v48 = vadd.f32 %v1427_v38, %v1414_v42  ;;  %v1402_v51 = vadd.f32 %v1401_v46, %v1388_v45  ;;  %1704 = vmatpush.msra.mxu3 %v1650_v17  ;;  %v5220_v17 = vld [vmem:[%s8641_s8 + $0x618] sm:$0xf] }
  0xed   :  { %1705 = vmatpush.msra.mxu3 %v1649_v16 }
  0xef   :  { %1706 = vmatpush.msra.mxu3 %v1648_v20  ;;  %v4806_v20 = vld [vmem:[%s8641_s8 + $0x30c] sm:$0xf0] }
  0xf0   :  { %v1415_v49 = vpop.f32.mrf.mxu2 }
  0xf1   :  { %v1416_v53 = vadd.f32 %v1415_v49, %v1402_v51  ;;  %v1429_v58 = vpop.f32.mrf.mxu3 }
  0xf3   :  { %v1441_v50 = vpop.f32.mrf.mxu0  ;;  %v1430_v55 = vadd.f32 %v1429_v58, %v1416_v53 }
  0xf4   :  { %v1442_v52 = vadd.f32 %v1441_v50, %v1428_v48 }
  0xf6   :  { %v1628_v54 = vmax.f32 %v1442_v52, 0.0 }
  0xf8   :  { %1684 = vmatmul.f32.vlgmr.msra.gmra.mxu2 %v1628_v54 }
  0xfb   :  { %v1443_v56 = vpop.f32.mrf.mxu0 }
  0xfc   :  { %v1444_v35 = vadd.f32 %v1443_v56, %v1430_v55 }
  0xfe   :  { %v1630_v36 = vmax.f32 %v1444_v35, 0.0 }
 0x100   :  { %1687 = vmatmul.f32.gmra.mxu2 %v1630_v36 }
 0x101   :  { %v1455_v47 = vpop.f32.mrf.mxu1 }
 0x102   :  { %v1456_v6 = vadd.f32 %v1455_v47, %v277_v2 }
 0x108   :  { %v1469_v61 = vpop.f32.mrf.mxu2  ;;  %v1497_v4 = vpop.f32.mrf.mxu0 }
 0x109   :  { %v1483_v63 = vpop.f32.mrf.mxu3  ;;  %v1457_v3 = vpop.f32.mrf.mxu1  ;;  %v1470_v31 = vadd.f32 %v1469_v61, %v1456_v6 }
 0x10a   :  { %v1458_v18 = vadd.f32 %v1457_v3, %v277_v2 }
 0x10b   :  { %v1484_v14 = vadd.f32 %v1483_v63, %v1470_v31 }
 0x10d   :  { %v1498_v19 = vadd.f32 %v1497_v4, %v1484_v14  ;;  %v4804_v14 = vld [vmem:[%s8641_s8 + $0x2d8] sm:$0xf] }
 0x110   :  { %v1471_v8 = vpop.f32.mrf.mxu2  ;;  %v1499_v15 = vpop.f32.mrf.mxu0 }
 0x111   :  { %v1485_v9 = vpop.f32.mrf.mxu3  ;;  %v1472_v23 = vadd.f32 %v1471_v8, %v1458_v18  ;;  %v5667_v18 = vld [vmem:[%s8641_s8 + $0x648] sm:$0xf0] }
 0x113   :  { %v1486_v27 = vadd.f32 %v1485_v9, %v1472_v23  ;;  %v5661_v23 = vld [vmem:[%s8641_s8 + $0x61c] sm:$0xf] }
 0x115   :  { %v1500_v39 = vadd.f32 %v1499_v15, %v1486_v27  ;;  %v5563_v15 = vld [vmem:[%s8641_s8 + $0x308] sm:$0xf0]  ;;  %v5550_v27 = vld [vmem:[%s8641_s8 + $0x2a0] sm:$0xf0] }
 0x116   :  { %v4805_v16 = vor.u32 %v5563_v15, %v4804_v14  ;;  %v5609_v15 = vld [vmem:[%s8641_s8 + $0x47c] sm:$0xf] }
 0x118   :  { %3103 = vmatpush.bf16.msrb.mxu0 %v4805_v16  ;;  %v4544_v16 = vld [vmem:[%s8641_s8 + $0xd0] sm:$0xf] }
 0x121   :  { %v1511_v12 = vpop.f32.mrf.mxu1 }
 0x122   :  { %v1512_v24 = vadd.f32 %v1511_v12, %v1498_v19  ;;  %v5819_v12 = vmov 1   ;;  %v5557_v19 = vld [vmem:[%s8641_s8 + $0x2dc] sm:$0xf] }
 0x123   :  { %5681 = vset.pattern.permute.xlu2 %v5819_v12  ;;  %5682 = vset.pattern.permute.xlu0 %v5819_v12  ;;  %v4598_v12 = vld [vmem:[%s8641_s8 + $0x16c] sm:$0xf0] }
 0x128   :  { %v1525_v21 = vpop.f32.mrf.mxu2  ;;  %v1553_v26 = vpop.f32.mrf.mxu0 }
 0x129   :  { %v1539_v22 = vpop.f32.mrf.mxu3  ;;  %v1513_v25 = vpop.f32.mrf.mxu1  ;;  %v1526_v28 = vadd.f32 %v1525_v21, %v1512_v24  ;;  %v5221_v21 = vor.u32 %v5667_v18, %v5220_v17  ;;  %v5222_v24 = vld [vmem:[%s8641_s8 + $0x64c] sm:$0xf0] }
 0x12a   :  { %v1514_v34 = vadd.f32 %v1513_v25, %v1500_v39  ;;  %v4752_v25 = vld [vmem:[%s8641_s8 + $0x270] sm:$0xf] }
 0x12b   :  { %v1540_v30 = vadd.f32 %v1539_v22, %v1526_v28  ;;  %v4809_v22 = vor.u32 %v5557_v19, %v4806_v20  ;;  %v5168_v28 = vld [vmem:[%s8641_s8 + $0x5b0] sm:$0xf]  ;;  %3117 = vmatpush.bf16.msrb.mxu1 %v5221_v21  ;;  %v4753_v39 = vor.u32 %v5550_v27, %v4752_v25  ;;  %v5498_v19 = vld [vmem:[%s8641_s8 + $0x100] sm:$0xf0]  ;;  %v4546_v25 = vld [vmem:[%s8641_s8 + $0x104] sm:$0xf0] }
 0x12c   :  { %v5014_v17 = vld [vmem:[%s8641_s8 + $0x4ac] sm:$0xf0]  ;;  %v5602_v21 = vld [vmem:[%s8641_s8 + $0x440] sm:$0xf0] }
 0x12d   :  { %v1554_v44 = vadd.f32 %v1553_v26, %v1540_v30  ;;  %v5225_v26 = vor.u32 %v5661_v23, %v5222_v24  ;;  %3131 = vmatpush.bf16.msrb.mxu2 %v4809_v22  ;;  %3104 = vmatpush.bf16.msrb.mxu0 %v4753_v39  ;;  %v5017_v18 = vor.u32 %v5609_v15, %v5014_v17  ;;  %v4960_v20 = vld [vmem:[%s8641_s8 + $0x410] sm:$0xf]  ;;  %v5492_v24 = vld [vmem:[%s8641_s8 + $0xd4] sm:$0xf]  ;;  %v4492_v39 = vld [vmem:[%s8641_s8 + $0x68] sm:$0xf] }
 0x12e   :  { %v4545_v22 = vor.u32 %v5498_v19, %v4544_v16  ;;  %v4961_v23 = vor.u32 %v5602_v21, %v4960_v20  ;;  %v4549_v27 = vor.u32 %v5492_v24, %v4546_v25  ;;  %v5538_v15 = vld [vmem:[%s8641_s8 + $0x240] sm:$0xf0]  ;;  %v5124_v17 = vld [vmem:[%s8641_s8 + $0x550] sm:$0xf]  ;;  %v4710_v19 = vld [vmem:[%s8641_s8 + $0x244] sm:$0xf0] }
 0x12f   :  { %3145 = vmatpush.bf16.msrb.mxu3 %v5225_v26  ;;  %v5596_v26 = vld [vmem:[%s8641_s8 + $0x414] sm:$0xf]  ;;  %v5642_v16 = vld [vmem:[%s8641_s8 + $0x580] sm:$0xf0] }
 0x130   :  { %v1527_v29 = vpop.f32.mrf.mxu2  ;;  %v1555_v38 = vpop.f32.mrf.mxu0  ;;  %v5636_v20 = vld [vmem:[%s8641_s8 + $0x554] sm:$0xf] }
 0x131   :  { %v1541_v32 = vpop.f32.mrf.mxu3  ;;  %v1528_v43 = vadd.f32 %v1527_v29, %v1514_v34  ;;  %v5654_v29 = vld [vmem:[%s8641_s8 + $0x5e0] sm:$0xf0]  ;;  %v5648_v34 = vld [vmem:[%s8641_s8 + $0x5b4] sm:$0xf] }
 0x132   :  { %v5169_v30 = vor.u32 %v5654_v29, %v5168_v28  ;;  %v4962_v28 = vld [vmem:[%s8641_s8 + $0x444] sm:$0xf0] }
 0x133   :  { %v1542_v45 = vadd.f32 %v1541_v32, %v1528_v43  ;;  %v5544_v32 = vld [vmem:[%s8641_s8 + $0x274] sm:$0xf]  ;;  %v5170_v43 = vld [vmem:[%s8641_s8 + $0x5e4] sm:$0xf0]  ;;  %v4965_v29 = vor.u32 %v5596_v26, %v4962_v28 }
 0x134   :  { %3118 = vmatpush.bf16.msrb.mxu1 %v5169_v30  ;;  %v5485_v30 = vld [vmem:[%s8641_s8 + $0x98] sm:$0xf0]  ;;  %v4656_v26 = vld [vmem:[%s8641_s8 + $0x1a8] sm:$0xf] }
 0x135   :  { %v1556_v51 = vadd.f32 %v1555_v38, %v1542_v45  ;;  %v4700_v38 = vld [vmem:[%s8641_s8 + $0x208] sm:$0xf] }
 0x136   :  { %v5116_v45 = vld [vmem:[%s8641_s8 + $0x548] sm:$0xf] }
 0x137   :  { %v5072_v28 = vld [vmem:[%s8641_s8 + $0x4e8] sm:$0xf] }
 0x141   :  { %v1567_v33 = vpop.f32.mrf.mxu1 }
 0x142   :  { %v1568_v41 = vadd.f32 %v1567_v33, %v1554_v44  ;;  %v4754_v33 = vld [vmem:[%s8641_s8 + $0x2a4] sm:$0xf0] }
 0x143   :  { %v4757_v44 = vor.u32 %v5544_v32, %v4754_v33  ;;  %v4908_v32 = vld [vmem:[%s8641_s8 + $0x3a8] sm:$0xf]  ;;  %v4493_v33 = vor.u32 %v5485_v30, %v4492_v39  ;;  %v5629_v39 = vld [vmem:[%s8641_s8 + $0x518] sm:$0xf0]  ;;  %v5519_v30 = vld [vmem:[%s8641_s8 + $0x1ac] sm:$0xf] }
 0x145   :  { %3132 = vmatpush.bf16.msrb.mxu2 %v4757_v44  ;;  %v5479_v44 = vld [vmem:[%s8641_s8 + $0x6c] sm:$0xf] }
 0x148   :  { %v1581_v42 = vpop.f32.mrf.mxu2  ;;  %v1609_v52 = vpop.f32.mrf.mxu0 }
 0x149   :  { %v1582_v46 = vadd.f32 %v1581_v42, %v1568_v41  ;;  %v1595_v48 = vpop.f32.mrf.mxu3  ;;  %v1569_v49 = vpop.f32.mrf.mxu1  ;;  %v5537_v41 = vld [vmem:[%s8641_s8 + $0x238] sm:$0xf0]  ;;  %v5173_v42 = vor.u32 %v5648_v34, %v5170_v43  ;;  %v4494_v43 = vld [vmem:[%s8641_s8 + $0x9c] sm:$0xf0] }
 0x14a   :  { %v1570_v53 = vadd.f32 %v1569_v49, %v1556_v51  ;;  %v4701_v49 = vor.u32 %v5537_v41, %v4700_v38  ;;  %v5635_v51 = vld [vmem:[%s8641_s8 + $0x54c] sm:$0xf]  ;;  %v5589_v34 = vld [vmem:[%s8641_s8 + $0x3d8] sm:$0xf0]  ;;  %v4497_v41 = vor.u32 %v5479_v44, %v4494_v43  ;;  %v5074_v43 = vld [vmem:[%s8641_s8 + $0x51c] sm:$0xf0] }
 0x14b   :  { %v1596_v50 = vadd.f32 %v1595_v48, %v1582_v46  ;;  %v5641_v46 = vld [vmem:[%s8641_s8 + $0x578] sm:$0xf0]  ;;  %v5531_v48 = vld [vmem:[%s8641_s8 + $0x20c] sm:$0xf]  ;;  %3146 = vmatpush.bf16.msrb.mxu3 %v5173_v42  ;;  %v4909_v38 = vor.u32 %v5589_v34, %v4908_v32  ;;  %v4658_v32 = vld [vmem:[%s8641_s8 + $0x1dc] sm:$0xf0] }
 0x14c   :  { %3105 = vmatpush.bf16.msrb.mxu0 %v4701_v49  ;;  %v5583_v42 = vld [vmem:[%s8641_s8 + $0x3ac] sm:$0xf]  ;;  %v5472_v49 = vld [vmem:[%s8641_s8 + $0x30] sm:$0xf0]  ;;  %v4661_v34 = vor.u32 %v5519_v30, %v4658_v32  ;;  %v1777_v32 = vld [vmem:[%s8640_s7] sm:$0x3] }
 0x14d   :  { %v1610_v54 = vadd.f32 %v1609_v52, %v1596_v50  ;;  %v4702_v50 = vld [vmem:[%s8641_s8 + $0x23c] sm:$0xf0]  ;;  %v5623_v44 = vld [vmem:[%s8641_s8 + $0x4ec] sm:$0xf] }
 0x14e   :  { %v5118_v52 = vld [vmem:[%s8641_s8 + $0x57c] sm:$0xf0] }
 0x150   :  { %v1583_v58 = vpop.f32.mrf.mxu2  ;;  %v1611_v57 = vpop.f32.mrf.mxu0 }
 0x151   :  { %v1584_v55 = vadd.f32 %v1583_v58, %v1570_v53  ;;  %v1623_v56 = vpop.f32.mrf.mxu1  ;;  %v1597_v36 = vpop.f32.mrf.mxu3  ;;  %v5117_v53 = vor.u32 %v5641_v46, %v5116_v45  ;;  %v4648_v58 = vld [vmem:[%s8641_s8 + $0x1a0] sm:$0xf] }
 0x152   :  { %v1624_v35 = vadd.f32 %v1623_v56, %v1610_v54  ;;  %v4705_v54 = vor.u32 %v5531_v48, %v4702_v50  ;;  %v5064_v56 = vld [vmem:[%s8641_s8 + $0x4e0] sm:$0xf] }
 0x153   :  { %v1598_v10 = vadd.f32 %v1597_v36, %v1584_v55  ;;  %v5524_v55 = vld [vmem:[%s8641_s8 + $0x1d0] sm:$0xf0]  ;;  %3119 = vmatpush.bf16.msrb.mxu1 %v5117_v53  ;;  %v4910_v45 = vld [vmem:[%s8641_s8 + $0x3dc] sm:$0xf0] }
 0x154   :  { %v1629_v1 = vmax.f32 %v1624_v35, 0.0  ;;  %v5121_v35 = vor.u32 %v5635_v51, %v5118_v52  ;;  %v5628_v36 = vld [vmem:[%s8641_s8 + $0x510] sm:$0xf0]  ;;  %3133 = vmatpush.bf16.msrb.mxu2 %v4705_v54  ;;  %v4440_v46 = vld [vmem:[%s8641_s8] sm:$0xf]  ;;  %v4913_v48 = vor.u32 %v5583_v42, %v4910_v45 }
 0x155   :  { %v1612_v47 = vadd.f32 %v1611_v57, %v1598_v10  ;;  %v5518_v10 = vld [vmem:[%s8641_s8 + $0x1a4] sm:$0xf]  ;;  %v4856_v50 = vld [vmem:[%s8641_s8 + $0x340] sm:$0xf]  ;;  %v5576_v51 = vld [vmem:[%s8641_s8 + $0x370] sm:$0xf0]  ;;  %v4441_v52 = vor.u32 %v5472_v49, %v4440_v46 }
 0x156   :  { %1707 = vmatmul.f32.vlgmr.msra.gmra.mxu3 %v1629_v1  ;;  %v4650_v1 = vld [vmem:[%s8641_s8 + $0x1d4] sm:$0xf0]  ;;  %v5622_v57 = vld [vmem:[%s8641_s8 + $0x4e4] sm:$0xf]  ;;  %v4857_v53 = vor.u32 %v5576_v51, %v4856_v50  ;;  %v5512_v42 = vld [vmem:[%s8641_s8 + $0x170] sm:$0xf0] }
 0x157   :  { %3147 = vmatpush.bf16.msrb.mxu3 %v5121_v35  ;;  %v5466_v54 = vld [vmem:[%s8641_s8 + $0x4] sm:$0xf]  ;;  %v4858_v35 = vld [vmem:[%s8641_s8 + $0x374] sm:$0xf0]  ;;  %v5020_v45 = vld [vmem:[%s8641_s8 + $0x480] sm:$0xf] }
 0x158   :  { %v5506_v49 = vld [vmem:[%s8641_s8 + $0x144] sm:$0xf]  ;;  %v4606_v50 = vld [vmem:[%s8641_s8 + $0x174] sm:$0xf0] }
 0x159   :  { %v1625_v59 = vpop.f32.mrf.mxu1 }
 0x15a   :  { %v1626_v60 = vadd.f32 %v1625_v59, %v1612_v47  ;;  %v5066_v47 = vld [vmem:[%s8641_s8 + $0x514] sm:$0xf0]  ;;  %v4649_v59 = vor.u32 %v5524_v55, %v4648_v58  ;;  %v5570_v55 = vld [vmem:[%s8641_s8 + $0x344] sm:$0xf] }
 0x15b   :  { %v4442_v58 = vld [vmem:[%s8641_s8 + $0x34] sm:$0xf0] }
 0x15c   :  { %v1631_v40 = vmax.f32 %v1626_v60, 0.0  ;;  %v5065_v60 = vor.u32 %v5628_v36, %v5064_v56  ;;  %3106 = vmatpush.bf16.msrb.mxu0 %v4649_v59  ;;  %v4445_v56 = vor.u32 %v5466_v54, %v4442_v58  ;;  %v4812_v36 = vld [vmem:[%s8641_s8 + $0x2e0] sm:$0xf]  ;;  %v5668_v59 = vld [vmem:[%s8641_s8 + $0x650] sm:$0xf0] }
 0x15d   :  { %v5022_v54 = vld [vmem:[%s8641_s8 + $0x4b4] sm:$0xf0] }
 0x15e   :  { %1710 = vmatmul.f32.gmra.mxu3 %v1631_v40  ;;  %v4653_v40 = vor.u32 %v5518_v10, %v4650_v1  ;;  %3120 = vmatpush.bf16.msrb.mxu1 %v5065_v60  ;;  %v5564_v10 = vld [vmem:[%s8641_s8 + $0x310] sm:$0xf0]  ;;  %v4861_v1 = vor.u32 %v5570_v55, %v4858_v35  ;;  %v5558_v60 = vld [vmem:[%s8641_s8 + $0x2e4] sm:$0xf]  ;;  %v4552_v55 = vld [vmem:[%s8641_s8 + $0xd8] sm:$0xf] }
 0x15f   :  { %v4968_v35 = vld [vmem:[%s8641_s8 + $0x418] sm:$0xf] }
 0x160   :  { %3134 = vmatpush.bf16.msrb.mxu2 %v4653_v40 }
 0x17b   :  { %v1685_v61 = vpop.f32.mrf.mxu2 }
 0x17c   :  { %v1686_v63 = vadd.f32 %v5683_v62, %v1685_v61  ;;  %v5069_v61 = vor.u32 %v5622_v57, %v5066_v47  ;;  %v4813_v57 = vor.u32 %v5564_v10, %v4812_v36  ;;  %v5228_v47 = vld [vmem:[%s8641_s8 + $0x620] sm:$0xf]  ;;  %v5603_v10 = vld [vmem:[%s8641_s8 + $0x448] sm:$0xf0] }
 0x17d   :  { %v5229_v40 = vor.u32 %v5668_v59, %v5228_v47  ;;  %v4969_v47 = vor.u32 %v5603_v10, %v4968_v35  ;;  %v5565_v35 = vld [vmem:[%s8641_s8 + $0x318] sm:$0xf0] }
 0x17e   :  { %3148 = vmatpush.bf16.msrb.mxu3 %v5069_v61  ;;  %v4814_v61 = vld [vmem:[%s8641_s8 + $0x314] sm:$0xf0]  ;;  %v5669_v10 = vld [vmem:[%s8641_s8 + $0x658] sm:$0xf0] }
 0x182   :  { %3149 = vmatpush.bf16.msrb.mxu3 %v5017_v18  ;;  %v5532_v18 = vld [vmem:[%s8641_s8 + $0x214] sm:$0xf] }
 0x183   :  { %v1688_v4 = vpop.f32.mrf.mxu2  ;;  %v4713_v24 = vor.u32 %v5532_v18, %v4710_v19  ;;  %v5571_v19 = vld [vmem:[%s8641_s8 + $0x34c] sm:$0xf] }
 0x184   :  { %v1689_v6 = vadd.f32 %v5683_v62, %v1688_v4  ;;  %v1720_v62 = vld [vmem:[%s8634_s1] sm:$0xff]  ;;  %v1721_v4 = vld [vmem:[%s8634_s1 + $0x8] sm:$0xff] }
 0x186   :  { %3150 = vmatpush.bf16.msrb.mxu3 %v4965_v29 }
 0x18a   :  { %3151 = vmatpush.bf16.msrb.mxu3 %v4913_v48  ;;  %v5616_v48 = vld [vmem:[%s8641_s8 + $0x4b0] sm:$0xf0] }
 0x18b   :  { %v5021_v51 = vor.u32 %v5616_v48, %v5020_v45 }
 0x18e   :  { %3152 = vmatpush.bf16.msrb.mxu3 %v4861_v1  ;;  %v5493_v1 = vld [vmem:[%s8641_s8 + $0xdc] sm:$0xf] }
 0x1d9   :  { %v1708_v0 = vpop.f32.mrf.mxu3 }
 0x1da   :  { %v7298_v2 = vadd.f32 %v1708_v0, %v1686_v63 }
 0x1dc   :  { %v1714_v3 = vmul.f32 0.5, %v7298_v2  ;;  %3627 = vst.msk [vmem:[%s8644_s11] sm:$0xff] %vm3626_vm1, %v7298_v2 }
 0x1de   :  { %v1716_v5 = vmul.f32 1.442695, %v1714_v3 }
 0x1e0   :  { %5684 = vpow2.f32 %v1716_v5 }
 0x1e1   :  { %v1711_v7 = vpop.f32.mrf.mxu3 }
 0x1e2   :  { %v7305_v8 = vadd.f32 %v1711_v7, %v1689_v6 }
 0x1e4   :  { %v1715_v37 = vmul.f32 0.5, %v7305_v8  ;;  %3628 = vst.msk [vmem:[%s8644_s11 + $0x8] sm:$0xff] %vm3626_vm1, %v7305_v8  ;;  %s5823_s11 = smov 52  }
 0x1e6   :  { %v5685_v31 = vpop.eup %5684  ;;  %v1718_v9 = vmul.f32 1.442695, %v1715_v37  ;;  %v4596_v37 = vld [vmem:[%s8641_s8 + $0x138] sm:$0xf] }
 0x1e7   :  { %1724 = vrot.lane.b32.xlu0 %v5685_v31, %s5818_s24  ;;  %v5012_v31 = vld [vmem:[%s8641_s8 + $0x478] sm:$0xf] }
 0x1e8   :  { %5686 = vpow2.f32 %v1718_v9 }
 0x1ee   :  { %v5687_v11 = vpop.eup %5686 }
 0x1ef   :  { %1726 = vrot.lane.b32.xlu0 %v5687_v11, %s5818_s24  ;;  %v5615_v11 = vld [vmem:[%s8641_s8 + $0x4a8] sm:$0xf0] }
 0x1f0   :  { %v5013_v13 = vor.u32 %v5615_v11, %v5012_v31  ;;  %v4762_v31 = vld [vmem:[%s8641_s8 + $0x2ac] sm:$0xf0] }
 0x1f2   :  { %3121 = vmatpush.bf16.msrb.mxu1 %v5013_v13  ;;  %v4708_v13 = vld [vmem:[%s8641_s8 + $0x210] sm:$0xf] }
 0x1f3   :  { %v4709_v21 = vor.u32 %v5538_v15, %v4708_v13  ;;  %v5467_v15 = vld [vmem:[%s8641_s8 + $0xc] sm:$0xf] }
 0x1f6   :  { %3122 = vmatpush.bf16.msrb.mxu1 %v4961_v23  ;;  %v5125_v23 = vor.u32 %v5642_v16, %v5124_v17  ;;  %v4450_v17 = vld [vmem:[%s8641_s8 + $0x3c] sm:$0xf0] }
 0x1f7   :  { %v4453_v18 = vor.u32 %v5467_v15, %v4450_v17  ;;  %v4716_v15 = vld [vmem:[%s8641_s8 + $0x218] sm:$0xf]  ;;  %v5539_v17 = vld [vmem:[%s8641_s8 + $0x248] sm:$0xf0] }
 0x1fa   :  { %3123 = vmatpush.bf16.msrb.mxu1 %v4909_v38  ;;  %v5077_v38 = vor.u32 %v5623_v44, %v5074_v43  ;;  %v1779_v43 = vperm.slane %v1777_v32, 0 }
 0x1fe   :  { %3124 = vmatpush.bf16.msrb.mxu1 %v4857_v53  ;;  %v5610_v53 = vld [vmem:[%s8641_s8 + $0x484] sm:$0xf] }
 0x1ff   :  { %v5025_v58 = vor.u32 %v5610_v53, %v5022_v54 }
 0x202   :  { %3173 = vmatpush.bf16.msra.mxu1 %v5229_v40  ;;  %v4970_v40 = vld [vmem:[%s8641_s8 + $0x44c] sm:$0xf0] }
 0x259   :  { %v1725_v63 = vpop.permute.xlu0 %1724 }
 0x25a   :  { %v1730_v0 = vmul.f32 %v1725_v63, %v1720_v62  ;;  %v5662_v62 = vld [vmem:[%s8641_s8 + $0x624] sm:$0xf]  ;;  %v5230_v63 = vld [vmem:[%s8641_s8 + $0x654] sm:$0xf0] }
 0x25c   :  { %v1732_v3 = vadd.f32 %v1730_v0, %v7298_v2  ;;  %v5511_v2 = vld [vmem:[%s8641_s8 + $0x168] sm:$0xf0]  ;;  %v4817_v0 = vor.u32 %v5558_v60, %v4814_v61  ;;  %v5597_v60 = vld [vmem:[%s8641_s8 + $0x41c] sm:$0xf] }
 0x25d   :  { %v4597_v9 = vor.u32 %v5511_v2, %v4596_v37  ;;  %v5655_v37 = vld [vmem:[%s8641_s8 + $0x5e8] sm:$0xf0]  ;;  %v5545_v2 = vld [vmem:[%s8641_s8 + $0x27c] sm:$0xf]  ;;  %v4973_v61 = vor.u32 %v5597_v60, %v4970_v40 }
 0x25e   :  { %1757 = vperm.xlu2 %5681, %v1732_v3   ;;  %1737 = vperm.xlu1 %5680, %v1732_v3   ;;  %v5233_v3 = vor.u32 %v5662_v62, %v5230_v63  ;;  %v4765_v11 = vor.u32 %v5545_v2, %v4762_v31  ;;  %v4500_v62 = vld [vmem:[%s8641_s8 + $0x70] sm:$0xf]  ;;  %v5486_v63 = vld [vmem:[%s8641_s8 + $0xa0] sm:$0xf0]  ;;  %v5584_v2 = vld [vmem:[%s8641_s8 + $0x3b4] sm:$0xf] }
 0x25f   :  { %3107 = vmatpush.bf16.msrb.mxu0 %v4597_v9  ;;  %v4918_v31 = vld [vmem:[%s8641_s8 + $0x3e4] sm:$0xf0] }
 0x260   :  { %3201 = vmatpush.bf16.msra.mxu3 %v5233_v3  ;;  %v4501_v3 = vor.u32 %v5486_v63, %v4500_v62  ;;  %v5238_v62 = vld [vmem:[%s8641_s8 + $0x65c] sm:$0xf0] }
 0x261   :  { %v1727_v5 = vpop.permute.xlu0 %1726 }
 0x262   :  { %v1731_v6 = vmul.f32 %v1727_v5, %v1721_v4  ;;  %v4760_v4 = vld [vmem:[%s8641_s8 + $0x278] sm:$0xf]  ;;  %v5551_v5 = vld [vmem:[%s8641_s8 + $0x2a8] sm:$0xf0] }
 0x263   :  { %3108 = vmatpush.bf16.msrb.mxu0 %v4545_v22  ;;  %v5126_v22 = vld [vmem:[%s8641_s8 + $0x584] sm:$0xf0] }
 0x264   :  { %v1733_v7 = vadd.f32 %v1731_v6, %v7305_v8  ;;  %v5505_v8 = vld [vmem:[%s8641_s8 + $0x13c] sm:$0xf]  ;;  %v5176_v6 = vld [vmem:[%s8641_s8 + $0x5b8] sm:$0xf]  ;;  %v5129_v25 = vor.u32 %v5636_v20, %v5126_v22  ;;  %v4866_v20 = vld [vmem:[%s8641_s8 + $0x37c] sm:$0xf0] }
 0x265   :  { %v4601_v14 = vor.u32 %v5505_v8, %v4598_v12  ;;  %v5177_v9 = vor.u32 %v5655_v37, %v5176_v6  ;;  %v5649_v8 = vld [vmem:[%s8641_s8 + $0x5bc] sm:$0xf]  ;;  %v5178_v12 = vld [vmem:[%s8641_s8 + $0x5ec] sm:$0xf0]  ;;  %v4502_v6 = vld [vmem:[%s8641_s8 + $0xa4] sm:$0xf0] }
 0x266   :  { %1761 = vperm.xlu2 %5681, %v1733_v7   ;;  %1742 = vperm.xlu1 %5680, %v1733_v7   ;;  %v4761_v7 = vor.u32 %v5551_v5, %v4760_v4  ;;  %v5590_v4 = vld [vmem:[%s8641_s8 + $0x3e0] sm:$0xf0]  ;;  %v5480_v5 = vld [vmem:[%s8641_s8 + $0x74] sm:$0xf] }
 0x267   :  { %3135 = vmatpush.bf16.msrb.mxu2 %v4601_v14  ;;  %3109 = vmatpush.bf16.msrb.mxu0 %v4493_v33  ;;  %v5181_v14 = vor.u32 %v5649_v8, %v5178_v12  ;;  %v5073_v33 = vor.u32 %v5629_v39, %v5072_v28  ;;  %v4505_v37 = vor.u32 %v5480_v5, %v4502_v6  ;;  %v5473_v8 = vld [vmem:[%s8641_s8 + $0x38] sm:$0xf0]  ;;  %v4864_v12 = vld [vmem:[%s8641_s8 + $0x348] sm:$0xf]  ;;  %v4768_v5 = vld [vmem:[%s8641_s8 + $0x280] sm:$0xf] }
 0x268   :  { %3174 = vmatpush.bf16.msra.mxu1 %v5177_v9  ;;  %v4921_v9 = vor.u32 %v5584_v2, %v4918_v31  ;;  %v5552_v6 = vld [vmem:[%s8641_s8 + $0x2b0] sm:$0xf0]  ;;  %v5184_v2 = vld [vmem:[%s8641_s8 + $0x5c0] sm:$0xf] }
 0x269   :  { %3202 = vmatpush.bf16.msra.mxu3 %v5181_v14  ;;  %v5577_v14 = vld [vmem:[%s8641_s8 + $0x378] sm:$0xf0]  ;;  %v5656_v31 = vld [vmem:[%s8641_s8 + $0x5f0] sm:$0xf0] }
 0x26a   :  { %v4865_v16 = vor.u32 %v5577_v14, %v4864_v12  ;;  %v5186_v12 = vld [vmem:[%s8641_s8 + $0x5f4] sm:$0xf0]  ;;  %v5185_v14 = vor.u32 %v5656_v31, %v5184_v2  ;;  %v5481_v2 = vld [vmem:[%s8641_s8 + $0x7c] sm:$0xf]  ;;  %v4510_v31 = vld [vmem:[%s8641_s8 + $0xac] sm:$0xf0] }
 0x26b   :  { %3136 = vmatpush.bf16.msrb.mxu2 %v4549_v27  ;;  %3110 = vmatpush.bf16.msrb.mxu0 %v4441_v52  ;;  %v5525_v27 = vld [vmem:[%s8641_s8 + $0x1d8] sm:$0xf0]  ;;  %v4609_v52 = vor.u32 %v5506_v49, %v4606_v50 }
 0x26c   :  { %3175 = vmatpush.bf16.msra.mxu1 %v5125_v23  ;;  %v4657_v29 = vor.u32 %v5525_v27, %v4656_v26  ;;  %v1734_v23 = vld [vmem:[%s8639_s6] ss:$2 sm:$0x3] }
 0x26d   :  { %3203 = vmatpush.bf16.msra.mxu3 %v5129_v25  ;;  %v1746_v25 = vperm.slane %v1734_v23, 0  ;;  %v1747_v26 = vperm.slane %v1734_v23, 1  ;;  %v5637_v23 = vld [vmem:[%s8641_s8 + $0x55c] sm:$0xf] }
 0x26f   :  { %3137 = vmatpush.bf16.msrb.mxu2 %v4497_v41  ;;  %3159 = vmatpush.bf16.msra.mxu0 %v4813_v57  ;;  %v4604_v41 = vld [vmem:[%s8641_s8 + $0x140] sm:$0xf]  ;;  %v4554_v57 = vld [vmem:[%s8641_s8 + $0x10c] sm:$0xf0] }
 0x270   :  { %3176 = vmatpush.bf16.msra.mxu1 %v5073_v33  ;;  %v4605_v46 = vor.u32 %v5512_v42, %v4604_v41  ;;  %v4557_v59 = vor.u32 %v5493_v1, %v4554_v57  ;;  %v5559_v1 = vld [vmem:[%s8641_s8 + $0x2ec] sm:$0xf]  ;;  %v4822_v57 = vld [vmem:[%s8641_s8 + $0x31c] sm:$0xf0] }
 0x271   :  { %3204 = vmatpush.bf16.msra.mxu3 %v5077_v38  ;;  %v1780_v38 = vperm.slane %v1777_v32, 1  ;;  %v5630_v32 = vld [vmem:[%s8641_s8 + $0x520] sm:$0xf0] }
 0x273   :  { %3138 = vmatpush.bf16.msrb.mxu2 %v4445_v56  ;;  %3160 = vmatpush.bf16.msra.mxu0 %v4761_v7  ;;  %v5499_v56 = vld [vmem:[%s8641_s8 + $0x108] sm:$0xf0] }
 0x274   :  { %3177 = vmatpush.bf16.msra.mxu1 %v5021_v51  ;;  %v4553_v36 = vor.u32 %v5499_v56, %v4552_v55 }
 0x275   :  { %3205 = vmatpush.bf16.msra.mxu3 %v5025_v58  ;;  %v4820_v58 = vld [vmem:[%s8641_s8 + $0x2e8] sm:$0xf] }
 0x277   :  { %3187 = vmatpush.bf16.msra.mxu2 %v4817_v0  ;;  %3161 = vmatpush.bf16.msra.mxu0 %v4709_v21  ;;  %v4916_v0 = vld [vmem:[%s8641_s8 + $0x3b0] sm:$0xf]  ;;  %v4869_v21 = vor.u32 %v5571_v19, %v4866_v20  ;;  %v5132_v19 = vld [vmem:[%s8641_s8 + $0x558] sm:$0xf]  ;;  %v5643_v20 = vld [vmem:[%s8641_s8 + $0x588] sm:$0xf0] }
 0x278   :  { %3178 = vmatpush.bf16.msra.mxu1 %v4969_v47  ;;  %v4917_v7 = vor.u32 %v5590_v4, %v4916_v0  ;;  %v5663_v47 = vld [vmem:[%s8641_s8 + $0x62c] sm:$0xf] }
 0x279   :  { %3206 = vmatpush.bf16.msra.mxu3 %v4973_v61 }
 0x27b   :  { %3188 = vmatpush.bf16.msra.mxu2 %v4765_v11  ;;  %3162 = vmatpush.bf16.msra.mxu0 %v4657_v29  ;;  %v4448_v11 = vld [vmem:[%s8641_s8 + $0x8] sm:$0xf] }
 0x27c   :  { %3179 = vmatpush.bf16.msra.mxu1 %v4917_v7  ;;  %v4449_v13 = vor.u32 %v5473_v8, %v4448_v11  ;;  %v4825_v7 = vor.u32 %v5559_v1, %v4822_v57  ;;  %v4770_v11 = vld [vmem:[%s8641_s8 + $0x2b4] sm:$0xf0]  ;;  %v5650_v8 = vld [vmem:[%s8641_s8 + $0x5c4] sm:$0xf]  ;;  %v4976_v1 = vld [vmem:[%s8641_s8 + $0x420] sm:$0xf] }
 0x27d   :  { %3207 = vmatpush.bf16.msra.mxu3 %v4921_v9  ;;  %v5546_v9 = vld [vmem:[%s8641_s8 + $0x284] sm:$0xf]  ;;  %v5604_v57 = vld [vmem:[%s8641_s8 + $0x450] sm:$0xf0] }
 0x27f   :  { %3189 = vmatpush.bf16.msra.mxu2 %v4713_v24  ;;  %3163 = vmatpush.bf16.msra.mxu0 %v4605_v46  ;;  %v4437_v24 = vld [vmem:[%s8639_s6 + $0x1] ss:$2 sm:$0x3] }
 0x280   :  { %3180 = vmatpush.bf16.msra.mxu1 %v4865_v16  ;;  %v1765_v28 = vperm.slane %v4437_v24, 0  ;;  %v1766_v29 = vperm.slane %v4437_v24, 1  ;;  %v4773_v16 = vor.u32 %v5546_v9, %v4770_v11  ;;  %v5134_v24 = vld [vmem:[%s8641_s8 + $0x58c] sm:$0xf0]  ;;  %v5585_v9 = vld [vmem:[%s8641_s8 + $0x3bc] sm:$0xf] }
 0x281   :  { %3208 = vmatpush.bf16.msra.mxu3 %v4869_v21  ;;  %v5533_v21 = vld [vmem:[%s8641_s8 + $0x21c] sm:$0xf]  ;;  %v4926_v11 = vld [vmem:[%s8641_s8 + $0x3ec] sm:$0xf0] }
 0x283   :  { %3190 = vmatpush.bf16.msra.mxu2 %v4661_v34  ;;  %3164 = vmatpush.bf16.msra.mxu0 %v4553_v36  ;;  %v5236_v36 = vld [vmem:[%s8641_s8 + $0x628] sm:$0xf] }
 0x284   :  { %v5237_v4 = vor.u32 %v5669_v10, %v5236_v36 }
 0x287   :  { %3191 = vmatpush.bf16.msra.mxu2 %v4609_v52  ;;  %3165 = vmatpush.bf16.msra.mxu0 %v4501_v3  ;;  %v4821_v3 = vor.u32 %v5565_v35, %v4820_v58  ;;  %v5500_v35 = vld [vmem:[%s8641_s8 + $0x110] sm:$0xf0] }
 0x28b   :  { %3192 = vmatpush.bf16.msra.mxu2 %v4557_v59  ;;  %3166 = vmatpush.bf16.msra.mxu0 %v4449_v13  ;;  %v4769_v13 = vor.u32 %v5552_v6, %v4768_v5 }
 0x28f   :  { %3193 = vmatpush.bf16.msra.mxu2 %v4505_v37  ;;  %v5241_v37 = vor.u32 %v5663_v47, %v5238_v62  ;;  %v5494_v47 = vld [vmem:[%s8641_s8 + $0xe4] sm:$0xf]  ;;  %v4977_v62 = vor.u32 %v5604_v57, %v4976_v1  ;;  %v4726_v57 = vld [vmem:[%s8641_s8 + $0x254] sm:$0xf0] }
 0x290   :  { %v5534_v1 = vld [vmem:[%s8641_s8 + $0x224] sm:$0xf] }
 0x293   :  { %3194 = vmatpush.bf16.msra.mxu2 %v4453_v18  ;;  %v5189_v18 = vor.u32 %v5650_v8, %v5186_v12  ;;  %v4456_v8 = vld [vmem:[%s8641_s8 + $0x10] sm:$0xf] }
 0x2b8   :  { %v1758_v22 = vpop.permute.xlu2 %1757 }
 0x2b9   :  { %v1769_v33 = vmul.f32 %v1765_v28, %v1758_v22  ;;  %v1770_v34 = vmul.f32 %v1766_v29, %v1758_v22  ;;  %v4718_v22 = vld [vmem:[%s8641_s8 + $0x24c] sm:$0xf0] }
 0x2c0   :  { %v1762_v44 = vpop.permute.xlu2 %1761 }
 0x2c1   :  { %v1771_v46 = vmul.f32 %v1765_v28, %v1762_v44  ;;  %v1772_v48 = vmul.f32 %v1766_v29, %v1762_v44  ;;  %v5526_v28 = vld [vmem:[%s8641_s8 + $0x1e0] sm:$0xf0]  ;;  %v4721_v29 = vor.u32 %v5533_v21, %v4718_v22  ;;  %v5624_v44 = vld [vmem:[%s8641_s8 + $0x4f4] sm:$0xf]  ;;  %v4874_v22 = vld [vmem:[%s8641_s8 + $0x384] sm:$0xf0] }
 0x2c2   :  { %v5572_v21 = vld [vmem:[%s8641_s8 + $0x354] sm:$0xf] }
 0x2d0   :  { %v1738_v27 = vpop.permute.xlu1 %1737 }
 0x2d1   :  { %v1750_v39 = vmul.f32 %v1746_v25, %v1738_v27  ;;  %v1751_v30 = vmul.f32 %v1747_v26, %v1738_v27  ;;  %v4664_v27 = vld [vmem:[%s8641_s8 + $0x1b0] sm:$0xf] }
 0x2d3   :  { %v1773_v41 = vadd.f32 %v1769_v33, %v1750_v39  ;;  %v1774_v42 = vadd.f32 %v1770_v34, %v1751_v30  ;;  %v5137_v39 = vor.u32 %v5637_v23, %v5134_v24  ;;  %v5080_v30 = vld [vmem:[%s8641_s8 + $0x4f0] sm:$0xf]  ;;  %v5520_v33 = vld [vmem:[%s8641_s8 + $0x1b4] sm:$0xf]  ;;  %v4666_v34 = vld [vmem:[%s8641_s8 + $0x1e4] sm:$0xf0] }
 0x2d4   :  { %v4828_v23 = vld [vmem:[%s8641_s8 + $0x2f0] sm:$0xf]  ;;  %v5566_v24 = vld [vmem:[%s8641_s8 + $0x320] sm:$0xf0] }
 0x2d5   :  { %v1783_v51 = vadd.f32 %v1779_v43, %v1773_v41  ;;  %v1784_v52 = vadd.f32 %v1780_v38, %v1774_v42  ;;  %v5081_v41 = vor.u32 %v5630_v32, %v5080_v30  ;;  %v4612_v42 = vld [vmem:[%s8641_s8 + $0x148] sm:$0xf]  ;;  %v5664_v30 = vld [vmem:[%s8641_s8 + $0x634] sm:$0xf] }
 0x2d6   :  { %v5246_v32 = vld [vmem:[%s8641_s8 + $0x664] sm:$0xf0] }
 0x2d7   :  { %v1787_v59 = vmax.f32 %v1783_v51, 0.0  ;;  %v1788_v60 = vmax.f32 %v1784_v52, 0.0  ;;  %v5507_v51 = vld [vmem:[%s8641_s8 + $0x14c] sm:$0xf]  ;;  %v4614_v52 = vld [vmem:[%s8641_s8 + $0x17c] sm:$0xf0] }
 0x2d8   :  { %v1743_v45 = vpop.permute.xlu1 %1742  ;;  %v4617_v36 = vor.u32 %v5507_v51, %v4614_v52  ;;  %v5651_v51 = vld [vmem:[%s8641_s8 + $0x5cc] sm:$0xf]  ;;  %v5194_v52 = vld [vmem:[%s8641_s8 + $0x5fc] sm:$0xf0] }
 0x2d9   :  { %v1752_v49 = vmul.f32 %v1746_v25, %v1743_v45  ;;  %v1753_v50 = vmul.f32 %v1747_v26, %v1743_v45  ;;  %v4717_v25 = vor.u32 %v5539_v17, %v4716_v15  ;;  %v5133_v26 = vor.u32 %v5643_v20, %v5132_v19  ;;  %v5513_v45 = vld [vmem:[%s8641_s8 + $0x178] sm:$0xf0]  ;;  %v4872_v15 = vld [vmem:[%s8641_s8 + $0x350] sm:$0xf]  ;;  %v5578_v17 = vld [vmem:[%s8641_s8 + $0x380] sm:$0xf0] }
 0x2da   :  { %v4613_v58 = vor.u32 %v5513_v45, %v4612_v42  ;;  %v5468_v19 = vld [vmem:[%s8641_s8 + $0x14] sm:$0xf]  ;;  %v4458_v20 = vld [vmem:[%s8641_s8 + $0x44] sm:$0xf0]  ;;  %v5249_v45 = vor.u32 %v5664_v30, %v5246_v32  ;;  %v5599_v30 = vld [vmem:[%s8641_s8 + $0x42c] sm:$0xf] }
 0x2db   :  { %v1775_v53 = vadd.f32 %v1771_v46, %v1752_v49  ;;  %v1776_v54 = vadd.f32 %v1772_v48, %v1753_v50  ;;  %v4669_v46 = vor.u32 %v5520_v33, %v4666_v34  ;;  %v5028_v49 = vld [vmem:[%s8641_s8 + $0x488] sm:$0xf]  ;;  %v5617_v50 = vld [vmem:[%s8641_s8 + $0x4b8] sm:$0xf0]  ;;  %v4461_v33 = vor.u32 %v5468_v19, %v4458_v20  ;;  %v5612_v19 = vld [vmem:[%s8641_s8 + $0x494] sm:$0xf] }
 0x2dc   :  { %v4877_v34 = vor.u32 %v5572_v21, %v4874_v22  ;;  %v5038_v20 = vld [vmem:[%s8641_s8 + $0x4c4] sm:$0xf0]  ;;  %v4986_v32 = vld [vmem:[%s8641_s8 + $0x45c] sm:$0xf0] }
 0x2dd   :  { %v1785_v55 = vadd.f32 %v1779_v43, %v1775_v53  ;;  %v1786_v56 = vadd.f32 %v1780_v38, %v1776_v54  ;;  %v5082_v43 = vld [vmem:[%s8641_s8 + $0x524] sm:$0xf0]  ;;  %v4665_v38 = vor.u32 %v5526_v28, %v4664_v27  ;;  %v5611_v53 = vld [vmem:[%s8641_s8 + $0x48c] sm:$0xf]  ;;  %v5030_v54 = vld [vmem:[%s8641_s8 + $0x4bc] sm:$0xf0] }
 0x2de   :  { %v5085_v48 = vor.u32 %v5624_v44, %v5082_v43  ;;  %v5033_v10 = vor.u32 %v5611_v53, %v5030_v54  ;;  %v5560_v27 = vld [vmem:[%s8641_s8 + $0x2f4] sm:$0xf]  ;;  %v4829_v44 = vor.u32 %v5566_v24, %v4828_v23  ;;  %v4568_v23 = vld [vmem:[%s8641_s8 + $0xe8] sm:$0xf]  ;;  %v5501_v24 = vld [vmem:[%s8641_s8 + $0x118] sm:$0xf0] }
 0x2df   :  { %v1789_v40 = vmax.f32 %v1785_v55, 0.0  ;;  %v1790_v61 = vmax.f32 %v1786_v56, 0.0  ;;  %v5029_v55 = vor.u32 %v5617_v50, %v5028_v49  ;;  %v4560_v56 = vld [vmem:[%s8641_s8 + $0xe0] sm:$0xf]  ;;  %v5547_v49 = vld [vmem:[%s8641_s8 + $0x28c] sm:$0xf] }
 0x2e0   :  { %v4778_v50 = vld [vmem:[%s8641_s8 + $0x2bc] sm:$0xf0] }
 0x2e1   :  { %v7737_v63 = vpack.c.bf16 %v1789_v40, %v1787_v59  ;;  %v7739_v0 = vpack.c.bf16 %v1790_v61, %v1788_v60  ;;  %v4562_v59 = vld [vmem:[%s8641_s8 + $0x114] sm:$0xf0]  ;;  %v5598_v60 = vld [vmem:[%s8641_s8 + $0x424] sm:$0xf]  ;;  %v4561_v61 = vor.u32 %v5500_v35, %v4560_v56  ;;  %v4781_v56 = vor.u32 %v5547_v49, %v4778_v50 }
 0x2e2   :  { %v4978_v40 = vld [vmem:[%s8641_s8 + $0x454] sm:$0xf0]  ;;  %v4565_v5 = vor.u32 %v5494_v47, %v4562_v59  ;;  %v5197_v35 = vor.u32 %v5651_v51, %v5194_v52  ;;  %v5638_v47 = vld [vmem:[%s8641_s8 + $0x564] sm:$0xf] }
 0x2e3   :  { %3111 = vmatmul.bf16.vlgmr.msrb.gmra.mxu0 %v7737_v63  ;;  %3125 = vmatmul.bf16.vlgmr.msrb.gmra.mxu1 %v7739_v0  ;;  %v4981_v6 = vor.u32 %v5598_v60, %v4978_v40  ;;  %v5142_v59 = vld [vmem:[%s8641_s8 + $0x594] sm:$0xf0]  ;;  %v5586_v49 = vld [vmem:[%s8641_s8 + $0x3c4] sm:$0xf] }
 0x2e4   :  { %3139 = vmatmul.bf16.vlgmr.msrb.gmra.mxu2 %v7737_v63  ;;  %3153 = vmatmul.bf16.vlgmr.msrb.gmra.mxu3 %v7739_v0  ;;  %v4934_v50 = vld [vmem:[%s8641_s8 + $0x3f4] sm:$0xf0] }
 0x2e5   :  { %3215 = vmatpush.bf16.msrb.mxu0 %v4821_v3  ;;  %3229 = vmatpush.bf16.msrb.mxu1 %v5237_v4  ;;  %v4508_v3 = vld [vmem:[%s8641_s8 + $0x78] sm:$0xf]  ;;  %v5487_v4 = vld [vmem:[%s8641_s8 + $0xa8] sm:$0xf0] }
 0x2e6   :  { %3243 = vmatpush.bf16.msrb.mxu2 %v4825_v7  ;;  %3257 = vmatpush.bf16.msrb.mxu3 %v5241_v37  ;;  %v4924_v7 = vld [vmem:[%s8641_s8 + $0x3b8] sm:$0xf]  ;;  %v5591_v37 = vld [vmem:[%s8641_s8 + $0x3e8] sm:$0xf0]  ;;  %v4509_v12 = vor.u32 %v5487_v4, %v4508_v3  ;;  %v4729_v3 = vor.u32 %v5534_v1, %v4726_v57  ;;  %v5145_v4 = vor.u32 %v5638_v47, %v5142_v59  ;;  %v5573_v1 = vld [vmem:[%s8641_s8 + $0x35c] sm:$0xf] }
 0x2e7   :  { %v4464_v51 = vld [vmem:[%s8641_s8 + $0x18] sm:$0xf]  ;;  %v4882_v57 = vld [vmem:[%s8641_s8 + $0x38c] sm:$0xf0]  ;;  %v5567_v59 = vld [vmem:[%s8641_s8 + $0x328] sm:$0xf0] }
 0x2e8   :  { %v4836_v47 = vld [vmem:[%s8641_s8 + $0x2f8] sm:$0xf] }
 0x2e9   :  { %3216 = vmatpush.bf16.msrb.mxu0 %v4769_v13  ;;  %3230 = vmatpush.bf16.msrb.mxu1 %v5185_v14  ;;  %v4925_v13 = vor.u32 %v5591_v37, %v4924_v7  ;;  %v5474_v14 = vld [vmem:[%s8641_s8 + $0x40] sm:$0xf0]  ;;  %v5521_v7 = vld [vmem:[%s8641_s8 + $0x1bc] sm:$0xf]  ;;  %v4674_v37 = vld [vmem:[%s8641_s8 + $0x1ec] sm:$0xf0] }
 0x2ea   :  { %3244 = vmatpush.bf16.msrb.mxu2 %v4773_v16  ;;  %3258 = vmatpush.bf16.msrb.mxu3 %v5189_v18  ;;  %v4513_v16 = vor.u32 %v5481_v2, %v4510_v31  ;;  %v4929_v18 = vor.u32 %v5585_v9, %v4926_v11  ;;  %v4457_v28 = vor.u32 %v5474_v14, %v4456_v8  ;;  %v5625_v2 = vld [vmem:[%s8641_s8 + $0x4fc] sm:$0xf]  ;;  %v5090_v31 = vld [vmem:[%s8641_s8 + $0x52c] sm:$0xf0] }
 0x2eb   :  { %v4620_v8 = vld [vmem:[%s8641_s8 + $0x150] sm:$0xf]  ;;  %v5093_v14 = vor.u32 %v5625_v2, %v5090_v31  ;;  %v4837_v2 = vor.u32 %v5567_v59, %v4836_v47  ;;  %v5502_v59 = vld [vmem:[%s8641_s8 + $0x120] sm:$0xf0] }
 0x2ec   :  { %v4576_v47 = vld [vmem:[%s8641_s8 + $0xf0] sm:$0xf] }
 0x2ed   :  { %3217 = vmatpush.bf16.msrb.mxu0 %v4717_v25  ;;  %3231 = vmatpush.bf16.msrb.mxu1 %v5133_v26  ;;  %v5244_v25 = vld [vmem:[%s8641_s8 + $0x630] sm:$0xf]  ;;  %v5670_v26 = vld [vmem:[%s8641_s8 + $0x660] sm:$0xf0] }
 0x2ee   :  { %3245 = vmatpush.bf16.msrb.mxu2 %v4721_v29  ;;  %3259 = vmatpush.bf16.msrb.mxu3 %v5137_v39  ;;  %v4873_v29 = vor.u32 %v5578_v17, %v4872_v15  ;;  %v4830_v39 = vld [vmem:[%s8641_s8 + $0x324] sm:$0xf0]  ;;  %v5245_v43 = vor.u32 %v5670_v26, %v5244_v25  ;;  %v5036_v15 = vld [vmem:[%s8641_s8 + $0x490] sm:$0xf]  ;;  %v5618_v17 = vld [vmem:[%s8641_s8 + $0x4c0] sm:$0xf0]  ;;  %v5041_v26 = vor.u32 %v5612_v19, %v5038_v20 }
 0x2ef   :  { %v4833_v42 = vor.u32 %v5560_v27, %v4830_v39  ;;  %v5037_v22 = vor.u32 %v5618_v17, %v5036_v15  ;;  %v4984_v27 = vld [vmem:[%s8641_s8 + $0x428] sm:$0xf]  ;;  %v4570_v39 = vld [vmem:[%s8641_s8 + $0x11c] sm:$0xf0]  ;;  %v5548_v15 = vld [vmem:[%s8641_s8 + $0x294] sm:$0xf] }
 0x2f0   :  { %v4786_v17 = vld [vmem:[%s8641_s8 + $0x2c4] sm:$0xf0] }
 0x2f1   :  { %3218 = vmatpush.bf16.msrb.mxu0 %v4665_v38  ;;  %3232 = vmatpush.bf16.msrb.mxu1 %v5081_v41  ;;  %v4776_v38 = vld [vmem:[%s8641_s8 + $0x288] sm:$0xf]  ;;  %v5553_v41 = vld [vmem:[%s8641_s8 + $0x2b8] sm:$0xf0] }
 0x2f2   :  { %3246 = vmatpush.bf16.msrb.mxu2 %v4669_v46  ;;  %3260 = vmatpush.bf16.msrb.mxu3 %v5085_v48  ;;  %v5192_v46 = vld [vmem:[%s8641_s8 + $0x5c8] sm:$0xf]  ;;  %v5657_v48 = vld [vmem:[%s8641_s8 + $0x5f8] sm:$0xf0]  ;;  %v4777_v53 = vor.u32 %v5553_v41, %v4776_v38  ;;  %v4989_v41 = vor.u32 %v5599_v30, %v4986_v32 }
 0x2f3   :  { %3167 = vmatmul.bf16.vlgmr.msra.gmra.mxu0 %v7737_v63  ;;  %3181 = vmatmul.bf16.vlgmr.msra.gmra.mxu1 %v7739_v0  ;;  %v5193_v54 = vor.u32 %v5657_v48, %v5192_v46  ;;  %v5482_v46 = vld [vmem:[%s8641_s8 + $0x84] sm:$0xf]  ;;  %v4518_v48 = vld [vmem:[%s8641_s8 + $0xb4] sm:$0xf0] }
 0x2f4   :  { %3195 = vmatmul.bf16.vlgmr.msra.gmra.mxu2 %v7737_v63  ;;  %3209 = vmatmul.bf16.vlgmr.msra.gmra.mxu3 %v7739_v0 }
 0x2f5   :  { %3219 = vmatpush.bf16.msrb.mxu0 %v4613_v58  ;;  %3233 = vmatpush.bf16.msrb.mxu1 %v5029_v55  ;;  %v4724_v58 = vld [vmem:[%s8641_s8 + $0x220] sm:$0xf]  ;;  %v5540_v55 = vld [vmem:[%s8641_s8 + $0x250] sm:$0xf0] }
 0x2f6   :  { %3247 = vmatpush.bf16.msrb.mxu2 %v4617_v36  ;;  %3261 = vmatpush.bf16.msrb.mxu3 %v5033_v10  ;;  %v5140_v36 = vld [vmem:[%s8641_s8 + $0x560] sm:$0xf]  ;;  %v5644_v10 = vld [vmem:[%s8641_s8 + $0x590] sm:$0xf0]  ;;  %v4725_v60 = vor.u32 %v5540_v55, %v4724_v58  ;;  %v4880_v58 = vld [vmem:[%s8641_s8 + $0x358] sm:$0xf] }
 0x2f7   :  { %v5141_v40 = vor.u32 %v5644_v10, %v5140_v36  ;;  %v5579_v55 = vld [vmem:[%s8641_s8 + $0x388] sm:$0xf0]  ;;  %v5469_v36 = vld [vmem:[%s8641_s8 + $0x1c] sm:$0xf]  ;;  %v4466_v10 = vld [vmem:[%s8641_s8 + $0x4c] sm:$0xf0] }
 0x2f9   :  { %3220 = vmatpush.bf16.msrb.mxu0 %v4561_v61  ;;  %3234 = vmatpush.bf16.msrb.mxu1 %v4977_v62  ;;  %v4672_v61 = vld [vmem:[%s8641_s8 + $0x1b8] sm:$0xf]  ;;  %v5527_v62 = vld [vmem:[%s8641_s8 + $0x1e8] sm:$0xf0] }
 0x2fa   :  { %3248 = vmatpush.bf16.msrb.mxu2 %v4565_v5  ;;  %3262 = vmatpush.bf16.msrb.mxu3 %v4981_v6  ;;  %v5088_v5 = vld [vmem:[%s8641_s8 + $0x4f8] sm:$0xf]  ;;  %v5631_v6 = vld [vmem:[%s8641_s8 + $0x528] sm:$0xf0]  ;;  %v4673_v9 = vor.u32 %v5527_v62, %v4672_v61  ;;  %v5561_v61 = vld [vmem:[%s8641_s8 + $0x2fc] sm:$0xf] }
 0x2fb   :  { %v5089_v11 = vor.u32 %v5631_v6, %v5088_v5  ;;  %v5665_v5 = vld [vmem:[%s8641_s8 + $0x63c] sm:$0xf]  ;;  %v5254_v6 = vld [vmem:[%s8641_s8 + $0x66c] sm:$0xf0] }
 0x2fd   :  { %3221 = vmatpush.bf16.msrb.mxu0 %v4509_v12  ;;  %3235 = vmatpush.bf16.msrb.mxu1 %v4925_v13  ;;  %v5514_v12 = vld [vmem:[%s8641_s8 + $0x180] sm:$0xf0]  ;;  %v4677_v13 = vor.u32 %v5521_v7, %v4674_v37  ;;  %v4469_v7 = vor.u32 %v5469_v36, %v4466_v10  ;;  %v4885_v37 = vor.u32 %v5573_v1, %v4882_v57  ;;  %v5613_v36 = vld [vmem:[%s8641_s8 + $0x49c] sm:$0xf]  ;;  %v5046_v10 = vld [vmem:[%s8641_s8 + $0x4cc] sm:$0xf0] }
 0x2fe   :  { %3249 = vmatpush.bf16.msrb.mxu2 %v4513_v16  ;;  %3263 = vmatpush.bf16.msrb.mxu3 %v4929_v18  ;;  %v5508_v16 = vld [vmem:[%s8641_s8 + $0x154] sm:$0xf]  ;;  %v4622_v18 = vld [vmem:[%s8641_s8 + $0x184] sm:$0xf0]  ;;  %v4621_v21 = vor.u32 %v5514_v12, %v4620_v8  ;;  %v5257_v12 = vor.u32 %v5665_v5, %v5254_v6 }
 0x2ff   :  { %v4625_v25 = vor.u32 %v5508_v16, %v4622_v18  ;;  %v5652_v16 = vld [vmem:[%s8641_s8 + $0x5d4] sm:$0xf]  ;;  %v5202_v18 = vld [vmem:[%s8641_s8 + $0x604] sm:$0xf0] }
 0x300   :  { %v5600_v5 = vld [vmem:[%s8641_s8 + $0x434] sm:$0xf]  ;;  %v4994_v6 = vld [vmem:[%s8641_s8 + $0x464] sm:$0xf0] }
 0x301   :  { %3222 = vmatpush.bf16.msrb.mxu0 %v4457_v28  ;;  %3236 = vmatpush.bf16.msrb.mxu1 %v4873_v29  ;;  %v5605_v28 = vld [vmem:[%s8641_s8 + $0x458] sm:$0xf0]  ;;  %v5495_v29 = vld [vmem:[%s8641_s8 + $0xec] sm:$0xf] }
 0x302   :  { %3250 = vmatpush.bf16.msrb.mxu2 %v4461_v33  ;;  %3264 = vmatpush.bf16.msrb.mxu3 %v4877_v34  ;;  %v4569_v33 = vor.u32 %v5501_v24, %v4568_v23  ;;  %v4985_v34 = vor.u32 %v5605_v28, %v4984_v27  ;;  %v4573_v38 = vor.u32 %v5495_v29, %v4570_v39  ;;  %v5535_v27 = vld [vmem:[%s8641_s8 + $0x22c] sm:$0xf]  ;;  %v4734_v28 = vld [vmem:[%s8641_s8 + $0x25c] sm:$0xf0] }
 0x303   :  { %v4789_v23 = vor.u32 %v5548_v15, %v4786_v17  ;;  %v5205_v24 = vor.u32 %v5652_v16, %v5202_v18  ;;  %v5639_v29 = vld [vmem:[%s8641_s8 + $0x56c] sm:$0xf]  ;;  %v5150_v39 = vld [vmem:[%s8641_s8 + $0x59c] sm:$0xf0] }
 0x304   :  { %3223 = vmatmul.bf16.vlgmr.msrb.gmra.mxu0 %v7737_v63  ;;  %3237 = vmatmul.bf16.vlgmr.msrb.gmra.mxu1 %v7739_v0  ;;  %v5587_v15 = vld [vmem:[%s8641_s8 + $0x3cc] sm:$0xf]  ;;  %v4942_v17 = vld [vmem:[%s8641_s8 + $0x3fc] sm:$0xf0] }
 0x305   :  { %3271 = vmatpush.bf16.msra.mxu0 %v4829_v44  ;;  %3285 = vmatpush.bf16.msra.mxu1 %v5245_v43  ;;  %v4516_v44 = vld [vmem:[%s8641_s8 + $0x80] sm:$0xf]  ;;  %v5488_v43 = vld [vmem:[%s8641_s8 + $0xb0] sm:$0xf0] }
 0x306   :  { %3299 = vmatpush.bf16.msra.mxu2 %v4833_v42  ;;  %3313 = vmatpush.bf16.msra.mxu3 %v5249_v45  ;;  %v4932_v42 = vld [vmem:[%s8641_s8 + $0x3c0] sm:$0xf]  ;;  %v5592_v45 = vld [vmem:[%s8641_s8 + $0x3f0] sm:$0xf0]  ;;  %v4517_v52 = vor.u32 %v5488_v43, %v4516_v44  ;;  %v4737_v44 = vor.u32 %v5535_v27, %v4734_v28  ;;  %v5153_v43 = vor.u32 %v5639_v29, %v5150_v39  ;;  %v5574_v27 = vld [vmem:[%s8641_s8 + $0x364] sm:$0xf] }
 0x307   :  { %3251 = vmatmul.bf16.vlgmr.msrb.gmra.mxu2 %v7737_v63  ;;  %3265 = vmatmul.bf16.vlgmr.msrb.gmra.mxu3 %v7739_v0  ;;  %v4472_v16 = vld [vmem:[%s8641_s8 + $0x20] sm:$0xf]  ;;  %v4890_v28 = vld [vmem:[%s8641_s8 + $0x394] sm:$0xf0]  ;;  %v5568_v39 = vld [vmem:[%s8641_s8 + $0x330] sm:$0xf0] }
 0x308   :  { %v4844_v29 = vld [vmem:[%s8641_s8 + $0x300] sm:$0xf] }
 0x309   :  { %3272 = vmatpush.bf16.msra.mxu0 %v4777_v53  ;;  %3286 = vmatpush.bf16.msra.mxu1 %v5193_v54  ;;  %v4933_v53 = vor.u32 %v5592_v45, %v4932_v42  ;;  %v5475_v54 = vld [vmem:[%s8641_s8 + $0x48] sm:$0xf0]  ;;  %v5522_v42 = vld [vmem:[%s8641_s8 + $0x1c4] sm:$0xf]  ;;  %v4682_v45 = vld [vmem:[%s8641_s8 + $0x1f4] sm:$0xf0] }
 0x30a   :  { %3300 = vmatpush.bf16.msra.mxu2 %v4781_v56  ;;  %3314 = vmatpush.bf16.msra.mxu3 %v5197_v35  ;;  %v4521_v56 = vor.u32 %v5482_v46, %v4518_v48  ;;  %v4937_v35 = vor.u32 %v5586_v49, %v4934_v50  ;;  %v4465_v62 = vor.u32 %v5475_v54, %v4464_v51  ;;  %v5626_v46 = vld [vmem:[%s8641_s8 + $0x504] sm:$0xf]  ;;  %v5098_v48 = vld [vmem:[%s8641_s8 + $0x534] sm:$0xf0] }
 0x30b   :  { %v4628_v51 = vld [vmem:[%s8641_s8 + $0x158] sm:$0xf]  ;;  %v5101_v54 = vor.u32 %v5626_v46, %v5098_v48  ;;  %v4845_v46 = vor.u32 %v5568_v39, %v4844_v29  ;;  %v5503_v39 = vld [vmem:[%s8641_s8 + $0x128] sm:$0xf0] }
 0x30c   :  { %v4584_v29 = vld [vmem:[%s8641_s8 + $0xf8] sm:$0xf] }
 0x30d   :  { %3273 = vmatpush.bf16.msra.mxu0 %v4725_v60  ;;  %3287 = vmatpush.bf16.msra.mxu1 %v5141_v40  ;;  %v5252_v60 = vld [vmem:[%s8641_s8 + $0x638] sm:$0xf]  ;;  %v5671_v40 = vld [vmem:[%s8641_s8 + $0x668] sm:$0xf0] }
 0x30e   :  { %3301 = vmatpush.bf16.msra.mxu2 %v4729_v3  ;;  %3315 = vmatpush.bf16.msra.mxu3 %v5145_v4  ;;  %v4881_v3 = vor.u32 %v5579_v55, %v4880_v58  ;;  %v4838_v4 = vld [vmem:[%s8641_s8 + $0x32c] sm:$0xf0]  ;;  %v5253_v31 = vor.u32 %v5671_v40, %v5252_v60  ;;  %v5044_v58 = vld [vmem:[%s8641_s8 + $0x498] sm:$0xf]  ;;  %v5619_v55 = vld [vmem:[%s8641_s8 + $0x4c8] sm:$0xf0]  ;;  %v5049_v40 = vor.u32 %v5613_v36, %v5046_v10 }
 0x30f   :  { %v4841_v8 = vor.u32 %v5561_v61, %v4838_v4  ;;  %v5045_v57 = vor.u32 %v5619_v55, %v5044_v58  ;;  %v4992_v61 = vld [vmem:[%s8641_s8 + $0x430] sm:$0xf]  ;;  %v4578_v4 = vld [vmem:[%s8641_s8 + $0x124] sm:$0xf0]  ;;  %v5549_v58 = vld [vmem:[%s8641_s8 + $0x29c] sm:$0xf] }
 0x310   :  { %v4794_v55 = vld [vmem:[%s8641_s8 + $0x2cc] sm:$0xf0] }
 0x311   :  { %3274 = vmatpush.bf16.msra.mxu0 %v4673_v9  ;;  %3288 = vmatpush.bf16.msra.mxu1 %v5089_v11  ;;  %v4784_v9 = vld [vmem:[%s8641_s8 + $0x290] sm:$0xf]  ;;  %v5554_v11 = vld [vmem:[%s8641_s8 + $0x2c0] sm:$0xf0] }
 0x312   :  { %3302 = vmatpush.bf16.msra.mxu2 %v4677_v13  ;;  %3316 = vmatpush.bf16.msra.mxu3 %v5093_v14  ;;  %v5200_v13 = vld [vmem:[%s8641_s8 + $0x5d0] sm:$0xf]  ;;  %v5658_v14 = vld [vmem:[%s8641_s8 + $0x600] sm:$0xf0]  ;;  %v4785_v19 = vor.u32 %v5554_v11, %v4784_v9  ;;  %v4997_v11 = vor.u32 %v5600_v5, %v4994_v6 }
 0x313   :  { %v5201_v20 = vor.u32 %v5658_v14, %v5200_v13  ;;  %v5483_v13 = vld [vmem:[%s8641_s8 + $0x8c] sm:$0xf]  ;;  %v4526_v14 = vld [vmem:[%s8641_s8 + $0xbc] sm:$0xf0] }
 0x315   :  { %3275 = vmatpush.bf16.msra.mxu0 %v4621_v21  ;;  %3289 = vmatpush.bf16.msra.mxu1 %v5037_v22  ;;  %v4732_v21 = vld [vmem:[%s8641_s8 + $0x228] sm:$0xf]  ;;  %v5541_v22 = vld [vmem:[%s8641_s8 + $0x258] sm:$0xf0] }
 0x316   :  { %3303 = vmatpush.bf16.msra.mxu2 %v4625_v25  ;;  %3317 = vmatpush.bf16.msra.mxu3 %v5041_v26  ;;  %v5148_v25 = vld [vmem:[%s8641_s8 + $0x568] sm:$0xf]  ;;  %v5645_v26 = vld [vmem:[%s8641_s8 + $0x598] sm:$0xf0]  ;;  %v4733_v30 = vor.u32 %v5541_v22, %v4732_v21  ;;  %v4888_v21 = vld [vmem:[%s8641_s8 + $0x360] sm:$0xf] }
 0x317   :  { %v5149_v32 = vor.u32 %v5645_v26, %v5148_v25  ;;  %v5580_v22 = vld [vmem:[%s8641_s8 + $0x390] sm:$0xf0]  ;;  %v5470_v25 = vld [vmem:[%s8641_s8 + $0x24] sm:$0xf]  ;;  %v4474_v26 = vld [vmem:[%s8641_s8 + $0x54] sm:$0xf0] }
 0x319   :  { %3276 = vmatpush.bf16.msra.mxu0 %v4569_v33  ;;  %3290 = vmatpush.bf16.msra.mxu1 %v4985_v34  ;;  %v4680_v33 = vld [vmem:[%s8641_s8 + $0x1c0] sm:$0xf]  ;;  %v5528_v34 = vld [vmem:[%s8641_s8 + $0x1f0] sm:$0xf0] }
 0x31a   :  { %3304 = vmatpush.bf16.msra.mxu2 %v4573_v38  ;;  %3318 = vmatpush.bf16.msra.mxu3 %v4989_v41  ;;  %v5096_v38 = vld [vmem:[%s8641_s8 + $0x500] sm:$0xf]  ;;  %v5632_v41 = vld [vmem:[%s8641_s8 + $0x530] sm:$0xf0]  ;;  %v4681_v49 = vor.u32 %v5528_v34, %v4680_v33  ;;  %v5562_v33 = vld [vmem:[%s8641_s8 + $0x304] sm:$0xf] }
 0x31b   :  { %v5097_v50 = vor.u32 %v5632_v41, %v5096_v38  ;;  %v5666_v38 = vld [vmem:[%s8641_s8 + $0x644] sm:$0xf]  ;;  %v5262_v41 = vld [vmem:[%s8641_s8 + $0x674] sm:$0xf0] }
 0x31d   :  { %3277 = vmatpush.bf16.msra.mxu0 %v4517_v52  ;;  %3291 = vmatpush.bf16.msra.mxu1 %v4933_v53  ;;  %v5515_v52 = vld [vmem:[%s8641_s8 + $0x188] sm:$0xf0]  ;;  %v4685_v53 = vor.u32 %v5522_v42, %v4682_v45  ;;  %v4477_v42 = vor.u32 %v5470_v25, %v4474_v26  ;;  %v4893_v45 = vor.u32 %v5574_v27, %v4890_v28  ;;  %v5614_v25 = vld [vmem:[%s8641_s8 + $0x4a4] sm:$0xf]  ;;  %v5054_v26 = vld [vmem:[%s8641_s8 + $0x4d4] sm:$0xf0] }
 0x31e   :  { %3305 = vmatpush.bf16.msra.mxu2 %v4521_v56  ;;  %3319 = vmatpush.bf16.msra.mxu3 %v4937_v35  ;;  %v5509_v56 = vld [vmem:[%s8641_s8 + $0x15c] sm:$0xf]  ;;  %v4630_v35 = vld [vmem:[%s8641_s8 + $0x18c] sm:$0xf0]  ;;  %v4629_v1 = vor.u32 %v5515_v52, %v4628_v51  ;;  %v5265_v52 = vor.u32 %v5666_v38, %v5262_v41 }
 0x31f   :  { %v4633_v60 = vor.u32 %v5509_v56, %v4630_v35  ;;  %v5653_v56 = vld [vmem:[%s8641_s8 + $0x5dc] sm:$0xf]  ;;  %v5210_v35 = vld [vmem:[%s8641_s8 + $0x60c] sm:$0xf0] }
 0x320   :  { %v5601_v38 = vld [vmem:[%s8641_s8 + $0x43c] sm:$0xf]  ;;  %v5002_v41 = vld [vmem:[%s8641_s8 + $0x46c] sm:$0xf0] }
 0x321   :  { %3278 = vmatpush.bf16.msra.mxu0 %v4465_v62  ;;  %3292 = vmatpush.bf16.msra.mxu1 %v4881_v3  ;;  %v5606_v62 = vld [vmem:[%s8641_s8 + $0x460] sm:$0xf0]  ;;  %v5496_v3 = vld [vmem:[%s8641_s8 + $0xf4] sm:$0xf] }
 0x322   :  { %3306 = vmatpush.bf16.msra.mxu2 %v4469_v7  ;;  %3320 = vmatpush.bf16.msra.mxu3 %v4885_v37  ;;  %v4577_v7 = vor.u32 %v5502_v59, %v4576_v47  ;;  %v4993_v37 = vor.u32 %v5606_v62, %v4992_v61  ;;  %v4581_v9 = vor.u32 %v5496_v3, %v4578_v4  ;;  %v5536_v61 = vld [vmem:[%s8641_s8 + $0x234] sm:$0xf]  ;;  %v4742_v62 = vld [vmem:[%s8641_s8 + $0x264] sm:$0xf0] }
 0x323   :  { %v4797_v47 = vor.u32 %v5549_v58, %v4794_v55  ;;  %v5213_v59 = vor.u32 %v5653_v56, %v5210_v35  ;;  %v5640_v3 = vld [vmem:[%s8641_s8 + $0x574] sm:$0xf]  ;;  %v5158_v4 = vld [vmem:[%s8641_s8 + $0x5a4] sm:$0xf0] }
 0x324   :  { %3279 = vmatmul.bf16.vlgmr.msra.gmra.mxu0 %v7737_v63  ;;  %3293 = vmatmul.bf16.vlgmr.msra.gmra.mxu1 %v7739_v0  ;;  %v5588_v58 = vld [vmem:[%s8641_s8 + $0x3d4] sm:$0xf]  ;;  %v4950_v55 = vld [vmem:[%s8641_s8 + $0x404] sm:$0xf0] }
 0x325   :  { %3327 = vmatpush.bf16.msrb.mxu0 %v4837_v2  ;;  %3341 = vmatpush.bf16.msrb.mxu1 %v5253_v31  ;;  %v4524_v2 = vld [vmem:[%s8641_s8 + $0x88] sm:$0xf]  ;;  %v5489_v31 = vld [vmem:[%s8641_s8 + $0xb8] sm:$0xf0] }
 0x326   :  { %3355 = vmatpush.bf16.msrb.mxu2 %v4841_v8  ;;  %3369 = vmatpush.bf16.msrb.mxu3 %v5257_v12  ;;  %v4940_v8 = vld [vmem:[%s8641_s8 + $0x3c8] sm:$0xf]  ;;  %v5593_v12 = vld [vmem:[%s8641_s8 + $0x3f8] sm:$0xf0]  ;;  %v4525_v18 = vor.u32 %v5489_v31, %v4524_v2  ;;  %v4745_v2 = vor.u32 %v5536_v61, %v4742_v62  ;;  %v5161_v31 = vor.u32 %v5640_v3, %v5158_v4  ;;  %v5575_v61 = vld [vmem:[%s8641_s8 + $0x36c] sm:$0xf] }
 0x327   :  { %3307 = vmatmul.bf16.vlgmr.msra.gmra.mxu2 %v7737_v63  ;;  %3321 = vmatmul.bf16.vlgmr.msra.gmra.mxu3 %v7739_v0  ;;  %v4898_v62 = vld [vmem:[%s8641_s8 + $0x39c] sm:$0xf0]  ;;  %v4852_v3 = vld [vmem:[%s8641_s8 + $0x308] sm:$0xf]  ;;  %v5569_v4 = vld [vmem:[%s8641_s8 + $0x338] sm:$0xf0] }
 0x329   :  { %3328 = vmatpush.bf16.msrb.mxu0 %v4785_v19  ;;  %3342 = vmatpush.bf16.msrb.mxu1 %v5201_v20  ;;  %v4941_v19 = vor.u32 %v5593_v12, %v4940_v8  ;;  %v5476_v20 = vld [vmem:[%s8641_s8 + $0x50] sm:$0xf0]  ;;  %v5523_v8 = vld [vmem:[%s8641_s8 + $0x1cc] sm:$0xf]  ;;  %v4690_v12 = vld [vmem:[%s8641_s8 + $0x1fc] sm:$0xf0] }
 0x32a   :  { %3356 = vmatpush.bf16.msrb.mxu2 %v4789_v23  ;;  %3370 = vmatpush.bf16.msrb.mxu3 %v5205_v24  ;;  %v4529_v23 = vor.u32 %v5483_v13, %v4526_v14  ;;  %v4945_v24 = vor.u32 %v5587_v15, %v4942_v17  ;;  %v4473_v34 = vor.u32 %v5476_v20, %v4472_v16  ;;  %v5627_v13 = vld [vmem:[%s8641_s8 + $0x50c] sm:$0xf]  ;;  %v5106_v14 = vld [vmem:[%s8641_s8 + $0x53c] sm:$0xf0] }
 0x32b   :  { %v4636_v16 = vld [vmem:[%s8641_s8 + $0x160] sm:$0xf]  ;;  %v5109_v20 = vor.u32 %v5627_v13, %v5106_v14  ;;  %v5660_v14 = vld [vmem:[%s8641_s8 + $0x610] sm:$0xf0] }
 0x32c   :  { %v5216_v13 = vld [vmem:[%s8641_s8 + $0x5e0] sm:$0xf] }
 0x32d   :  { %3329 = vmatpush.bf16.msrb.mxu0 %v4733_v30  ;;  %3343 = vmatpush.bf16.msrb.mxu1 %v5149_v32  ;;  %v5260_v30 = vld [vmem:[%s8641_s8 + $0x640] sm:$0xf]  ;;  %v5672_v32 = vld [vmem:[%s8641_s8 + $0x670] sm:$0xf0] }
 0x32e   :  { %3357 = vmatpush.bf16.msrb.mxu2 %v4737_v44  ;;  %3371 = vmatpush.bf16.msrb.mxu3 %v5153_v43  ;;  %v4889_v44 = vor.u32 %v5580_v22, %v4888_v21  ;;  %v4846_v43 = vld [vmem:[%s8641_s8 + $0x334] sm:$0xf0]  ;;  %v5261_v48 = vor.u32 %v5672_v32, %v5260_v30  ;;  %v5052_v21 = vld [vmem:[%s8641_s8 + $0x4a0] sm:$0xf]  ;;  %v5620_v22 = vld [vmem:[%s8641_s8 + $0x4d0] sm:$0xf0]  ;;  %v5057_v32 = vor.u32 %v5614_v25, %v5054_v26 }
 0x32f   :  { %v4849_v51 = vor.u32 %v5562_v33, %v4846_v43  ;;  %v5053_v28 = vor.u32 %v5620_v22, %v5052_v21  ;;  %v5000_v33 = vld [vmem:[%s8641_s8 + $0x438] sm:$0xf]  ;;  %v4586_v43 = vld [vmem:[%s8641_s8 + $0x12c] sm:$0xf0]  ;;  %v5647_v22 = vld [vmem:[%s8641_s8 + $0x5a8] sm:$0xf0] }
 0x330   :  { %v5164_v21 = vld [vmem:[%s8641_s8 + $0x578] sm:$0xf] }
 0x331   :  { %3330 = vmatpush.bf16.msrb.mxu0 %v4681_v49  ;;  %3344 = vmatpush.bf16.msrb.mxu1 %v5097_v50  ;;  %v4792_v49 = vld [vmem:[%s8641_s8 + $0x298] sm:$0xf]  ;;  %v5555_v50 = vld [vmem:[%s8641_s8 + $0x2c8] sm:$0xf0]  ;;  %v5165_v26 = vor.u32 %v5647_v22, %v5164_v21 }
 0x332   :  { %3358 = vmatpush.bf16.msrb.mxu2 %v4685_v53  ;;  %3372 = vmatpush.bf16.msrb.mxu3 %v5101_v54  ;;  %v5208_v53 = vld [vmem:[%s8641_s8 + $0x5d8] sm:$0xf]  ;;  %v5659_v54 = vld [vmem:[%s8641_s8 + $0x608] sm:$0xf0]  ;;  %v4793_v36 = vor.u32 %v5555_v50, %v4792_v49  ;;  %v5005_v50 = vor.u32 %v5601_v38, %v5002_v41  ;;  %v4644_v38 = vld [vmem:[%s8641_s8 + $0x168] sm:$0xf] }
 0x333   :  { %v5209_v10 = vor.u32 %v5659_v54, %v5208_v53  ;;  %v5484_v53 = vld [vmem:[%s8641_s8 + $0x94] sm:$0xf]  ;;  %v4534_v54 = vld [vmem:[%s8641_s8 + $0xc4] sm:$0xf0]  ;;  %v5517_v41 = vld [vmem:[%s8641_s8 + $0x198] sm:$0xf0] }
 0x335   :  { %3331 = vmatpush.bf16.msrb.mxu0 %v4629_v1  ;;  %3345 = vmatpush.bf16.msrb.mxu1 %v5045_v57  ;;  %v4740_v1 = vld [vmem:[%s8641_s8 + $0x230] sm:$0xf]  ;;  %v5542_v57 = vld [vmem:[%s8641_s8 + $0x260] sm:$0xf0] }
 0x336   :  { %3359 = vmatpush.bf16.msrb.mxu2 %v4633_v60  ;;  %3373 = vmatpush.bf16.msrb.mxu3 %v5049_v40  ;;  %v5156_v60 = vld [vmem:[%s8641_s8 + $0x570] sm:$0xf]  ;;  %v5646_v40 = vld [vmem:[%s8641_s8 + $0x5a0] sm:$0xf0]  ;;  %v4741_v5 = vor.u32 %v5542_v57, %v4740_v1  ;;  %v4896_v1 = vld [vmem:[%s8641_s8 + $0x368] sm:$0xf]  ;;  %v4537_v57 = vor.u32 %v5484_v53, %v4534_v54  ;;  %v4645_v53 = vor.u32 %v5517_v41, %v4644_v38 }
 0x337   :  { %v5157_v6 = vor.u32 %v5646_v40, %v5156_v60  ;;  %v5471_v60 = vld [vmem:[%s8641_s8 + $0x2c] sm:$0xf]  ;;  %v4482_v40 = vld [vmem:[%s8641_s8 + $0x5c] sm:$0xf0] }
 0x339   :  { %3332 = vmatpush.bf16.msrb.mxu0 %v4577_v7  ;;  %3346 = vmatpush.bf16.msrb.mxu1 %v4993_v37  ;;  %v4688_v7 = vld [vmem:[%s8641_s8 + $0x1c8] sm:$0xf]  ;;  %v5529_v37 = vld [vmem:[%s8641_s8 + $0x1f8] sm:$0xf0] }
 0x33a   :  { %3360 = vmatpush.bf16.msrb.mxu2 %v4581_v9  ;;  %3374 = vmatpush.bf16.msrb.mxu3 %v4997_v11  ;;  %v5104_v9 = vld [vmem:[%s8641_s8 + $0x508] sm:$0xf]  ;;  %v5633_v11 = vld [vmem:[%s8641_s8 + $0x538] sm:$0xf0]  ;;  %v4689_v15 = vor.u32 %v5529_v37, %v4688_v7 }
 0x33b   :  { %v5105_v17 = vor.u32 %v5633_v11, %v5104_v9  ;;  %v4853_v9 = vor.u32 %v5569_v4, %v4852_v3  ;;  %v4956_v4 = vld [vmem:[%s8641_s8 + $0x3d8] sm:$0xf] }
 0x33d   :  { %3333 = vmatpush.bf16.msrb.mxu0 %v4525_v18  ;;  %3347 = vmatpush.bf16.msrb.mxu1 %v4941_v19  ;;  %v5516_v18 = vld [vmem:[%s8641_s8 + $0x190] sm:$0xf0]  ;;  %v4693_v19 = vor.u32 %v5523_v8, %v4690_v12  ;;  %v4800_v8 = vld [vmem:[%s8641_s8 + $0x2a0] sm:$0xf] }
 0x33e   :  { %3361 = vmatpush.bf16.msrb.mxu2 %v4529_v23  ;;  %3375 = vmatpush.bf16.msrb.mxu3 %v4945_v24  ;;  %v5510_v23 = vld [vmem:[%s8641_s8 + $0x164] sm:$0xf]  ;;  %v4638_v24 = vld [vmem:[%s8641_s8 + $0x194] sm:$0xf0]  ;;  %v4637_v27 = vor.u32 %v5516_v18, %v4636_v16  ;;  %v5556_v12 = vld [vmem:[%s8641_s8 + $0x2d0] sm:$0xf0]  ;;  %v5217_v16 = vor.u32 %v5660_v14, %v5216_v13 }
 0x33f   :  { %v4641_v30 = vor.u32 %v5510_v23, %v4638_v24  ;;  %v4748_v18 = vld [vmem:[%s8641_s8 + $0x238] sm:$0xf]  ;;  %v4488_v14 = vld [vmem:[%s8641_s8 + $0x30] sm:$0xf] }
 0x341   :  { %3334 = vmatpush.bf16.msrb.mxu0 %v4473_v34  ;;  %3348 = vmatpush.bf16.msrb.mxu1 %v4889_v44  ;;  %v5607_v34 = vld [vmem:[%s8641_s8 + $0x468] sm:$0xf0]  ;;  %v5497_v44 = vld [vmem:[%s8641_s8 + $0xfc] sm:$0xf] }
 0x342   :  { %3362 = vmatpush.bf16.msrb.mxu2 %v4477_v42  ;;  %3376 = vmatpush.bf16.msrb.mxu3 %v4893_v45  ;;  %v4585_v42 = vor.u32 %v5503_v39, %v4584_v29  ;;  %v5001_v45 = vor.u32 %v5607_v34, %v5000_v33  ;;  %v4589_v49 = vor.u32 %v5497_v44, %v4586_v43  ;;  %v5530_v29 = vld [vmem:[%s8641_s8 + $0x200] sm:$0xf0]  ;;  %v5112_v39 = vld [vmem:[%s8641_s8 + $0x510] sm:$0xf] }
 0x344   :  { %3335 = vmatmul.bf16.vlgmr.msrb.gmra.mxu0 %v7737_v63  ;;  %3349 = vmatmul.bf16.vlgmr.msrb.gmra.mxu1 %v7739_v0 }
 0x345   :  { %3383 = vmatpush.bf16.msra.mxu0 %v4845_v46  ;;  %3397 = vmatpush.bf16.msra.mxu1 %v5261_v48  ;;  %v4532_v46 = vld [vmem:[%s8641_s8 + $0x90] sm:$0xf]  ;;  %v5490_v48 = vld [vmem:[%s8641_s8 + $0xc0] sm:$0xf0] }
 0x346   :  { %3411 = vmatpush.bf16.msra.mxu2 %v4849_v51  ;;  %3425 = vmatpush.bf16.msra.mxu3 %v5265_v52  ;;  %v4948_v51 = vld [vmem:[%s8641_s8 + $0x3d0] sm:$0xf]  ;;  %v5594_v52 = vld [vmem:[%s8641_s8 + $0x400] sm:$0xf0]  ;;  %v4533_v56 = vor.u32 %v5490_v48, %v4532_v46 }
 0x347   :  { %3363 = vmatmul.bf16.vlgmr.msrb.gmra.mxu2 %v7737_v63  ;;  %3377 = vmatmul.bf16.vlgmr.msrb.gmra.mxu3 %v7739_v0  ;;  %v4949_v35 = vor.u32 %v5594_v52, %v4948_v51 }
 0x349   :  { %3384 = vmatpush.bf16.msra.mxu0 %v4793_v36  ;;  %3398 = vmatpush.bf16.msra.mxu1 %v5209_v10  ;;  %v4480_v36 = vld [vmem:[%s8641_s8 + $0x28] sm:$0xf]  ;;  %v5477_v10 = vld [vmem:[%s8641_s8 + $0x58] sm:$0xf0] }
 0x34a   :  { %3412 = vmatpush.bf16.msra.mxu2 %v4797_v47  ;;  %3426 = vmatpush.bf16.msra.mxu3 %v5213_v59  ;;  %v4953_v47 = vor.u32 %v5588_v58, %v4950_v55  ;;  %v5581_v59 = vld [vmem:[%s8641_s8 + $0x398] sm:$0xf0]  ;;  %v4481_v7 = vor.u32 %v5477_v10, %v4480_v36  ;;  %v4592_v55 = vld [vmem:[%s8641_s8 + $0x100] sm:$0xf]  ;;  %v5608_v10 = vld [vmem:[%s8641_s8 + $0x470] sm:$0xf0] }
 0x34b   :  { %v4897_v37 = vor.u32 %v5581_v59, %v4896_v1  ;;  %v5008_v36 = vld [vmem:[%s8641_s8 + $0x440] sm:$0xf] }
 0x34d   :  { %3385 = vmatpush.bf16.msra.mxu0 %v4741_v5  ;;  %3399 = vmatpush.bf16.msra.mxu1 %v5157_v6  ;;  %v5268_v5 = vld [vmem:[%s8641_s8 + $0x648] sm:$0xf]  ;;  %v5673_v6 = vld [vmem:[%s8641_s8 + $0x678] sm:$0xf0] }
 0x34e   :  { %3413 = vmatpush.bf16.msra.mxu2 %v4745_v2  ;;  %3427 = vmatpush.bf16.msra.mxu3 %v5161_v31  ;;  %v4485_v2 = vor.u32 %v5471_v60, %v4482_v40  ;;  %v4901_v31 = vor.u32 %v5575_v61, %v4898_v62  ;;  %v5269_v11 = vor.u32 %v5673_v6, %v5268_v5  ;;  %v4540_v40 = vld [vmem:[%s8641_s8 + $0x98] sm:$0xf]  ;;  %v5491_v61 = vld [vmem:[%s8641_s8 + $0xc8] sm:$0xf0] }
 0x34f   :  { %v5009_v60 = vor.u32 %v5608_v10, %v5008_v36  ;;  %v5595_v5 = vld [vmem:[%s8641_s8 + $0x408] sm:$0xf0] }
 0x351   :  { %3386 = vmatpush.bf16.msra.mxu0 %v4689_v15  ;;  %3400 = vmatpush.bf16.msra.mxu1 %v5105_v17  ;;  %v8532_v15 = vld [vmem:[%s8642_s9] sm:$0xff]  ;;  %v4801_v17 = vor.u32 %v5556_v12, %v4800_v8  ;;  %v4541_v8 = vor.u32 %v5491_v61, %v4540_v40  ;;  %v4957_v12 = vor.u32 %v5595_v5, %v4956_v4 }
 0x352   :  { %3414 = vmatpush.bf16.msra.mxu2 %v4693_v19  ;;  %3428 = vmatpush.bf16.msra.mxu3 %v5109_v20  ;;  %v2021_v19 = vperm.slane %v8532_v15, 0  ;;  %v5543_v20 = vld [vmem:[%s8641_s8 + $0x268] sm:$0xf0]  ;;  %v2022_v33 = vperm.slane %v8532_v15, 1  ;;  %v2023_v62 = vperm.slane %v8532_v15, 2 }
 0x353   :  { %v4749_v25 = vor.u32 %v5543_v20, %v4748_v18  ;;  %v4904_v18 = vld [vmem:[%s8641_s8 + $0x370] sm:$0xf] }
 0x355   :  { %3387 = vmatpush.bf16.msra.mxu0 %v4637_v27  ;;  %3401 = vmatpush.bf16.msra.mxu1 %v5053_v28  ;;  %v4696_v28 = vld [vmem:[%s8641_s8 + $0x1d0] sm:$0xf] }
 0x356   :  { %3415 = vmatpush.bf16.msra.mxu2 %v4641_v30  ;;  %3429 = vmatpush.bf16.msra.mxu3 %v5057_v32  ;;  %v5634_v30 = vld [vmem:[%s8641_s8 + $0x540] sm:$0xf0]  ;;  %v4697_v44 = vor.u32 %v5530_v29, %v4696_v28 }
 0x357   :  { %v5113_v43 = vor.u32 %v5634_v30, %v5112_v39 }
 0x359   :  { %3388 = vmatpush.bf16.msra.mxu0 %v4585_v42  ;;  %3402 = vmatpush.bf16.msra.mxu1 %v5001_v45  ;;  %v5060_v42 = vld [vmem:[%s8641_s8 + $0x4a8] sm:$0xf]  ;;  %v5621_v45 = vld [vmem:[%s8641_s8 + $0x4d8] sm:$0xf0] }
 0x35a   :  { %3416 = vmatpush.bf16.msra.mxu2 %v4589_v49  ;;  %3430 = vmatpush.bf16.msra.mxu3 %v5005_v50  ;;  %v5061_v54 = vor.u32 %v5621_v45, %v5060_v42 }
 0x35d   :  { %3389 = vmatpush.bf16.msra.mxu0 %v4533_v56  ;;  %3403 = vmatpush.bf16.msra.mxu1 %v4949_v35  ;;  %v5504_v35 = vld [vmem:[%s8641_s8 + $0x130] sm:$0xf0] }
 0x35e   :  { %3417 = vmatpush.bf16.msra.mxu2 %v4537_v57  ;;  %3431 = vmatpush.bf16.msra.mxu3 %v4953_v47  ;;  %v4593_v59 = vor.u32 %v5504_v35, %v4592_v55 }
 0x360   :  { %v3112_v23 = vpop.f32.mrf.mxu0  ;;  %v3126_v24 = vpop.f32.mrf.mxu1 }
 0x361   :  { %3390 = vmatpush.bf16.msra.mxu0 %v4481_v7  ;;  %3404 = vmatpush.bf16.msra.mxu1 %v4897_v37  ;;  %v3113_v27 = vadd.f32 %v3112_v23, %v2021_v19  ;;  %v2024_v23 = vperm.slane %v8532_v15, 3 }
 0x362   :  { %3418 = vmatpush.bf16.msra.mxu2 %v4485_v2  ;;  %3432 = vmatpush.bf16.msra.mxu3 %v4901_v31 }
 0x363   :  { %v3127_v32 = vadd.f32 %v3126_v24, %v3113_v27 }
 0x364   :  { %3391 = vmatmul.bf16.vlgmr.msra.gmra.mxu0 %v7737_v63  ;;  %3405 = vmatmul.bf16.vlgmr.msra.gmra.mxu1 %v7739_v0 }
 0x365   :  { %3439 = vmatpush.bf16.msrb.mxu0 %v4853_v9  ;;  %3453 = vmatpush.bf16.msrb.mxu1 %v5269_v11  ;;  %v3467_v34 = vsub.f32 0.0, %v3127_v32 }
 0x366   :  { %3419 = vmatmul.bf16.vlgmr.msra.gmra.mxu2 %v7737_v63  ;;  %3433 = vmatmul.bf16.vlgmr.msra.gmra.mxu3 %v7739_v0 }
 0x367   :  { %v3493_v46 = vmul.f32 1.442695, %v3467_v34  ;;  %v3140_v48 = vpop.f32.mrf.mxu2  ;;  %v3154_v49 = vpop.f32.mrf.mxu3 }
 0x368   :  { %v3141_v50 = vadd.f32 %v3140_v48, %v2022_v33  ;;  %v3114_v51 = vpop.f32.mrf.mxu0  ;;  %v3128_v52 = vpop.f32.mrf.mxu1 }
 0x369   :  { %3440 = vmatpush.bf16.msrb.mxu0 %v4801_v17  ;;  %3454 = vmatpush.bf16.msrb.mxu1 %v5217_v16  ;;  %v3115_v58 = vadd.f32 %v3114_v51, %v2021_v19  ;;  %5688 = vpow2.f32 %v3493_v46  ;;  %v5478_v16 = vld [vmem:[%s8641_s8 + $0x60] sm:$0xf0] }
 0x36a   :  { %v3155_v56 = vadd.f32 %v3154_v49, %v3141_v50  ;;  %v5582_v19 = vld [vmem:[%s8641_s8 + $0x3a0] sm:$0xf0] }
 0x36b   :  { %v3129_v1 = vadd.f32 %v3128_v52, %v3115_v58 }
 0x36c   :  { %v3468_v57 = vsub.f32 0.0, %v3155_v56  ;;  %v2025_v56 = vperm.slane %v8532_v15, 4 }
 0x36d   :  { %3441 = vmatpush.bf16.msrb.mxu0 %v4749_v25  ;;  %3455 = vmatpush.bf16.msrb.mxu1 %v5165_v26  ;;  %v3480_v47 = vsub.f32 0.0, %v3129_v1  ;;  %v4489_v25 = vor.u32 %v5478_v16, %v4488_v14  ;;  %v4905_v26 = vor.u32 %v5582_v19, %v4904_v18 }
 0x36e   :  { %v3495_v3 = vmul.f32 1.442695, %v3468_v57 }
 0x36f   :  { %v3519_v6 = vmul.f32 1.442695, %v3480_v47  ;;  %v3142_v7 = vpop.f32.mrf.mxu2  ;;  %v3156_v37 = vpop.f32.mrf.mxu3 }
 0x370   :  { %v5689_v2 = vpop.eup %5688  ;;  %5690 = vpow2.f32 %v3495_v3  ;;  %v3143_v31 = vadd.f32 %v3142_v7, %v2022_v33  ;;  %v3168_v9 = vpop.f32.mrf.mxu0  ;;  %v2026_v3 = vperm.slane %v8532_v15, 5 }
 0x371   :  { %3442 = vmatpush.bf16.msrb.mxu0 %v4697_v44  ;;  %3456 = vmatpush.bf16.msrb.mxu1 %v5113_v43  ;;  %v3182_v11 = vpop.f32.mrf.mxu1  ;;  %v3169_v13 = vadd.f32 %v3168_v9, %v2023_v62  ;;  %5692 = vpow2.f32 %v3519_v6  ;;  %v3545_v20 = vadd.f32 1.0, %v5689_v2 }
 0x372   :  { %v3157_v17 = vadd.f32 %v3156_v37, %v3143_v31 }
 0x373   :  { %v3183_v21 = vadd.f32 %v3182_v11, %v3169_v13  ;;  %5694 = vrcp.f32 %v3545_v20 }
 0x374   :  { %v3481_v22 = vsub.f32 0.0, %v3157_v17 }
 0x375   :  { %3443 = vmatpush.bf16.msrb.mxu0 %v4645_v53  ;;  %3457 = vmatpush.bf16.msrb.mxu1 %v5061_v54  ;;  %v3469_v24 = vsub.f32 0.0, %v3183_v21 }
 0x376   :  { %v5691_v27 = vpop.eup %5690  ;;  %v3521_v28 = vmul.f32 1.442695, %v3481_v22 }
 0x377   :  { %v3546_v29 = vadd.f32 1.0, %v5691_v27  ;;  %v3497_v39 = vmul.f32 1.442695, %v3469_v24  ;;  %v3196_v30 = vpop.f32.mrf.mxu2  ;;  %v3210_v32 = vpop.f32.mrf.mxu3 }
 0x378   :  { %v5693_v33 = vpop.eup %5692  ;;  %5696 = vpow2.f32 %v3521_v28  ;;  %v3197_v34 = vadd.f32 %v3196_v30, %v2024_v23  ;;  %v3170_v44 = vpop.f32.mrf.mxu0 }
 0x379   :  { %3444 = vmatpush.bf16.msrb.mxu0 %v4593_v59  ;;  %3458 = vmatpush.bf16.msrb.mxu1 %v5009_v60  ;;  %v3184_v43 = vpop.f32.mrf.mxu1  ;;  %5698 = vrcp.f32 %v3546_v29  ;;  %v3171_v38 = vadd.f32 %v3170_v44, %v2023_v62  ;;  %v3558_v42 = vadd.f32 1.0, %v5693_v33  ;;  %v5695_v48 = vpop.eup %5694 }
 0x37a   :  { %v3211_v41 = vadd.f32 %v3210_v32, %v3197_v34  ;;  %5700 = vpow2.f32 %v3497_v39 }
 0x37b   :  { %v3185_v45 = vadd.f32 %v3184_v43, %v3171_v38  ;;  %5702 = vrcp.f32 %v3558_v42 }
 0x37c   :  { %v3470_v46 = vsub.f32 0.0, %v3211_v41 }
 0x37d   :  { %3445 = vmatpush.bf16.msrb.mxu0 %v4541_v8  ;;  %3459 = vmatpush.bf16.msrb.mxu1 %v4957_v12  ;;  %v3482_v49 = vsub.f32 0.0, %v3185_v45 }
 0x37e   :  { %v5697_v50 = vpop.eup %5696  ;;  %v3499_v51 = vmul.f32 1.442695, %v3470_v46  ;;  %v2027_v46 = vperm.slane %v8532_v15, 6 }
 0x37f   :  { %v5699_v52 = vpop.eup %5698  ;;  %v3559_v53 = vadd.f32 1.0, %v5697_v50  ;;  %v3523_v54 = vmul.f32 1.442695, %v3482_v49  ;;  %v3198_v58 = vpop.f32.mrf.mxu2 }
 0x380   :  { %v3212_v55 = vpop.f32.mrf.mxu3  ;;  %v3597_v35 = vpack.c.bf16 %v5699_v52, %v5695_v48  ;;  %5704 = vpow2.f32 %v3499_v51  ;;  %v3199_v36 = vadd.f32 %v3198_v58, %v2024_v23  ;;  %v5701_v10 = vpop.eup %5700 }
 0x381   :  { %3446 = vmatpush.bf16.msrb.mxu0 %v4489_v25  ;;  %3460 = vmatpush.bf16.msrb.mxu1 %v4905_v26  ;;  %5706 = vrcp.f32 %v3559_v53  ;;  %v3238_v1 = vpop.f32.mrf.mxu1  ;;  %v3547_v57 = vadd.f32 1.0, %v5701_v10  ;;  %v5703_v60 = vpop.eup %5702 }
 0x382   :  { %3611 = vst [vmem:[#allocation2] sm:$0xff] %v3597_v35  ;;  %5708 = vpow2.f32 %v3523_v54  ;;  %v2028_v35 = vperm.slane %v8532_v15, 7 }
 0x383   :  { %5710 = vrcp.f32 %v3547_v57 }
 0x384   :  { %3447 = vmatmul.bf16.vlgmr.msrb.gmra.mxu0 %v7737_v63  ;;  %3461 = vmatmul.bf16.vlgmr.msrb.gmra.mxu1 %v7739_v0  ;;  %v3213_v63 = vadd.f32 %v3212_v55, %v3199_v36  ;;  %v3224_v0 = vpop.f32.mrf.mxu0 }
 0x385   :  { %v3225_v47 = vadd.f32 %v3224_v0, %v2025_v56 }
 0x386   :  { %v3483_v59 = vsub.f32 0.0, %v3213_v63  ;;  %v5705_v61 = vpop.eup %5704 }
 0x387   :  { %v3239_v40 = vadd.f32 %v3238_v1, %v3225_v47  ;;  %v5707_v4 = vpop.eup %5706  ;;  %v3548_v5 = vadd.f32 1.0, %v5705_v61 }
 0x388   :  { %v3525_v62 = vmul.f32 1.442695, %v3483_v59  ;;  %v3604_v7 = vpack.c.bf16 %v5707_v4, %v5703_v60  ;;  %v5709_v37 = vpop.eup %5708 }
 0x389   :  { %v3471_v6 = vsub.f32 0.0, %v3239_v40  ;;  %v3560_v13 = vadd.f32 1.0, %v5709_v37  ;;  %v3240_v17 = vpop.f32.mrf.mxu1  ;;  %v5711_v16 = vpop.eup %5710 }
 0x38a   :  { %5712 = vpow2.f32 %v3525_v62  ;;  %v3252_v31 = vpop.f32.mrf.mxu2  ;;  %v3266_v9 = vpop.f32.mrf.mxu3  ;;  %3619 = vst [vmem:[#allocation2 + $0x34] sm:$0xff] %v3604_v7 }
 0x38b   :  { %5714 = vrcp.f32 %v3548_v5  ;;  %v3501_v2 = vmul.f32 1.442695, %v3471_v6  ;;  %v3253_v11 = vadd.f32 %v3252_v31, %v2026_v3 }
 0x38c   :  { %v3226_v8 = vpop.f32.mrf.mxu0 }
 0x38d   :  { %v3227_v12 = vadd.f32 %v3226_v8, %v2025_v56  ;;  %5716 = vpow2.f32 %v3501_v2  ;;  %v3267_v14 = vadd.f32 %v3266_v9, %v3253_v11 }
 0x38e   :  { %5718 = vrcp.f32 %v3560_v13 }
 0x38f   :  { %v3241_v18 = vadd.f32 %v3240_v17, %v3227_v12  ;;  %v3472_v20 = vsub.f32 0.0, %v3267_v14  ;;  %v8623_v17 = vld [vmem:[%s8642_s9 + $0x8] sm:$0x1f]  ;;  %s5821_s9 = smov [#allocation2]  }
 0x390   :  { %v5713_v19 = vpop.eup %5712  ;;  %s3633_s24 = sshll.u32 %s5821_s9, 4  ;;  %s3634_s24 = int_to_ptr.vmem [resolvable:$true] %s3633_s24 }
 0x391   :  { %v5715_v21 = vpop.eup %5714  ;;  %v3561_v22 = vadd.f32 1.0, %v5713_v19  ;;  %v3484_v23 = vsub.f32 0.0, %v3241_v18  ;;  %v3503_v25 = vmul.f32 1.442695, %v3472_v20  ;;  %v2029_v18 = vperm.slane %v8623_v17, 0 }
 0x392   :  { %v3598_v24 = vpack.c.bf16 %v5715_v21, %v5711_v16  ;;  %v3254_v27 = vpop.f32.mrf.mxu2  ;;  %v3268_v39 = vpop.f32.mrf.mxu3 }
 0x393   :  { %5720 = vrcp.f32 %v3561_v22  ;;  %v3527_v26 = vmul.f32 1.442695, %v3484_v23  ;;  %v5717_v28 = vpop.eup %5716  ;;  %v3255_v29 = vadd.f32 %v3254_v27, %v2026_v3 }
 0x394   :  { %3612 = vst [vmem:[#allocation2 + $0x8] sm:$0xff] %v3598_v24  ;;  %5722 = vpow2.f32 %v3503_v25  ;;  %v3549_v32 = vadd.f32 1.0, %v5717_v28  ;;  %v5719_v33 = vpop.eup %5718 }
 0x395   :  { %v3269_v30 = vadd.f32 %v3268_v39, %v3255_v29  ;;  %5724 = vpow2.f32 %v3527_v26  ;;  %v2030_v29 = vperm.slane %v8623_v17, 1 }
 0x396   :  { %5726 = vrcp.f32 %v3549_v32 }
 0x397   :  { %v3485_v34 = vsub.f32 0.0, %v3269_v30 }
 0x399   :  { %v5721_v44 = vpop.eup %5720  ;;  %v3529_v41 = vmul.f32 1.442695, %v3485_v34 }
 0x39a   :  { %v5723_v43 = vpop.eup %5722  ;;  %v3605_v38 = vpack.c.bf16 %v5721_v44, %v5719_v33 }
 0x39b   :  { %v3550_v42 = vadd.f32 1.0, %v5723_v43  ;;  %5728 = vpow2.f32 %v3529_v41  ;;  %v5725_v45 = vpop.eup %5724 }
 0x39c   :  { %3620 = vst [vmem:[#allocation2 + $0x3c] sm:$0xff] %v3605_v38  ;;  %v3562_v48 = vadd.f32 1.0, %v5725_v45  ;;  %v5727_v49 = vpop.eup %5726 }
 0x39d   :  { %5730 = vrcp.f32 %v3550_v42 }
 0x39e   :  { %5732 = vrcp.f32 %v3562_v48 }
 0x3a1   :  { %v5729_v50 = vpop.eup %5728  ;;  %v3280_v51 = vpop.f32.mrf.mxu0 }
 0x3a2   :  { %v3294_v52 = vpop.f32.mrf.mxu1  ;;  %v3563_v54 = vadd.f32 1.0, %v5729_v50  ;;  %v3281_v58 = vadd.f32 %v3280_v51, %v2027_v46 }
 0x3a3   :  { %v5731_v53 = vpop.eup %5730 }
 0x3a4   :  { %v3599_v55 = vpack.c.bf16 %v5731_v53, %v5727_v49  ;;  %5734 = vrcp.f32 %v3563_v54  ;;  %v3295_v56 = vadd.f32 %v3294_v52, %v3281_v58  ;;  %v5733_v1 = vpop.eup %5732 }
 0x3a6   :  { %3613 = vst [vmem:[#allocation2 + $0x10] sm:$0xff] %v3599_v55  ;;  %v3473_v36 = vsub.f32 0.0, %v3295_v56 }
 0x3a8   :  { %v3505_v10 = vmul.f32 1.442695, %v3473_v36 }
 0x3a9   :  { %v3282_v47 = vpop.f32.mrf.mxu0 }
 0x3aa   :  { %v3308_v63 = vpop.f32.mrf.mxu2  ;;  %v3322_v0 = vpop.f32.mrf.mxu3  ;;  %v3283_v60 = vadd.f32 %v3282_v47, %v2027_v46  ;;  %5736 = vpow2.f32 %v3505_v10 }
 0x3ab   :  { %v3309_v57 = vadd.f32 %v3308_v63, %v2028_v35  ;;  %v5735_v59 = vpop.eup %5734  ;;  %v3296_v62 = vpop.f32.mrf.mxu1 }
 0x3ac   :  { %v3606_v40 = vpack.c.bf16 %v5735_v59, %v5733_v1  ;;  %v3297_v3 = vadd.f32 %v3296_v62, %v3283_v60 }
 0x3ad   :  { %v3323_v61 = vadd.f32 %v3322_v0, %v3309_v57  ;;  %v2031_v57 = vperm.slane %v8623_v17, 2 }
 0x3ae   :  { %3621 = vst [vmem:[#allocation2 + $0x44] sm:$0xff] %v3606_v40  ;;  %v3486_v5 = vsub.f32 0.0, %v3297_v3 }
 0x3af   :  { %v3474_v4 = vsub.f32 0.0, %v3323_v61 }
 0x3b0   :  { %v3531_v7 = vmul.f32 1.442695, %v3486_v5  ;;  %v5737_v37 = vpop.eup %5736 }
 0x3b1   :  { %v3507_v6 = vmul.f32 1.442695, %v3474_v4  ;;  %v3551_v11 = vadd.f32 1.0, %v5737_v37 }
 0x3b2   :  { %v3310_v15 = vpop.f32.mrf.mxu2  ;;  %v3324_v31 = vpop.f32.mrf.mxu3 }
 0x3b3   :  { %5738 = vpow2.f32 %v3507_v6  ;;  %v3311_v2 = vadd.f32 %v3310_v15, %v2028_v35 }
 0x3b4   :  { %5740 = vpow2.f32 %v3531_v7  ;;  %v2032_v7 = vperm.slane %v8623_v17, 3 }
 0x3b5   :  { %v3325_v9 = vadd.f32 %v3324_v31, %v3311_v2  ;;  %5742 = vrcp.f32 %v3551_v11 }
 0x3b7   :  { %v3487_v8 = vsub.f32 0.0, %v3325_v9 }
 0x3b9   :  { %v5739_v12 = vpop.eup %5738  ;;  %v3533_v13 = vmul.f32 1.442695, %v3487_v8 }
 0x3ba   :  { %v3552_v14 = vadd.f32 1.0, %v5739_v12  ;;  %v5741_v16 = vpop.eup %5740 }
 0x3bb   :  { %5744 = vpow2.f32 %v3533_v13  ;;  %v3564_v19 = vadd.f32 1.0, %v5741_v16  ;;  %v5743_v20 = vpop.eup %5742 }
 0x3bc   :  { %5746 = vrcp.f32 %v3552_v14 }
 0x3bd   :  { %5748 = vrcp.f32 %v3564_v19 }
 0x3c1   :  { %v5745_v21 = vpop.eup %5744  ;;  %v3336_v22 = vpop.f32.mrf.mxu0 }
 0x3c2   :  { %v3350_v23 = vpop.f32.mrf.mxu1  ;;  %v5747_v24 = vpop.eup %5746  ;;  %v3565_v25 = vadd.f32 1.0, %v5745_v21  ;;  %v3337_v26 = vadd.f32 %v3336_v22, %v2029_v18 }
 0x3c3   :  { %v3600_v27 = vpack.c.bf16 %v5747_v24, %v5743_v20  ;;  %v5749_v34 = vpop.eup %5748 }
 0x3c4   :  { %5750 = vrcp.f32 %v3565_v25  ;;  %v3351_v28 = vadd.f32 %v3350_v23, %v3337_v26 }
 0x3c5   :  { %3614 = vst [vmem:[#allocation2 + $0x18] sm:$0xff] %v3600_v27 }
 0x3c6   :  { %v3475_v39 = vsub.f32 0.0, %v3351_v28 }
 0x3c8   :  { %v3509_v30 = vmul.f32 1.442695, %v3475_v39 }
 0x3c9   :  { %v3338_v43 = vpop.f32.mrf.mxu0 }
 0x3ca   :  { %v3364_v32 = vpop.f32.mrf.mxu2  ;;  %v3378_v33 = vpop.f32.mrf.mxu3  ;;  %v3339_v41 = vadd.f32 %v3338_v43, %v2029_v18  ;;  %5752 = vpow2.f32 %v3509_v30 }
 0x3cb   :  { %v3365_v44 = vadd.f32 %v3364_v32, %v2030_v29  ;;  %v5751_v38 = vpop.eup %5750  ;;  %v3352_v46 = vpop.f32.mrf.mxu1 }
 0x3cc   :  { %v3607_v42 = vpack.c.bf16 %v5751_v38, %v5749_v34  ;;  %v3353_v48 = vadd.f32 %v3352_v46, %v3339_v41 }
 0x3cd   :  { %v3379_v45 = vadd.f32 %v3378_v33, %v3365_v44  ;;  %v2033_v44 = vperm.slane %v8623_v17, 4 }
 0x3ce   :  { %3622 = vst [vmem:[#allocation2 + $0x4c] sm:$0xff] %v3607_v42  ;;  %v3488_v50 = vsub.f32 0.0, %v3353_v48 }
 0x3cf   :  { %v3476_v49 = vsub.f32 0.0, %v3379_v45 }
 0x3d0   :  { %v3535_v52 = vmul.f32 1.442695, %v3488_v50  ;;  %v5753_v54 = vpop.eup %5752 }
 0x3d1   :  { %v3511_v51 = vmul.f32 1.442695, %v3476_v49  ;;  %v3553_v35 = vadd.f32 1.0, %v5753_v54 }
 0x3d2   :  { %v3366_v53 = vpop.f32.mrf.mxu2  ;;  %v3380_v55 = vpop.f32.mrf.mxu3 }
 0x3d3   :  { %5754 = vpow2.f32 %v3511_v51  ;;  %v3367_v58 = vadd.f32 %v3366_v53, %v2030_v29 }
 0x3d4   :  { %5756 = vpow2.f32 %v3535_v52 }
 0x3d5   :  { %v3381_v56 = vadd.f32 %v3380_v55, %v3367_v58  ;;  %5758 = vrcp.f32 %v3553_v35 }
 0x3d7   :  { %v3489_v36 = vsub.f32 0.0, %v3381_v56 }
 0x3d9   :  { %v5755_v10 = vpop.eup %5754  ;;  %v3537_v63 = vmul.f32 1.442695, %v3489_v36 }
 0x3da   :  { %v3554_v0 = vadd.f32 1.0, %v5755_v10  ;;  %v5757_v1 = vpop.eup %5756 }
 0x3db   :  { %5760 = vpow2.f32 %v3537_v63  ;;  %v3566_v47 = vadd.f32 1.0, %v5757_v1  ;;  %v5759_v59 = vpop.eup %5758 }
 0x3dc   :  { %5762 = vrcp.f32 %v3554_v0 }
 0x3dd   :  { %5764 = vrcp.f32 %v3566_v47 }
 0x3e1   :  { %v3392_v60 = vpop.f32.mrf.mxu0  ;;  %v3406_v40 = vpop.f32.mrf.mxu1 }
 0x3e2   :  { %v5761_v61 = vpop.eup %5760  ;;  %v3393_v62 = vadd.f32 %v3392_v60, %v2031_v57 }
 0x3e3   :  { %v5763_v3 = vpop.eup %5762  ;;  %v3567_v4 = vadd.f32 1.0, %v5761_v61 }
 0x3e4   :  { %v3601_v5 = vpack.c.bf16 %v5763_v3, %v5759_v59  ;;  %v3407_v6 = vadd.f32 %v3406_v40, %v3393_v62  ;;  %v5765_v8 = vpop.eup %5764 }
 0x3e5   :  { %5766 = vrcp.f32 %v3567_v4 }
 0x3e6   :  { %3615 = vst [vmem:[#allocation2 + $0x20] sm:$0xff] %v3601_v5  ;;  %v3477_v15 = vsub.f32 0.0, %v3407_v6 }
 0x3e8   :  { %v3513_v37 = vmul.f32 1.442695, %v3477_v15 }
 0x3e9   :  { %v3420_v2 = vpop.f32.mrf.mxu2  ;;  %v3434_v31 = vpop.f32.mrf.mxu3 }
 0x3ea   :  { %v3421_v9 = vadd.f32 %v3420_v2, %v2032_v7  ;;  %v3394_v11 = vpop.f32.mrf.mxu0  ;;  %5768 = vpow2.f32 %v3513_v37  ;;  %v3408_v16 = vpop.f32.mrf.mxu1 }
 0x3eb   :  { %v3395_v12 = vadd.f32 %v3394_v11, %v2031_v57  ;;  %v5767_v13 = vpop.eup %5766 }
 0x3ec   :  { %v3435_v14 = vadd.f32 %v3434_v31, %v3421_v9  ;;  %v3608_v18 = vpack.c.bf16 %v5767_v13, %v5765_v8 }
 0x3ed   :  { %v3409_v19 = vadd.f32 %v3408_v16, %v3395_v12 }
 0x3ee   :  { %v3478_v20 = vsub.f32 0.0, %v3435_v14  ;;  %3623 = vst [vmem:[#allocation2 + $0x54] sm:$0xff] %v3608_v18 }
 0x3ef   :  { %v3490_v21 = vsub.f32 0.0, %v3409_v19 }
 0x3f0   :  { %v3515_v22 = vmul.f32 1.442695, %v3478_v20  ;;  %v5769_v25 = vpop.eup %5768 }
 0x3f1   :  { %v3539_v23 = vmul.f32 1.442695, %v3490_v21  ;;  %v3422_v24 = vpop.f32.mrf.mxu2  ;;  %v3436_v27 = vpop.f32.mrf.mxu3  ;;  %v3555_v29 = vadd.f32 1.0, %v5769_v25 }
 0x3f2   :  { %5770 = vpow2.f32 %v3515_v22  ;;  %v3423_v26 = vadd.f32 %v3422_v24, %v2032_v7 }
 0x3f3   :  { %5772 = vpow2.f32 %v3539_v23 }
 0x3f4   :  { %v3437_v28 = vadd.f32 %v3436_v27, %v3423_v26  ;;  %5774 = vrcp.f32 %v3555_v29 }
 0x3f6   :  { %v3491_v39 = vsub.f32 0.0, %v3437_v28 }
 0x3f8   :  { %v5771_v30 = vpop.eup %5770  ;;  %v3541_v32 = vmul.f32 1.442695, %v3491_v39 }
 0x3f9   :  { %v3556_v33 = vadd.f32 1.0, %v5771_v30  ;;  %v5773_v34 = vpop.eup %5772 }
 0x3fa   :  { %5776 = vpow2.f32 %v3541_v32  ;;  %v3568_v43 = vadd.f32 1.0, %v5773_v34  ;;  %v5775_v38 = vpop.eup %5774 }
 0x3fb   :  { %5778 = vrcp.f32 %v3556_v33 }
 0x3fc   :  { %5780 = vrcp.f32 %v3568_v43 }
 0x400   :  { %v5777_v41 = vpop.eup %5776 }
 0x401   :  { %v3448_v42 = vpop.f32.mrf.mxu0  ;;  %v3462_v45 = vpop.f32.mrf.mxu1  ;;  %v3569_v48 = vadd.f32 1.0, %v5777_v41 }
 0x402   :  { %v5779_v46 = vpop.eup %5778  ;;  %v3449_v49 = vadd.f32 %v3448_v42, %v2033_v44 }
 0x403   :  { %v3602_v50 = vpack.c.bf16 %v5779_v46, %v5775_v38  ;;  %5782 = vrcp.f32 %v3569_v48  ;;  %v5781_v54 = vpop.eup %5780 }
 0x404   :  { %v3463_v51 = vadd.f32 %v3462_v45, %v3449_v49 }
 0x405   :  { %3616 = vst [vmem:[#allocation2 + $0x28] sm:$0xff] %v3602_v50 }
 0x406   :  { %v3479_v52 = vsub.f32 0.0, %v3463_v51 }
 0x408   :  { %v3517_v53 = vmul.f32 1.442695, %v3479_v52 }
 0x409   :  { %v3450_v58 = vpop.f32.mrf.mxu0  ;;  %v5783_v55 = vpop.eup %5782 }
 0x40a   :  { %5784 = vpow2.f32 %v3517_v53  ;;  %v3451_v17 = vadd.f32 %v3450_v58, %v2033_v44  ;;  %v3609_v56 = vpack.c.bf16 %v5783_v55, %v5781_v54  ;;  %v3464_v35 = vpop.f32.mrf.mxu1 }
 0x40c   :  { %v3465_v36 = vadd.f32 %v3464_v35, %v3451_v17  ;;  %3624 = vst [vmem:[#allocation2 + $0x5c] sm:$0xff] %v3609_v56 }
 0x40e   :  { %v3492_v10 = vsub.f32 0.0, %v3465_v36 }
 0x410   :  { %v5785_v63 = vpop.eup %5784  ;;  %v3543_v0 = vmul.f32 1.442695, %v3492_v10 }
 0x411   :  { %v3557_v1 = vadd.f32 1.0, %v5785_v63 }
 0x412   :  { %5786 = vpow2.f32 %v3543_v0 }
 0x413   :  { %5788 = vrcp.f32 %v3557_v1 }
 0x418   :  { %v5787_v57 = vpop.eup %5786 }
 0x419   :  { %v5789_v47 = vpop.eup %5788  ;;  %v3570_v59 = vadd.f32 1.0, %v5787_v57 }
 0x41a   :  { %v3603_v60 = vpack.c.bf16 %v5789_v47, %v5789_v47 }
 0x41b   :  { %5790 = vrcp.f32 %v3570_v59 }
 0x41c   :  { %3618 = vst.msk [vmem:[#allocation2 + $0x30] sm:$0xf] %vm3617_vm2, %v3603_v60 }
 0x421   :  { %v5791_v40 = vpop.eup %5790 }
 0x422   :  { %v3610_v61 = vpack.c.bf16 %v5791_v40, %v5791_v40 }
 0x424   :  { %3625 = vst.msk [vmem:[#allocation2 + $0x64] sm:$0xf] %vm3617_vm2, %v3610_v61 }
 0x425   :  { %3641 = dma.vmem_to_hbm [thread:$0]  %s3634_s24, 1664, %s3636_s26, [#allocation3], %s5822_s27, %s5822_s27, %s5823_s11  }
 0x426   :  { %5816 = dma.done.wait [#allocation3], 1664  }
 0x427   :  { %5817 = vsyncadd [#allocation3], 4294965632 }
 0x428   :  { %3650 = vsyncpa [#allocation3], 1 }

</bundles_post_ra>
